<compile_context>
chip_gen: v7x
topology: tpu7x:2x2x1
jax: 0.10.0
libtpu: 0.0.40
codegen_flags: <defaults>
</compile_context>

<pallas_src>
import functools

import jax
import jax.numpy as jnp
from jax.experimental import pallas as pl
from jax.experimental.pallas import tpu as pltpu


LEAKY_SLOPE = 0.01  # nn.LeakyReLU() default negative_slope
_LANE = 128         # TPU lane width


def _generator_kernel(x_ref,
                      w1_ref, b1_ref,
                      w2_ref, b2_ref,
                      w3_ref, b3_ref,
                      w4_ref, b4_ref,
                      o_ref):
    """Fused 4-layer MLP: (Linear + LeakyReLU) x3 -> Linear + Tanh.

    Matmul operands are bf16 (MXU-friendly); accumulation + bias-add +
    activations are f32 on the VPU/EUP.
    """

    def leaky_relu(y):
        return jnp.where(y >= 0, y, LEAKY_SLOPE * y)

    # fc1 + LeakyReLU   (x arrives already cast to bf16 by the wrapper)
    h = jnp.dot(x_ref[...], w1_ref[...],
                preferred_element_type=jnp.float32) + b1_ref[...]
    h = leaky_relu(h)

    # fc2 + LeakyReLU
    h = jnp.dot(h.astype(jnp.bfloat16), w2_ref[...],
                preferred_element_type=jnp.float32) + b2_ref[...]
    h = leaky_relu(h)

    # fc3 + LeakyReLU
    h = jnp.dot(h.astype(jnp.bfloat16), w3_ref[...],
                preferred_element_type=jnp.float32) + b3_ref[...]
    h = leaky_relu(h)

    # fc4 + Tanh
    y = jnp.dot(h.astype(jnp.bfloat16), w4_ref[...],
                preferred_element_type=jnp.float32) + b4_ref[...]
    o_ref[...] = jnp.tanh(y).astype(o_ref.dtype)


def _round_up(n, m):
    return ((n + m - 1) // m) * m


def _pad_to(arr, axis, target):
    pad = target - arr.shape[axis]
    if pad == 0:
        return arr
    widths = [(0, 0)] * arr.ndim
    widths[axis] = (0, pad)
    return jnp.pad(arr, widths)


def generator_forward(x, params, *, block_m=128):
    """Run the fused Generator MLP via a single pallas_call.

    x: (batch, input_size) float32
    params: dict with w1..w4 stored as (in, out) and b1..b4 stored as (1, out),
            all float32 (cast to bf16 for the MXU inside this wrapper).

    Batch, the fc1 contraction dim, and the output dim are zero-padded on the
    wrapper side to MXU/lane-friendly multiples; the result is sliced back, so
    any batch / input_size / output_size is accepted.
    """
    w1, b1 = params["w1"], params["b1"]
    w2, b2 = params["w2"], params["b2"]
    w3, b3 = params["w3"], params["b3"]
    w4, b4 = params["w4"], params["b4"]

    batch, in_dim = x.shape
    out_dim = w4.shape[1]

    batch_p = _round_up(batch, block_m)
    in_p = _round_up(in_dim, _LANE)
    out_p = _round_up(out_dim, _LANE)

    # Layout plumbing only (zero padding + bf16 cast); results are unchanged.
    x_p = _pad_to(_pad_to(x, 1, in_p), 0, batch_p).astype(jnp.bfloat16)
    w1_p = _pad_to(w1, 0, in_p).astype(jnp.bfloat16)
    w2_p = w2.astype(jnp.bfloat16)
    w3_p = w3.astype(jnp.bfloat16)
    w4_p = _pad_to(w4, 1, out_p).astype(jnp.bfloat16)
    b1_p = b1.astype(jnp.float32)
    b2_p = b2.astype(jnp.float32)
    b3_p = b3.astype(jnp.float32)
    b4_p = _pad_to(b4, 1, out_p).astype(jnp.float32)

    grid = (batch_p // block_m,)

    # Weights/biases use full-extent blocks with a constant index_map, so they
    # stay resident in VMEM across all batch tiles (bf16 weights < 2 MiB).
    def full_spec(arr):
        return pl.BlockSpec(arr.shape, lambda i: (0, 0))

    out = pl.pallas_call(
        _generator_kernel,
        out_shape=jax.ShapeDtypeStruct((batch_p, out_p), jnp.float32),
        grid_spec=pltpu.PrefetchScalarGridSpec(
            num_scalar_prefetch=0,
            grid=grid,
            in_specs=[
                pl.BlockSpec((block_m, in_p), lambda i: (i, 0)),   # x tile
                full_spec(w1_p), full_spec(b1_p),
                full_spec(w2_p), full_spec(b2_p),
                full_spec(w3_p), full_spec(b3_p),
                full_spec(w4_p), full_spec(b4_p),
            ],
            out_specs=pl.BlockSpec((block_m, out_p), lambda i: (i, 0)),
        ),
        compiler_params=pltpu.CompilerParams(
            dimension_semantics=("parallel",),  # shard batch tiles across TCs
        ),
    )(x_p, w1_p, b1_p, w2_p, b2_p, w3_p, b3_p, w4_p, b4_p)

    return out[:batch, :out_dim]


def init_generator_params(key, input_size, output_size):
    """Deterministic init mirroring nn.Linear default (U(-1/sqrt(fan_in), +))."""
    dims = [(input_size, 256), (256, 512), (512, 1024), (1024, output_size)]
    params = {}
    for idx, (fan_in, fan_out) in enumerate(dims, start=1):
        key, kw, kb = jax.random.split(key, 3)
        bound = 1.0 / jnp.sqrt(float(fan_in))
        # stored as (in, out) so the kernel can do x @ W directly
        params[f"w{idx}"] = jax.random.uniform(
            kw, (fan_in, fan_out), jnp.float32, minval=-bound, maxval=bound)
        params[f"b{idx}"] = jax.random.uniform(
            kb, (1, fan_out), jnp.float32, minval=-bound, maxval=bound)
    return params


def generator_reference(x, params):
    """Plain-JAX f32 reference of the same forward pass (for sanity checking)."""
    lrelu = lambda y: jnp.where(y >= 0, y, LEAKY_SLOPE * y)
    h = lrelu(x @ params["w1"] + params["b1"])
    h = lrelu(h @ params["w2"] + params["b2"])
    h = lrelu(h @ params["w3"] + params["b3"])
    return jnp.tanh(h @ params["w4"] + params["b4"])


if __name__ == "__main__":
    key = jax.random.PRNGKey(0)
    key, kx, kp = jax.random.split(key, 3)

    batch = 200          # not a multiple of block_m -> exercises batch padding
    input_size = 64      # latent noise dim (padded to 128 internally)
    output_size = 100    # generated sample dim (padded to 128 internally)

    x = jax.random.normal(kx, (batch, input_size), jnp.float32)
    params = init_generator_params(kp, input_size, output_size)

    run = jax.jit(functools.partial(generator_forward, block_m=128))
    y = jax.block_until_ready(run(x, params))

    # sanity check against the pure-f32 JAX reference
    # (bf16 matmul operands with f32 accumulation -> loosened tolerance)
    y_ref = generator_reference(x, params)
    assert y.shape == (batch, output_size)
    assert jnp.allclose(y, y_ref, atol=5e-2, rtol=5e-2), "mismatch vs reference"

    print("KERNEL_OK")
</pallas_src>

<mosaic_0001>
module attributes {stable_mosaic.version = 11 : i64} {
  func.func @_generator_kernel(%arg0: i32, %arg1: memref<128x128xbf16, #tpu.memory_space<vmem>>, %arg2: memref<128x256xbf16, #tpu.memory_space<vmem>>, %arg3: memref<1x256xf32, #tpu.memory_space<vmem>>, %arg4: memref<256x512xbf16, #tpu.memory_space<vmem>>, %arg5: memref<1x512xf32, #tpu.memory_space<vmem>>, %arg6: memref<512x1024xbf16, #tpu.memory_space<vmem>>, %arg7: memref<1x1024xf32, #tpu.memory_space<vmem>>, %arg8: memref<1024x128xbf16, #tpu.memory_space<vmem>>, %arg9: memref<1x128xf32, #tpu.memory_space<vmem>>, %arg10: memref<128x128xf32, #tpu.memory_space<vmem>>) attributes {dimension_semantics = [#tpu.dimension_semantics<parallel>], iteration_bounds = array<i64: 2>, scalar_prefetch = 0 : i64, scratch_operands = 0 : i64, tpu.core_type = #tpu.core_type<tc>, window_params = [{transform_indices = @transform_0, window_bounds = array<i64: 128, 128>}, {pipeline_mode = #tpu.pipeline_mode<synchronous>, transform_indices = @transform_1, window_bounds = array<i64: 128, 256>}, {pipeline_mode = #tpu.pipeline_mode<synchronous>, transform_indices = @transform_2, window_bounds = array<i64: 1, 256>}, {pipeline_mode = #tpu.pipeline_mode<synchronous>, transform_indices = @transform_3, window_bounds = array<i64: 256, 512>}, {pipeline_mode = #tpu.pipeline_mode<synchronous>, transform_indices = @transform_4, window_bounds = array<i64: 1, 512>}, {pipeline_mode = #tpu.pipeline_mode<synchronous>, transform_indices = @transform_5, window_bounds = array<i64: 512, 1024>}, {pipeline_mode = #tpu.pipeline_mode<synchronous>, transform_indices = @transform_6, window_bounds = array<i64: 1, 1024>}, {pipeline_mode = #tpu.pipeline_mode<synchronous>, transform_indices = @transform_7, window_bounds = array<i64: 1024, 128>}, {pipeline_mode = #tpu.pipeline_mode<synchronous>, transform_indices = @transform_8, window_bounds = array<i64: 1, 128>}, {transform_indices = @transform_9, window_bounds = array<i64: 128, 128>}]} {
    %c0 = arith.constant 0 : index
    %c0_0 = arith.constant 0 : index
    %0 = vector.load %arg1[%c0, %c0_0] : memref<128x128xbf16, #tpu.memory_space<vmem>>, vector<128x128xbf16>
    %c0_1 = arith.constant 0 : index
    %c0_2 = arith.constant 0 : index
    %1 = vector.load %arg2[%c0_1, %c0_2] : memref<128x256xbf16, #tpu.memory_space<vmem>>, vector<128x256xbf16>
    %cst = arith.constant dense<0.000000e+00> : vector<128x256xf32>
    %2 = tpu.matmul %0, %1, %cst {dimension_numbers = #tpu.dot_dimension_numbers<[1], [0], [0], [1], [0, 0, 1, 1], [], []>} : vector<128x128xbf16>, vector<128x256xbf16>, vector<128x256xf32> -> vector<128x256xf32>
    %c0_3 = arith.constant 0 : index
    %c0_4 = arith.constant 0 : index
    %3 = vector.load %arg3[%c0_3, %c0_4] : memref<1x256xf32, #tpu.memory_space<vmem>>, vector<1x256xf32>
    %4 = vector.broadcast %3 : vector<1x256xf32> to vector<128x256xf32>
    %5 = arith.addf %2, %4 : vector<128x256xf32>
    %cst_5 = arith.constant 0.000000e+00 : f32
    %6 = vector.broadcast %cst_5 : f32 to vector<128x256xf32>
    %7 = arith.cmpf oge, %5, %6 : vector<128x256xf32>
    %cst_6 = arith.constant 0.00999999977 : f32
    %8 = vector.broadcast %cst_6 : f32 to vector<128x256xf32>
    %9 = arith.mulf %8, %5 : vector<128x256xf32>
    %10 = arith.select %7, %5, %9 : vector<128x256xi1>, vector<128x256xf32>
    %11 = arith.truncf %10 : vector<128x256xf32> to vector<128x256xbf16>
    %c0_7 = arith.constant 0 : index
    %c0_8 = arith.constant 0 : index
    %12 = vector.load %arg4[%c0_7, %c0_8] : memref<256x512xbf16, #tpu.memory_space<vmem>>, vector<256x512xbf16>
    %cst_9 = arith.constant dense<0.000000e+00> : vector<128x512xf32>
    %13 = tpu.matmul %11, %12, %cst_9 {dimension_numbers = #tpu.dot_dimension_numbers<[1], [0], [0], [1], [0, 0, 1, 1], [], []>} : vector<128x256xbf16>, vector<256x512xbf16>, vector<128x512xf32> -> vector<128x512xf32>
    %c0_10 = arith.constant 0 : index
    %c0_11 = arith.constant 0 : index
    %14 = vector.load %arg5[%c0_10, %c0_11] : memref<1x512xf32, #tpu.memory_space<vmem>>, vector<1x512xf32>
    %15 = vector.broadcast %14 : vector<1x512xf32> to vector<128x512xf32>
    %16 = arith.addf %13, %15 : vector<128x512xf32>
    %cst_12 = arith.constant 0.000000e+00 : f32
    %17 = vector.broadcast %cst_12 : f32 to vector<128x512xf32>
    %18 = arith.cmpf oge, %16, %17 : vector<128x512xf32>
    %cst_13 = arith.constant 0.00999999977 : f32
    %19 = vector.broadcast %cst_13 : f32 to vector<128x512xf32>
    %20 = arith.mulf %19, %16 : vector<128x512xf32>
    %21 = arith.select %18, %16, %20 : vector<128x512xi1>, vector<128x512xf32>
    %22 = arith.truncf %21 : vector<128x512xf32> to vector<128x512xbf16>
    %c0_14 = arith.constant 0 : index
    %c0_15 = arith.constant 0 : index
    %23 = vector.load %arg6[%c0_14, %c0_15] : memref<512x1024xbf16, #tpu.memory_space<vmem>>, vector<512x1024xbf16>
    %cst_16 = arith.constant dense<0.000000e+00> : vector<128x1024xf32>
    %24 = tpu.matmul %22, %23, %cst_16 {dimension_numbers = #tpu.dot_dimension_numbers<[1], [0], [0], [1], [0, 0, 1, 1], [], []>} : vector<128x512xbf16>, vector<512x1024xbf16>, vector<128x1024xf32> -> vector<128x1024xf32>
    %c0_17 = arith.constant 0 : index
    %c0_18 = arith.constant 0 : index
    %25 = vector.load %arg7[%c0_17, %c0_18] : memref<1x1024xf32, #tpu.memory_space<vmem>>, vector<1x1024xf32>
    %26 = vector.broadcast %25 : vector<1x1024xf32> to vector<128x1024xf32>
    %27 = arith.addf %24, %26 : vector<128x1024xf32>
    %cst_19 = arith.constant 0.000000e+00 : f32
    %28 = vector.broadcast %cst_19 : f32 to vector<128x1024xf32>
    %29 = arith.cmpf oge, %27, %28 : vector<128x1024xf32>
    %cst_20 = arith.constant 0.00999999977 : f32
    %30 = vector.broadcast %cst_20 : f32 to vector<128x1024xf32>
    %31 = arith.mulf %30, %27 : vector<128x1024xf32>
    %32 = arith.select %29, %27, %31 : vector<128x1024xi1>, vector<128x1024xf32>
    %33 = arith.truncf %32 : vector<128x1024xf32> to vector<128x1024xbf16>
    %c0_21 = arith.constant 0 : index
    %c0_22 = arith.constant 0 : index
    %34 = vector.load %arg8[%c0_21, %c0_22] : memref<1024x128xbf16, #tpu.memory_space<vmem>>, vector<1024x128xbf16>
    %cst_23 = arith.constant dense<0.000000e+00> : vector<128x128xf32>
    %35 = tpu.matmul %33, %34, %cst_23 {dimension_numbers = #tpu.dot_dimension_numbers<[1], [0], [0], [1], [0, 0, 1, 1], [], []>} : vector<128x1024xbf16>, vector<1024x128xbf16>, vector<128x128xf32> -> vector<128x128xf32>
    %c0_24 = arith.constant 0 : index
    %c0_25 = arith.constant 0 : index
    %36 = vector.load %arg9[%c0_24, %c0_25] : memref<1x128xf32, #tpu.memory_space<vmem>>, vector<1x128xf32>
    %37 = vector.broadcast %36 : vector<1x128xf32> to vector<128x128xf32>
    %38 = arith.addf %35, %37 : vector<128x128xf32>
    %39 = math.tanh %38 : vector<128x128xf32>
    %c0_26 = arith.constant 0 : index
    %c0_27 = arith.constant 0 : index
    %40 = vector.load %arg10[%c0_26, %c0_27] : memref<128x128xf32, #tpu.memory_space<vmem>>, vector<128x128xf32>
    tpu.vector_store %arg10[%c0_26, %c0_27], %39 {strides = array<i32>} : memref<128x128xf32, #tpu.memory_space<vmem>>, vector<128x128xf32>,
    return
  }
  func.func @transform_0(%arg0: i32) -> (i32, i32) {
    %c0_i32 = arith.constant 0 : i32
    %c0_i32_0 = arith.constant 0 : i32
    return %arg0, %c0_i32 : i32, i32
  }
  func.func @transform_1(%arg0: i32) -> (i32, i32) {
    %c0_i32 = arith.constant 0 : i32
    %c0_i32_0 = arith.constant 0 : i32
    %c0_i32_1 = arith.constant 0 : i32
    return %c0_i32, %c0_i32_0 : i32, i32
  }
  func.func @transform_2(%arg0: i32) -> (i32, i32) {
    %c0_i32 = arith.constant 0 : i32
    %c0_i32_0 = arith.constant 0 : i32
    %c0_i32_1 = arith.constant 0 : i32
    return %c0_i32, %c0_i32_0 : i32, i32
  }
  func.func @transform_3(%arg0: i32) -> (i32, i32) {
    %c0_i32 = arith.constant 0 : i32
    %c0_i32_0 = arith.constant 0 : i32
    %c0_i32_1 = arith.constant 0 : i32
    return %c0_i32, %c0_i32_0 : i32, i32
  }
  func.func @transform_4(%arg0: i32) -> (i32, i32) {
    %c0_i32 = arith.constant 0 : i32
    %c0_i32_0 = arith.constant 0 : i32
    %c0_i32_1 = arith.constant 0 : i32
    return %c0_i32, %c0_i32_0 : i32, i32
  }
  func.func @transform_5(%arg0: i32) -> (i32, i32) {
    %c0_i32 = arith.constant 0 : i32
    %c0_i32_0 = arith.constant 0 : i32
    %c0_i32_1 = arith.constant 0 : i32
    return %c0_i32, %c0_i32_0 : i32, i32
  }
  func.func @transform_6(%arg0: i32) -> (i32, i32) {
    %c0_i32 = arith.constant 0 : i32
    %c0_i32_0 = arith.constant 0 : i32
    %c0_i32_1 = arith.constant 0 : i32
    return %c0_i32, %c0_i32_0 : i32, i32
  }
  func.func @transform_7(%arg0: i32) -> (i32, i32) {
    %c0_i32 = arith.constant 0 : i32
    %c0_i32_0 = arith.constant 0 : i32
    %c0_i32_1 = arith.constant 0 : i32
    return %c0_i32, %c0_i32_0 : i32, i32
  }
  func.func @transform_8(%arg0: i32) -> (i32, i32) {
    %c0_i32 = arith.constant 0 : i32
    %c0_i32_0 = arith.constant 0 : i32
    %c0_i32_1 = arith.constant 0 : i32
    return %c0_i32, %c0_i32_0 : i32, i32
  }
  func.func @transform_9(%arg0: i32) -> (i32, i32) {
    %c0_i32 = arith.constant 0 : i32
    %c0_i32_0 = arith.constant 0 : i32
    return %arg0, %c0_i32 : i32, i32
  }
}

</mosaic_0001>

<bundles_post_ra>
// kernel: generator_forward.1
= control target key start
LH: loop header
LB: loop body
LE: loop exit
PB: predicated region body
PF: predicated region fallthrough
CT: control target
= control target key end

     0   :  { %s6755_s30 = smov 0   ;;  %s9665_s0 = inlined_call_operand.vmem [shape: bf16[256,128], index: 0, kind: input, shape index: {}]   ;;  %s9666_s1 = inlined_call_operand.vmem [shape: bf16[128,256], index: 1, kind: input, shape index: {}]   ;;  %s9667_s2 = inlined_call_operand.vmem [shape: f32[1,256], index: 2, kind: input, shape index: {}]   ;;  %s9668_s3 = inlined_call_operand.vmem [shape: bf16[256,512], index: 3, kind: input, shape index: {}]   ;;  %s9669_s4 = inlined_call_operand.vmem [shape: f32[1,512], index: 4, kind: input, shape index: {}]   ;;  %s9670_s5 = inlined_call_operand.vmem [shape: bf16[512,1024], index: 5, kind: input, shape index: {}]   ;;  %s9671_s6 = inlined_call_operand.vmem [shape: f32[1,1024], index: 6, kind: input, shape index: {}]   ;;  %s9672_s7 = inlined_call_operand.vmem [shape: bf16[1024,128], index: 7, kind: input, shape index: {}]   ;;  %s9673_s8 = inlined_call_operand.vmem [shape: f32[1,128], index: 8, kind: input, shape index: {}]   ;;  %s9674_s9 = inlined_call_operand.vmem [shape: f32[256,128], index: 9, kind: output, shape index: {}]  }
   0x1 LB: > { %s5515_s10 = sadd.s32 4294967295, %s6702_s30   ;;  %p5519_p0 = scmp.ge.s32.totalorder %s6702_s30, 1  ;;  %s6702_s30 = sphi %s6755_s30, %s19_s30  }
   0x2   : > { %p288_p1 = scmp.lt.s32.totalorder %s6702_s30, 3 }
   0x4   : > { %p289_p2 = pnand %p5519_p0, %p288_p1 }
   0x6   : > { %292 = sbr.rel (%p289_p2) target bundleno = 1248 (0x4e0), region = 56 }
   0xd   : > { %v6472_v0 = vld [vmem:[%s9666_s1 + $0x4] ss:$8 sps:$4 sm:$0xff]   ;;  %s5520_s13 = sshll.u32 %s5515_s10, 4  ;;  %v6474_v1 = vld [vmem:[%s9666_s1] ss:$8 sps:$4 sm:$0xff]   ;;  %v6704_v2 = vmov 0  }
   0xe   : > { %541 = vmatprep.mubr.bf16.mxu0 %v6704_v2  ;;  %p325_p3 = scmp.lt.s32.totalorder %s5520_s13, 31  ;;  %509 = vmatprep.subr.bf16.mxu0 %v6472_v0  ;;  %v6475_v3 = vld [vmem:[%s9666_s1 + $0x14] ss:$8 sps:$4 sm:$0xff]   ;;  %v6477_v4 = vld [vmem:[%s9666_s1 + $0x10] ss:$8 sps:$4 sm:$0xff]  }
   0xf   : > { %510 = vmatpush1.bf16.msra.mxu0 %v6474_v1  ;;  %v6478_v5 = vld [vmem:[%s9666_s1 + $0x24] ss:$8 sps:$4 sm:$0xff]   ;;  %v6480_v6 = vld [vmem:[%s9666_s1 + $0x20] ss:$8 sps:$4 sm:$0xff]   ;;  %v6481_v7 = vld [vmem:[%s9666_s1 + $0x34] ss:$8 sps:$4 sm:$0xff]  }
  0x10   : > { %s9854_s13 = smov (!%p325_p3, %s5520_s13), 31  ;;  %511 = vmatprep.subr.bf16.mxu0 %v6475_v3  ;;  %v6483_v8 = vld [vmem:[%s9666_s1 + $0x30] ss:$8 sps:$4 sm:$0xff]   ;;  %v6484_v9 = vld [vmem:[%s9666_s1 + $0x44] ss:$8 sps:$4 sm:$0xff]  }
  0x11   : > { %s5521_s22 = sshll.u32 %s9854_s13, 2  ;;  %v6486_v10 = vld [vmem:[%s9666_s1 + $0x40] ss:$8 sps:$4 sm:$0xff]   ;;  %v6487_v11 = vld [vmem:[%s9666_s1 + $0x54] ss:$8 sps:$4 sm:$0xff]   ;;  %s5523_s14 = sshll.u32 %s9854_s13, 3 }
  0x12   : > { %s6791_s29 = scalar_lea.vmem %s9665_s0, %s5521_s22  ;;  %v6489_v12 = vld [vmem:[%s9666_s1 + $0x50] ss:$8 sps:$4 sm:$0xff]   ;;  %v6504_v13 = vld [vmem:[%s9668_s3 + $0x4] ss:$16 sps:$4 sm:$0xff]   ;;  %v6492_v17 = vld [vmem:[%s9666_s1 + $0x60] ss:$8 sps:$4 sm:$0xff]   ;;  %s9632_s16 = scalar_lea.vmem %s9674_s9, %s5523_s14 }
  0x13   : > { %512 = vmatpush1.bf16.msra.mxu0 %v6477_v4  ;;  %v6490_v14 = vld [vmem:[%s9666_s1 + $0x64] ss:$8 sps:$4 sm:$0xff]   ;;  %1140 = vmatprep.subr.bf16.mxu1 %v6504_v13  ;;  %v6509_v15 = vld [vmem:[%s9668_s3] ss:$16 sps:$4 sm:$0xff]   ;;  %v6493_v18 = vld [vmem:[%s9666_s1 + $0x74] ss:$8 sps:$4 sm:$0xff]  }
  0x14   : > { %513 = vmatprep.subr.bf16.mxu0 %v6478_v5  ;;  %v6510_v16 = vld [vmem:[%s9668_s3 + $0x24] ss:$16 sps:$4 sm:$0xff]   ;;  %1141 = vmatpush1.bf16.msra.mxu1 %v6509_v15  ;;  %v6515_v19 = vld [vmem:[%s9668_s3 + $0x20] ss:$16 sps:$4 sm:$0xff]   ;;  %v6508_v23 = vld [vmem:[%s9668_s3 + $0xc] ss:$16 sps:$4 sm:$0xff]  }
  0x15   : > { %1142 = vmatprep.subr.bf16.mxu1 %v6510_v16  ;;  %v6516_v20 = vld [vmem:[%s9668_s3 + $0x44] ss:$16 sps:$4 sm:$0xff]   ;;  %v6495_v21 = vld [vmem:[%s9666_s1 + $0x70] ss:$8 sps:$4 sm:$0xff]   ;;  %v6514_v27 = vld [vmem:[%s9668_s3 + $0x2c] ss:$16 sps:$4 sm:$0xff]  }
  0x16   : > { %v6521_v22 = vld [vmem:[%s9668_s3 + $0x40] ss:$16 sps:$4 sm:$0xff]   ;;  %v6522_v24 = vld [vmem:[%s9668_s3 + $0x64] ss:$16 sps:$4 sm:$0xff]   ;;  %v6506_v26 = vld [vmem:[%s9668_s3 + $0x8] ss:$16 sps:$4 sm:$0xff]  }
  0x17   : > { %514 = vmatpush1.bf16.msra.mxu0 %v6480_v6  ;;  %v6496_v25 = vld [vmem:[%s6791_s29] sm:$0xff]   ;;  %v6512_v30 = vld [vmem:[%s9668_s3 + $0x28] ss:$16 sps:$4 sm:$0xff]   ;;  %v6520_v31 = vld [vmem:[%s9668_s3 + $0x4c] ss:$16 sps:$4 sm:$0xff]  }
  0x18   : > { %515 = vmatprep.subr.bf16.mxu0 %v6481_v7  ;;  %1143 = vmatpush1.bf16.msra.mxu1 %v6515_v19  ;;  %v6527_v28 = vld [vmem:[%s9668_s3 + $0x60] ss:$16 sps:$4 sm:$0xff]   ;;  %v6528_v29 = vld [vmem:[%s9668_s3 + $0x84] ss:$16 sps:$4 sm:$0xff]   ;;  %v6497_v34 = vld [vmem:[%s6791_s29 + $0x8] sm:$0xff]  }
  0x19   : > { %1144 = vmatprep.subr.bf16.mxu1 %v6516_v20  ;;  %v6533_v32 = vld [vmem:[%s9668_s3 + $0x80] ss:$16 sps:$4 sm:$0xff]   ;;  %v6534_v33 = vld [vmem:[%s9668_s3 + $0xa4] ss:$16 sps:$4 sm:$0xff]   ;;  %v6518_v35 = vld [vmem:[%s9668_s3 + $0x48] ss:$16 sps:$4 sm:$0xff]  }
  0x1a   : > { %v6526_v36 = vld [vmem:[%s9668_s3 + $0x6c] ss:$16 sps:$4 sm:$0xff]   ;;  %v6539_v37 = vld [vmem:[%s9668_s3 + $0xa0] ss:$16 sps:$4 sm:$0xff]   ;;  %v6540_v38 = vld [vmem:[%s9668_s3 + $0xc4] ss:$16 sps:$4 sm:$0xff]  }
  0x1b   : > { %516 = vmatpush1.bf16.msra.mxu0 %v6483_v8  ;;  %v6524_v39 = vld [vmem:[%s9668_s3 + $0x68] ss:$16 sps:$4 sm:$0xff]   ;;  %v6532_v40 = vld [vmem:[%s9668_s3 + $0x8c] ss:$16 sps:$4 sm:$0xff]   ;;  %v6545_v41 = vld [vmem:[%s9668_s3 + $0xc0] ss:$16 sps:$4 sm:$0xff]  }
  0x1c   : > { %517 = vmatprep.subr.bf16.mxu0 %v6484_v9  ;;  %1145 = vmatpush1.bf16.msra.mxu1 %v6521_v22  ;;  %v6546_v42 = vld [vmem:[%s9668_s3 + $0xe4] ss:$16 sps:$4 sm:$0xff]   ;;  %v6530_v44 = vld [vmem:[%s9668_s3 + $0x88] ss:$16 sps:$4 sm:$0xff]   ;;  %v6538_v45 = vld [vmem:[%s9668_s3 + $0xac] ss:$16 sps:$4 sm:$0xff]  }
  0x1d   : > { %1146 = vmatprep.subr.bf16.mxu1 %v6522_v24  ;;  %v6498_v43 = vld [vmem:[%s6791_s29 + $0x10] sm:$0xff]   ;;  %v6536_v48 = vld [vmem:[%s9668_s3 + $0xa8] ss:$16 sps:$4 sm:$0xff]   ;;  %v6544_v50 = vld [vmem:[%s9668_s3 + $0xcc] ss:$16 sps:$4 sm:$0xff]  }
  0x1e   : > { %v6551_v46 = vld [vmem:[%s9668_s3 + $0xe0] ss:$16 sps:$4 sm:$0xff]   ;;  %v6552_v47 = vld [vmem:[%s9668_s3 + $0x104] ss:$16 sps:$4 sm:$0xff]   ;;  %v6499_v49 = vld [vmem:[%s6791_s29 + $0x18] sm:$0xff]  }
  0x1f   : > { %518 = vmatpush1.bf16.msra.mxu0 %v6486_v10  ;;  %v6557_v51 = vld [vmem:[%s9668_s3 + $0x100] ss:$16 sps:$4 sm:$0xff]   ;;  %v6542_v52 = vld [vmem:[%s9668_s3 + $0xc8] ss:$16 sps:$4 sm:$0xff]   ;;  %v6558_v53 = vld [vmem:[%s9668_s3 + $0x124] ss:$16 sps:$4 sm:$0xff]  }
  0x20   : > { %519 = vmatprep.subr.bf16.mxu0 %v6487_v11  ;;  %1147 = vmatpush1.bf16.msra.mxu1 %v6527_v28  ;;  %v6550_v54 = vld [vmem:[%s9668_s3 + $0xec] ss:$16 sps:$4 sm:$0xff]   ;;  %v6563_v55 = vld [vmem:[%s9668_s3 + $0x120] ss:$16 sps:$4 sm:$0xff]   ;;  %v6564_v56 = vld [vmem:[%s9668_s3 + $0x144] ss:$16 sps:$4 sm:$0xff]  }
  0x21   : > { %1148 = vmatprep.subr.bf16.mxu1 %v6528_v29  ;;  %v6548_v57 = vld [vmem:[%s9668_s3 + $0xe8] ss:$16 sps:$4 sm:$0xff]   ;;  %v6556_v58 = vld [vmem:[%s9668_s3 + $0x10c] ss:$16 sps:$4 sm:$0xff]   ;;  %v6569_v59 = vld [vmem:[%s9668_s3 + $0x140] ss:$16 sps:$4 sm:$0xff]  }
  0x22   : > { %v6570_v60 = vld [vmem:[%s9668_s3 + $0x164] ss:$16 sps:$4 sm:$0xff]   ;;  %v6554_v62 = vld [vmem:[%s9668_s3 + $0x108] ss:$16 sps:$4 sm:$0xff]   ;;  %v6562_v63 = vld [vmem:[%s9668_s3 + $0x12c] ss:$16 sps:$4 sm:$0xff]  }
  0x23   : > { %520 = vmatpush1.bf16.msra.mxu0 %v6489_v12  ;;  %v6500_v61 = vld [vmem:[%s6791_s29 + $0x20] sm:$0xff]   ;;  %v6560_v3 = vld [vmem:[%s9668_s3 + $0x128] ss:$16 sps:$4 sm:$0xff]   ;;  %v6568_v4 = vld [vmem:[%s9668_s3 + $0x14c] ss:$16 sps:$4 sm:$0xff]  }
  0x24   : > { %521 = vmatprep.subr.bf16.mxu0 %v6490_v14  ;;  %1149 = vmatpush1.bf16.msra.mxu1 %v6533_v32  ;;  %v6575_v0 = vld [vmem:[%s9668_s3 + $0x160] ss:$16 sps:$4 sm:$0xff]   ;;  %v6576_v1 = vld [vmem:[%s9668_s3 + $0x184] ss:$16 sps:$4 sm:$0xff]   ;;  %v6501_v6 = vld [vmem:[%s6791_s29 + $0x28] sm:$0xff]  }
  0x25   : > { %1150 = vmatprep.subr.bf16.mxu1 %v6534_v33  ;;  %v6581_v5 = vld [vmem:[%s9668_s3 + $0x180] ss:$16 sps:$4 sm:$0xff]   ;;  %v6566_v7 = vld [vmem:[%s9668_s3 + $0x148] ss:$16 sps:$4 sm:$0xff]   ;;  %v6574_v8 = vld [vmem:[%s9668_s3 + $0x16c] ss:$16 sps:$4 sm:$0xff]   ;;  %v371_v33 = vlaneseq }
  0x26   : > { %v6572_v9 = vld [vmem:[%s9668_s3 + $0x168] ss:$16 sps:$4 sm:$0xff]   ;;  %v6580_v10 = vld [vmem:[%s9668_s3 + $0x18c] ss:$16 sps:$4 sm:$0xff]   ;;  %v6502_v11 = vld [vmem:[%s6791_s29 + $0x30] sm:$0xff]  }
  0x27   : > { %522 = vmatpush1.bf16.msra.mxu0 %v6492_v17  ;;  %v6578_v12 = vld [vmem:[%s9668_s3 + $0x188] ss:$16 sps:$4 sm:$0xff]   ;;  %v6582_v14 = vld [vmem:[%s9668_s3 + $0x1a4] ss:$16 sps:$4 sm:$0xff]   ;;  %v6586_v15 = vld [vmem:[%s9668_s3 + $0x1ac] ss:$16 sps:$4 sm:$0xff]  }
  0x28   : > { %523 = vmatprep.subr.bf16.mxu0 %v6493_v18  ;;  %1151 = vmatpush1.bf16.msra.mxu1 %v6539_v37  ;;  %v6503_v13 = vld [vmem:[%s6791_s29 + $0x38] sm:$0xff]   ;;  %v6587_v17 = vld [vmem:[%s9668_s3 + $0x1a0] ss:$16 sps:$4 sm:$0xff]  }
  0x29   : > { %1152 = vmatprep.subr.bf16.mxu1 %v6540_v38  ;;  %v6584_v16 = vld [vmem:[%s9668_s3 + $0x1a8] ss:$16 sps:$4 sm:$0xff]   ;;  %v6592_v18 = vld [vmem:[%s9668_s3 + $0x1cc] ss:$16 sps:$4 sm:$0xff]   ;;  %v6593_v20 = vld [vmem:[%s9668_s3 + $0x1c0] ss:$16 sps:$4 sm:$0xff]  }
  0x2a   : > { %v6590_v19 = vld [vmem:[%s9668_s3 + $0x1c8] ss:$16 sps:$4 sm:$0xff]   ;;  %v6598_v22 = vld [vmem:[%s9668_s3 + $0x1ec] ss:$16 sps:$4 sm:$0xff]   ;;  %v6599_v24 = vld [vmem:[%s9668_s3 + $0x1e0] ss:$16 sps:$4 sm:$0xff]  }
  0x2b   : > { %524 = vmatpush1.bf16.msra.mxu0 %v6495_v21  ;;  %v6594_v21 = vld [vmem:[%s9668_s3 + $0x1e4] ss:$16 sps:$4 sm:$0xff]  }
  0x2c   : > { %1253 = vmatprep.subr.bf16.mxu0 %v6508_v23  ;;  %1153 = vmatpush1.bf16.msra.mxu1 %v6545_v41  ;;  %v6596_v23 = vld [vmem:[%s9668_s3 + $0x1e8] ss:$16 sps:$4 sm:$0xff]  }
  0x2d   : > { %1154 = vmatprep.subr.bf16.mxu1 %v6546_v42 }
  0x2e   : > { %542 = vmatmul.mubr.bf16.vlgmr.msra.gmra.mrb[0].mxu0 %v6496_v25  ;;  %v7030_v25 = vld [vmem:[%s9670_s5] sm:$0xff] }
  0x2f   : > { %551 = vmatprep.mubr.bf16.mxu0 %v6704_v2  ;;  %1254 = vmatpush1.bf16.msra.mxu0 %v6506_v26  ;;  %v7035_v26 = vld [vmem:[%s9670_s5 + $0x20] sm:$0xff] }
  0x30   : > { %1255 = vmatprep.subr.bf16.mxu0 %v6514_v27  ;;  %1155 = vmatpush1.bf16.msra.mxu1 %v6551_v46  ;;  %v7040_v27 = vld [vmem:[%s9670_s5 + $0x8] sm:$0xff]  ;;  %v5612_v28 = vcombine.low %v7030_v25, %v7035_v26  ;;  %v5613_v29 = vcombine.high %v7030_v25, %v7035_v26 }
  0x31   : > { %1156 = vmatprep.subr.bf16.mxu1 %v6552_v47  ;;  %v1619_v25 = vld [vmem:[%s9670_s5 + $0xe8] sm:$0xff] }
  0x33   : > { %1256 = vmatpush1.bf16.msra.mxu0 %v6512_v30  ;;  %v7049_v30 = vld [vmem:[%s9670_s5 + $0x28] sm:$0xff] }
  0x34   : > { %1257 = vmatprep.subr.bf16.mxu0 %v6520_v31  ;;  %1157 = vmatpush1.bf16.msra.mxu1 %v6557_v51  ;;  %v5614_v31 = vcombine.low %v7040_v27, %v7049_v30  ;;  %v5615_v32 = vcombine.high %v7040_v27, %v7049_v30 }
  0x35   : > { %1158 = vmatprep.subr.bf16.mxu1 %v6558_v53 }
  0x36   : > { %552 = vmatmul.mubr.bf16.gmra.mrb[4].mxu0 %v6497_v34  ;;  %v7055_v34 = vshrl.u32 %v371_v33, 7 }
  0x37   : > { %561 = vmatprep.mubr.bf16.mxu0 %v6704_v2  ;;  %1258 = vmatpush1.bf16.msra.mxu0 %v6518_v35 }
  0x38   : > { %1259 = vmatprep.subr.bf16.mxu0 %v6526_v36  ;;  %1159 = vmatpush1.bf16.msra.mxu1 %v6563_v55  ;;  %9735 = vst [vmem:[#allocation2_spill] sm:$0xff] %v7055_v34  ;;  %v7058_v35 = vsub.s32 0, %v7055_v34  ;;  %v369_v36 = vld [vmem:[%s9667_s2] sm:$0x3]  ;;  %v7064_v37 = vsub.s32 1, %v7055_v34 }
  0x39   : > { %1160 = vmatprep.subr.bf16.mxu1 %v6564_v56  ;;  %v1602_v55 = vld [vmem:[%s9670_s5 + $0x60] sm:$0xff]  ;;  %v1599_v56 = vld [vmem:[%s9670_s5 + $0x48] sm:$0xff] }
  0x3a   : > { %9736 = vst [vmem:[#allocation3_spill] sm:$0xff] %v7058_v35  ;;  %9737 = vst [vmem:[#allocation4_spill] sm:$0xff] %v7064_v37  ;;  %v7067_v38 = vrot.slane %v369_v36, %v7058_v35 }
  0x3b   : > { %1260 = vmatpush1.bf16.msra.mxu0 %v6524_v39  ;;  %v7070_v39 = vrot.slane %v369_v36, %v7064_v37 }
  0x3c   : > { %1261 = vmatprep.subr.bf16.mxu0 %v6532_v40  ;;  %1161 = vmatpush1.bf16.msra.mxu1 %v6569_v59 }
  0x3d   : > { %1162 = vmatprep.subr.bf16.mxu1 %v6570_v60 }
  0x3e   : > { %562 = vmatmul.mubr.bf16.gmra.mrb[8].mxu0 %v6498_v43 }
  0x3f   : > { %571 = vmatprep.mubr.bf16.mxu0 %v6704_v2  ;;  %1262 = vmatpush1.bf16.msra.mxu0 %v6530_v44 }
  0x40   : > { %1263 = vmatprep.subr.bf16.mxu0 %v6538_v45  ;;  %1163 = vmatpush1.bf16.msra.mxu1 %v6575_v0 }
  0x41   : > { %1164 = vmatprep.subr.bf16.mxu1 %v6576_v1 }
  0x43   : > { %1264 = vmatpush1.bf16.msra.mxu0 %v6536_v48 }
  0x44   : > { %1265 = vmatprep.subr.bf16.mxu0 %v6544_v50  ;;  %1165 = vmatpush1.bf16.msra.mxu1 %v6581_v5 }
  0x45   : > { %1166 = vmatprep.subr.bf16.mxu1 %v6582_v14 }
  0x46   : > { %572 = vmatmul.mubr.bf16.gmra.mrb[12].mxu0 %v6499_v49 }
  0x47   : > { %581 = vmatprep.mubr.bf16.mxu0 %v6704_v2  ;;  %1266 = vmatpush1.bf16.msra.mxu0 %v6542_v52  ;;  %v1598_v52 = vld [vmem:[%s9670_s5 + $0x40] sm:$0xff] }
  0x48   : > { %1267 = vmatprep.subr.bf16.mxu0 %v6550_v54  ;;  %1167 = vmatpush1.bf16.msra.mxu1 %v6587_v17 }
  0x4b   : > { %1268 = vmatpush1.bf16.msra.mxu0 %v6548_v57  ;;  %v1603_v57 = vld [vmem:[%s9670_s5 + $0x68] sm:$0xff] }
  0x4c   : > { %1269 = vmatprep.subr.bf16.mxu0 %v6556_v58  ;;  %v5623_v5 = vcombine.high %v1599_v56, %v1603_v57  ;;  %v5622_v17 = vcombine.low %v1599_v56, %v1603_v57 }
  0x4e   : > { %582 = vmatmul.mubr.bf16.gmra.mrb[16].mxu0 %v6500_v61 }
  0x4f   : > { %591 = vmatprep.mubr.bf16.mxu0 %v6704_v2  ;;  %1270 = vmatpush1.bf16.msra.mxu0 %v6554_v62 }
  0x50   : > { %1271 = vmatprep.subr.bf16.mxu0 %v6562_v63 }
  0x53   : > { %1272 = vmatpush1.bf16.msra.mxu0 %v6560_v3 }
  0x54   : > { %1273 = vmatprep.subr.bf16.mxu0 %v6568_v4  ;;  %v5621_v4 = vcombine.high %v1598_v52, %v1602_v55 }
  0x56   : > { %592 = vmatmul.mubr.bf16.gmra.mrb[20].mxu0 %v6501_v6  ;;  %v7093_v6 = vld [vmem:[%s9670_s5 + $0x80] sm:$0xff] }
  0x57   : > { %601 = vmatprep.mubr.bf16.mxu0 %v6704_v2  ;;  %1274 = vmatpush1.bf16.msra.mxu0 %v6566_v7 }
  0x58   : > { %1275 = vmatprep.subr.bf16.mxu0 %v6574_v8 }
  0x5b   : > { %1276 = vmatpush1.bf16.msra.mxu0 %v6572_v9 }
  0x5c   : > { %1277 = vmatprep.subr.bf16.mxu0 %v6580_v10  ;;  %v1610_v10 = vld [vmem:[%s9670_s5 + $0xa0] sm:$0xff] }
  0x5d   : > { %v5628_v30 = vcombine.low %v7093_v6, %v1610_v10 }
  0x5e   : > { %602 = vmatmul.mubr.bf16.gmra.mrb[24].mxu0 %v6502_v11  ;;  %v1607_v11 = vld [vmem:[%s9670_s5 + $0x88] sm:$0xff] }
  0x5f   : > { %611 = vmatprep.mubr.bf16.mxu0 %v6704_v2  ;;  %1278 = vmatpush1.bf16.msra.mxu0 %v6578_v12  ;;  %v6588_v2 = vld [vmem:[%s9668_s3 + $0x1c4] ss:$16 sps:$4 sm:$0xff]   ;;  %v1611_v12 = vld [vmem:[%s9670_s5 + $0xa8] sm:$0xff] }
  0x60   : > { %1279 = vmatprep.subr.bf16.mxu0 %v6586_v15  ;;  %1168 = vmatprep.subr.bf16.mxu1 %v6588_v2  ;;  %v5620_v15 = vcombine.low %v1598_v52, %v1602_v55  ;;  %v5630_v36 = vcombine.low %v1607_v11, %v1611_v12 }
  0x61   : > { %1169 = vmatpush1.bf16.msra.mxu1 %v6593_v20  ;;  %v7113_v20 = vld [vmem:[%s9670_s5 + $0xc0] sm:$0xff] }
  0x62   : > { %1170 = vmatprep.subr.bf16.mxu1 %v6594_v21 }
  0x63   : > { %1280 = vmatpush1.bf16.msra.mxu0 %v6584_v16 }
  0x64   : > { %1281 = vmatprep.subr.bf16.mxu0 %v6592_v18  ;;  %v5629_v18 = vcombine.high %v7093_v6, %v1610_v10 }
  0x65   : > { %1171 = vmatpush1.bf16.msra.mxu1 %v6599_v24  ;;  %v1615_v24 = vld [vmem:[%s9670_s5 + $0xc8] sm:$0xff] }
  0x66   : > { %612 = vmatmul.mubr.bf16.gmra.mrb[28].mxu0 %v6503_v13  ;;  %3168 = vmatprep.subr.bf16.mxu1 %v5613_v29  ;;  %v5638_v55 = vcombine.low %v1615_v24, %v1619_v25 }
  0x67   : > { %1282 = vmatpush1.bf16.msra.mxu0 %v6590_v19  ;;  %v5631_v19 = vcombine.high %v1607_v11, %v1611_v12 }
  0x68   : > { %1283 = vmatprep.subr.bf16.mxu0 %v6598_v22 }
  0x6b   : > { %1284 = vmatpush1.bf16.msra.mxu0 %v6596_v23  ;;  %v1618_v23 = vld [vmem:[%s9670_s5 + $0xe0] sm:$0xff] }
  0x6c   : > { %3394 = vmatprep.subr.bf16.mxu0 %v5615_v32 }
 0x101   : > { %v543_v40 = vpop.f32.mrb[0].mxu0 }
 0x102   : > { %v544_v41 = vadd.f32 %v543_v40, %v7067_v38  ;;  %v545_v42 = vpop.f32.mrb[1].mxu0 }
 0x103   : > { %v546_v43 = vadd.f32 %v545_v42, %v7070_v39  ;;  %v547_v44 = vpop.f32.mrb[2].mxu0  ;;  %v5637_v42 = vcombine.high %v7113_v20, %v1618_v23 }
 0x104   : > { %v654_v45 = vmul.f32 0.01, %v544_v41  ;;  %v548_v46 = vadd.f32 %v547_v44, %v7067_v38  ;;  %v549_v47 = vpop.f32.mrb[3].mxu0  ;;  %vm622_vm0 = vcmp.ge.f32.partialorder %v544_v41, 0.0  ;;  %v7133_v44 = vld [vmem:[%s9670_s5 + $0x100] sm:$0xff] }
 0x105   : > { %v655_v48 = vmul.f32 0.01, %v546_v43  ;;  %v550_v49 = vadd.f32 %v549_v47, %v7070_v39  ;;  %vm623_vm2 = vcmp.ge.f32.partialorder %v546_v43, 0.0 }
 0x106   : > { %vm624_vm1 = vcmp.ge.f32.partialorder %v548_v46, 0.0  ;;  %v656_v50 = vmul.f32 0.01, %v548_v46  ;;  %v686_v53 = vsel %vm622_vm0, %v544_v41, %v654_v45 }
 0x107   : > { %v657_v51 = vmul.f32 0.01, %v550_v49  ;;  %vm625_vm3 = vcmp.ge.f32.partialorder %v550_v49, 0.0  ;;  %v687_v59 = vsel %vm623_vm2, %v546_v43, %v655_v48  ;;  %v5639_v43 = vcombine.high %v1615_v24, %v1619_v25  ;;  %v1626_v48 = vld [vmem:[%s9670_s5 + $0x120] sm:$0xff] }
 0x108   : > { %v688_v54 = vsel %vm624_vm1, %v548_v46, %v656_v50  ;;  %v1627_v50 = vld [vmem:[%s9670_s5 + $0x128] sm:$0xff]  ;;  %v5645_v57 = vcombine.high %v7133_v44, %v1626_v48  ;;  %v5644_v6 = vcombine.low %v7133_v44, %v1626_v48 }
 0x109   : > { %v553_v58 = vpop.f32.mrb[4].mxu0  ;;  %v689_v60 = vsel %vm625_vm3, %v550_v49, %v657_v51  ;;  %v718_v61 = vpack.c.bf16 %v688_v54, %v686_v53  ;;  %v1623_v49 = vld [vmem:[%s9670_s5 + $0x108] sm:$0xff]  ;;  %v5636_v53 = vcombine.low %v7113_v20, %v1618_v23 }
 0x10a   : > { %v554_v62 = vadd.f32 %v553_v58, %v7067_v38  ;;  %v555_v63 = vpop.f32.mrb[5].mxu0  ;;  %v719_v0 = vpack.c.bf16 %v689_v60, %v687_v59  ;;  %v5647_v58 = vcombine.high %v1623_v49, %v1627_v50  ;;  %v7151_v59 = vld [vmem:[%s9670_s5 + $0x140] sm:$0xff]  ;;  %v5646_v10 = vcombine.low %v1623_v49, %v1627_v50  ;;  %v1643_v20 = vld [vmem:[%s9670_s5 + $0x1a8] sm:$0xff] }
 0x10b   : > { %v556_v1 = vadd.f32 %v555_v63, %v7070_v39  ;;  %v557_v3 = vpop.f32.mrb[6].mxu0  ;;  %v1631_v63 = vld [vmem:[%s9670_s5 + $0x148] sm:$0xff] }
 0x10c   : > { %v658_v7 = vmul.f32 0.01, %v554_v62  ;;  %v558_v8 = vadd.f32 %v557_v3, %v7067_v38  ;;  %v559_v9 = vpop.f32.mrb[7].mxu0  ;;  %1172 = vmatprep.mubr.bf16.mxu1 %v719_v0  ;;  %1285 = vmatprep.mubr.bf16.mxu0 %v719_v0  ;;  %vm626_vm4 = vcmp.ge.f32.partialorder %v554_v62, 0.0  ;;  %v1635_v0 = vld [vmem:[%s9670_s5 + $0x168] sm:$0xff] }
 0x10d   : > { %v659_v13 = vmul.f32 0.01, %v556_v1  ;;  %v560_v14 = vadd.f32 %v559_v9, %v7070_v39  ;;  %1173 = vmatmul.mubr.bf16.vlgmr.msra.gmra.mrb[0].mxu1 %v718_v61  ;;  %1286 = vmatmul.mubr.bf16.vlgmr.msra.gmra.mrb[32].mxu0 %v718_v61  ;;  %vm627_vm5 = vcmp.ge.f32.partialorder %v556_v1, 0.0  ;;  %v5654_v25 = vcombine.low %v1631_v63, %v1635_v0 }
 0x10e   : > { %vm628_vm6 = vcmp.ge.f32.partialorder %v558_v8, 0.0  ;;  %v660_v16 = vmul.f32 0.01, %v558_v8  ;;  %3169 = vmatpush1.bf16.msra.mxu1 %v5612_v28  ;;  %3395 = vmatpush1.bf16.msra.mxu0 %v5614_v31  ;;  %v690_v21 = vsel %vm626_vm4, %v554_v62, %v658_v7  ;;  %v1634_v62 = vld [vmem:[%s9670_s5 + $0x160] sm:$0xff] }
 0x10f   : > { %vm629_vm7 = vcmp.ge.f32.partialorder %v560_v14, 0.0  ;;  %v661_v2 = vmul.f32 0.01, %v560_v14  ;;  %3170 = vmatprep.subr.bf16.mxu1 %v5621_v4  ;;  %3396 = vmatprep.subr.bf16.mxu0 %v5623_v5  ;;  %v691_v27 = vsel %vm627_vm5, %v556_v1, %v659_v13  ;;  %v5653_v13 = vcombine.high %v7151_v59, %v1634_v62 }
 0x110   : > { %v692_v22 = vsel %vm628_vm6, %v558_v8, %v660_v16  ;;  %v5652_v23 = vcombine.low %v7151_v59, %v1634_v62  ;;  %v1659_v59 = vld [vmem:[%s9670_s5 + $0x228] sm:$0xff] }
 0x111   : > { %v563_v26 = vpop.f32.mrb[8].mxu0  ;;  %v693_v28 = vsel %vm629_vm7, %v560_v14, %v661_v2  ;;  %v720_v29 = vpack.c.bf16 %v692_v22, %v690_v21  ;;  %v5655_v14 = vcombine.high %v1631_v63, %v1635_v0 }
 0x112   : > { %v564_v31 = vadd.f32 %v563_v26, %v7067_v38  ;;  %v565_v32 = vpop.f32.mrb[9].mxu0  ;;  %v721_v33 = vpack.c.bf16 %v693_v28, %v691_v27  ;;  %3171 = vmatpush1.bf16.msra.mxu1 %v5620_v15  ;;  %3397 = vmatpush1.bf16.msra.mxu0 %v5622_v17  ;;  %v7171_v15 = vld [vmem:[%s9670_s5 + $0x180] sm:$0xff] }
 0x113   : > { %v566_v40 = vadd.f32 %v565_v32, %v7070_v39  ;;  %v567_v41 = vpop.f32.mrb[10].mxu0  ;;  %3172 = vmatprep.subr.bf16.mxu1 %v5629_v18  ;;  %3398 = vmatprep.subr.bf16.mxu0 %v5631_v19  ;;  %v1642_v18 = vld [vmem:[%s9670_s5 + $0x1a0] sm:$0xff]  ;;  %v1639_v19 = vld [vmem:[%s9670_s5 + $0x188] sm:$0xff] }
 0x114   : > { %v662_v45 = vmul.f32 0.01, %v564_v31  ;;  %v568_v46 = vadd.f32 %v567_v41, %v7067_v38  ;;  %v569_v47 = vpop.f32.mrb[11].mxu0  ;;  %1182 = vmatprep.mubr.bf16.mxu1 %v721_v33  ;;  %1295 = vmatprep.mubr.bf16.mxu0 %v721_v33  ;;  %vm630_vm8 = vcmp.ge.f32.partialorder %v564_v31, 0.0  ;;  %v5661_v27 = vcombine.high %v7171_v15, %v1642_v18  ;;  %v1650_v32 = vld [vmem:[%s9670_s5 + $0x1e0] sm:$0xff]  ;;  %v1647_v33 = vld [vmem:[%s9670_s5 + $0x1c8] sm:$0xff] }
 0x115   : > { %v663_v51 = vmul.f32 0.01, %v566_v40  ;;  %v570_v52 = vadd.f32 %v569_v47, %v7070_v39  ;;  %1183 = vmatmul.mubr.bf16.gmra.mrb[4].mxu1 %v720_v29  ;;  %1296 = vmatmul.mubr.bf16.gmra.mrb[36].mxu0 %v720_v29  ;;  %vm631_vm9 = vcmp.ge.f32.partialorder %v566_v40, 0.0  ;;  %v5663_v28 = vcombine.high %v1639_v19, %v1643_v20  ;;  %v7189_v29 = vld [vmem:[%s9670_s5 + $0x1c0] sm:$0xff] }
 0x116   : > { %vm632_vm10 = vcmp.ge.f32.partialorder %v568_v46, 0.0  ;;  %v664_v54 = vmul.f32 0.01, %v568_v46  ;;  %3173 = vmatpush1.bf16.msra.mxu1 %v5628_v30  ;;  %3399 = vmatpush1.bf16.msra.mxu0 %v5630_v36  ;;  %v694_v60 = vsel %vm630_vm8, %v564_v31, %v662_v45  ;;  %v1651_v36 = vld [vmem:[%s9670_s5 + $0x1e8] sm:$0xff]  ;;  %v5660_v44 = vcombine.low %v7171_v15, %v1642_v18 }
 0x117   : > { %vm633_vm11 = vcmp.ge.f32.partialorder %v570_v52, 0.0  ;;  %v665_v56 = vmul.f32 0.01, %v570_v52  ;;  %3174 = vmatprep.subr.bf16.mxu1 %v5637_v42  ;;  %3400 = vmatprep.subr.bf16.mxu0 %v5639_v43  ;;  %v695_v3 = vsel %vm631_vm9, %v566_v40, %v663_v51  ;;  %v5662_v48 = vcombine.low %v1639_v19, %v1643_v20 }
 0x118   : > { %v696_v61 = vsel %vm632_vm10, %v568_v46, %v664_v54  ;;  %v5669_v51 = vcombine.high %v7189_v29, %v1650_v32  ;;  %v5668_v62 = vcombine.low %v7189_v29, %v1650_v32  ;;  %v5670_v0 = vcombine.low %v1647_v33, %v1651_v36  ;;  %v1675_v29 = vld [vmem:[%s9670_s5 + $0x2a8] sm:$0xff] }
 0x119   : > { %v573_v1 = vpop.f32.mrb[12].mxu0  ;;  %v697_v4 = vsel %vm633_vm11, %v570_v52, %v665_v56  ;;  %v722_v5 = vpack.c.bf16 %v696_v61, %v694_v60  ;;  %v5671_v52 = vcombine.high %v1647_v33, %v1651_v36 }
 0x11a   : > { %v574_v7 = vadd.f32 %v573_v1, %v7067_v38  ;;  %v575_v8 = vpop.f32.mrb[13].mxu0  ;;  %v723_v9 = vpack.c.bf16 %v697_v4, %v695_v3  ;;  %3175 = vmatpush1.bf16.msra.mxu1 %v5636_v53  ;;  %3401 = vmatpush1.bf16.msra.mxu0 %v5638_v55  ;;  %v7209_v53 = vld [vmem:[%s9670_s5 + $0x200] sm:$0xff] }
 0x11b   : > { %v576_v11 = vadd.f32 %v575_v8, %v7070_v39  ;;  %v577_v12 = vpop.f32.mrb[14].mxu0  ;;  %3176 = vmatprep.subr.bf16.mxu1 %v5645_v57  ;;  %3402 = vmatprep.subr.bf16.mxu0 %v5647_v58  ;;  %v1658_v57 = vld [vmem:[%s9670_s5 + $0x220] sm:$0xff]  ;;  %v1655_v58 = vld [vmem:[%s9670_s5 + $0x208] sm:$0xff] }
 0x11c   : > { %v666_v16 = vmul.f32 0.01, %v574_v7  ;;  %v578_v17 = vadd.f32 %v577_v12, %v7067_v38  ;;  %v579_v2 = vpop.f32.mrb[15].mxu0  ;;  %1192 = vmatprep.mubr.bf16.mxu1 %v723_v9  ;;  %1305 = vmatprep.mubr.bf16.mxu0 %v723_v9  ;;  %vm634_vm12 = vcmp.ge.f32.partialorder %v574_v7, 0.0  ;;  %v5677_v3 = vcombine.high %v7209_v53, %v1658_v57  ;;  %v1666_v8 = vld [vmem:[%s9670_s5 + $0x260] sm:$0xff]  ;;  %v1663_v9 = vld [vmem:[%s9670_s5 + $0x248] sm:$0xff] }
 0x11d   : > { %v667_v21 = vmul.f32 0.01, %v576_v11  ;;  %v580_v22 = vadd.f32 %v579_v2, %v7070_v39  ;;  %1193 = vmatmul.mubr.bf16.gmra.mrb[8].mxu1 %v722_v5  ;;  %1306 = vmatmul.mubr.bf16.gmra.mrb[40].mxu0 %v722_v5  ;;  %vm635_vm13 = vcmp.ge.f32.partialorder %v576_v11, 0.0  ;;  %v5679_v4 = vcombine.high %v1655_v58, %v1659_v59  ;;  %v7227_v5 = vld [vmem:[%s9670_s5 + $0x240] sm:$0xff] }
 0x11e   : > { %vm636_vm14 = vcmp.ge.f32.partialorder %v578_v17, 0.0  ;;  %v668_v24 = vmul.f32 0.01, %v578_v17  ;;  %3177 = vmatpush1.bf16.msra.mxu1 %v5644_v6  ;;  %3403 = vmatpush1.bf16.msra.mxu0 %v5646_v10  ;;  %v698_v30 = vsel %vm634_vm12, %v574_v7, %v666_v16  ;;  %v1667_v10 = vld [vmem:[%s9670_s5 + $0x268] sm:$0xff]  ;;  %v5676_v15 = vcombine.low %v7209_v53, %v1658_v57 }
 0x11f   : > { %vm637_vm15 = vcmp.ge.f32.partialorder %v580_v22, 0.0  ;;  %v669_v26 = vmul.f32 0.01, %v580_v22  ;;  %3178 = vmatprep.subr.bf16.mxu1 %v5653_v13  ;;  %3404 = vmatprep.subr.bf16.mxu0 %v5655_v14  ;;  %v699_v41 = vsel %vm635_vm13, %v576_v11, %v667_v21  ;;  %v5678_v18 = vcombine.low %v1655_v58, %v1659_v59 }
 0x120   : > { %v700_v31 = vsel %vm636_vm14, %v578_v17, %v668_v24  ;;  %v5685_v21 = vcombine.high %v7227_v5, %v1666_v8  ;;  %v5684_v32 = vcombine.low %v7227_v5, %v1666_v8  ;;  %v5686_v36 = vcombine.low %v1663_v9, %v1667_v10  ;;  %v1691_v5 = vld [vmem:[%s9670_s5 + $0x328] sm:$0xff] }
 0x121   : > { %v583_v40 = vpop.f32.mrb[16].mxu0  ;;  %v701_v42 = vsel %vm637_vm15, %v580_v22, %v669_v26  ;;  %v724_v43 = vpack.c.bf16 %v700_v31, %v698_v30  ;;  %v5687_v22 = vcombine.high %v1663_v9, %v1667_v10 }
 0x122   : > { %v584_v45 = vadd.f32 %v583_v40, %v7067_v38  ;;  %v585_v46 = vpop.f32.mrb[17].mxu0  ;;  %v725_v47 = vpack.c.bf16 %v701_v42, %v699_v41  ;;  %3179 = vmatpush1.bf16.msra.mxu1 %v5652_v23  ;;  %3405 = vmatpush1.bf16.msra.mxu0 %v5654_v25  ;;  %v7247_v23 = vld [vmem:[%s9670_s5 + $0x280] sm:$0xff] }
 0x123   : > { %v586_v49 = vadd.f32 %v585_v46, %v7070_v39  ;;  %v587_v50 = vpop.f32.mrb[18].mxu0  ;;  %3180 = vmatprep.subr.bf16.mxu1 %v5661_v27  ;;  %3406 = vmatprep.subr.bf16.mxu0 %v5663_v28  ;;  %v1674_v27 = vld [vmem:[%s9670_s5 + $0x2a0] sm:$0xff]  ;;  %v1671_v28 = vld [vmem:[%s9670_s5 + $0x288] sm:$0xff] }
 0x124   : > { %v670_v54 = vmul.f32 0.01, %v584_v45  ;;  %v588_v55 = vadd.f32 %v587_v50, %v7067_v38  ;;  %v589_v56 = vpop.f32.mrb[19].mxu0  ;;  %1202 = vmatprep.mubr.bf16.mxu1 %v725_v47  ;;  %1315 = vmatprep.mubr.bf16.mxu0 %v725_v47  ;;  %vm638_vm0 = vcmp.ge.f32.partialorder %v584_v45, 0.0  ;;  %v5693_v41 = vcombine.high %v7247_v23, %v1674_v27  ;;  %v1682_v46 = vld [vmem:[%s9670_s5 + $0x2e0] sm:$0xff]  ;;  %v1679_v47 = vld [vmem:[%s9670_s5 + $0x2c8] sm:$0xff] }
 0x125   : > { %v671_v60 = vmul.f32 0.01, %v586_v49  ;;  %v590_v61 = vadd.f32 %v589_v56, %v7070_v39  ;;  %1203 = vmatmul.mubr.bf16.gmra.mrb[12].mxu1 %v724_v43  ;;  %1316 = vmatmul.mubr.bf16.gmra.mrb[44].mxu0 %v724_v43  ;;  %vm639_vm1 = vcmp.ge.f32.partialorder %v586_v49, 0.0  ;;  %v5695_v42 = vcombine.high %v1671_v28, %v1675_v29  ;;  %v1678_v43 = vld [vmem:[%s9670_s5 + $0x2c0] sm:$0xff] }
 0x126   : > { %vm640_vm2 = vcmp.ge.f32.partialorder %v588_v55, 0.0  ;;  %v672_v63 = vmul.f32 0.01, %v588_v55  ;;  %3181 = vmatpush1.bf16.msra.mxu1 %v5660_v44  ;;  %3407 = vmatpush1.bf16.msra.mxu0 %v5662_v48  ;;  %v702_v6 = vsel %vm638_vm0, %v584_v45, %v670_v54  ;;  %v1683_v48 = vld [vmem:[%s9670_s5 + $0x2e8] sm:$0xff]  ;;  %v5692_v53 = vcombine.low %v7247_v23, %v1674_v27 }
 0x127   : > { %vm641_vm3 = vcmp.ge.f32.partialorder %v590_v61, 0.0  ;;  %v673_v1 = vmul.f32 0.01, %v590_v61  ;;  %3182 = vmatprep.subr.bf16.mxu1 %v5669_v51  ;;  %3408 = vmatprep.subr.bf16.mxu0 %v5671_v52  ;;  %v703_v12 = vsel %vm639_vm1, %v586_v49, %v671_v60  ;;  %v5694_v57 = vcombine.low %v1671_v28, %v1675_v29 }
 0x128   : > { %v704_v7 = vsel %vm640_vm2, %v588_v55, %v672_v63  ;;  %v5701_v60 = vcombine.high %v1678_v43, %v1682_v46  ;;  %v5700_v8 = vcombine.low %v1678_v43, %v1682_v46  ;;  %v5702_v10 = vcombine.low %v1679_v47, %v1683_v48 }
 0x129   : > { %v593_v11 = vpop.f32.mrb[20].mxu0  ;;  %v705_v13 = vsel %vm641_vm3, %v590_v61, %v673_v1  ;;  %v726_v14 = vpack.c.bf16 %v704_v7, %v702_v6  ;;  %v5703_v61 = vcombine.high %v1679_v47, %v1683_v48  ;;  %v1699_v47 = vld [vmem:[%s9670_s5 + $0x368] sm:$0xff] }
 0x12a   : > { %v594_v16 = vadd.f32 %v593_v11, %v7067_v38  ;;  %v595_v17 = vpop.f32.mrb[21].mxu0  ;;  %v727_v2 = vpack.c.bf16 %v705_v13, %v703_v12  ;;  %3183 = vmatpush1.bf16.msra.mxu1 %v5668_v62  ;;  %3409 = vmatpush1.bf16.msra.mxu0 %v5670_v0  ;;  %v1686_v62 = vld [vmem:[%s9670_s5 + $0x300] sm:$0xff] }
 0x12b   : > { %v596_v19 = vadd.f32 %v595_v17, %v7070_v39  ;;  %v597_v20 = vpop.f32.mrb[22].mxu0  ;;  %3184 = vmatprep.subr.bf16.mxu1 %v5677_v3  ;;  %3410 = vmatprep.subr.bf16.mxu0 %v5679_v4  ;;  %v1690_v3 = vld [vmem:[%s9670_s5 + $0x320] sm:$0xff]  ;;  %v1687_v4 = vld [vmem:[%s9670_s5 + $0x308] sm:$0xff] }
 0x12c   : > { %v674_v24 = vmul.f32 0.01, %v594_v16  ;;  %v598_v25 = vadd.f32 %v597_v20, %v7067_v38  ;;  %v599_v26 = vpop.f32.mrb[23].mxu0  ;;  %1212 = vmatprep.mubr.bf16.mxu1 %v727_v2  ;;  %1325 = vmatprep.mubr.bf16.mxu0 %v727_v2  ;;  %vm642_vm4 = vcmp.ge.f32.partialorder %v594_v16, 0.0  ;;  %v5709_v12 = vcombine.high %v1686_v62, %v1690_v3  ;;  %v1698_v17 = vld [vmem:[%s9670_s5 + $0x360] sm:$0xff] }
 0x12d   : > { %v675_v30 = vmul.f32 0.01, %v596_v19  ;;  %v600_v31 = vadd.f32 %v599_v26, %v7070_v39  ;;  %1213 = vmatmul.mubr.bf16.gmra.mrb[16].mxu1 %v726_v14  ;;  %1326 = vmatmul.mubr.bf16.gmra.mrb[48].mxu0 %v726_v14  ;;  %vm643_vm5 = vcmp.ge.f32.partialorder %v596_v19, 0.0  ;;  %v5711_v13 = vcombine.high %v1687_v4, %v1691_v5 }
 0x12e   : > { %vm644_vm6 = vcmp.ge.f32.partialorder %v598_v25, 0.0  ;;  %v676_v33 = vmul.f32 0.01, %v598_v25  ;;  %3185 = vmatpush1.bf16.msra.mxu1 %v5676_v15  ;;  %3411 = vmatpush1.bf16.msra.mxu0 %v5678_v18  ;;  %v706_v44 = vsel %vm642_vm4, %v594_v16, %v674_v24  ;;  %v1694_v16 = vld [vmem:[%s9670_s5 + $0x340] sm:$0xff] }
 0x12f   : > { %vm645_vm7 = vcmp.ge.f32.partialorder %v600_v31, 0.0  ;;  %v677_v40 = vmul.f32 0.01, %v600_v31  ;;  %3186 = vmatprep.subr.bf16.mxu1 %v5685_v21  ;;  %3412 = vmatprep.subr.bf16.mxu0 %v5687_v22  ;;  %v707_v50 = vsel %vm643_vm5, %v596_v19, %v675_v30  ;;  %v5708_v21 = vcombine.low %v1686_v62, %v1690_v3  ;;  %v1715_v62 = vld [vmem:[%s9670_s5 + $0x3e8] sm:$0xff]  ;;  %v7338_v3 = vld [vmem:[%s9670_s5 + $0x400] sm:$0xff] }
 0x130   : > { %v708_v45 = vsel %vm644_vm6, %v598_v25, %v676_v33  ;;  %v5710_v25 = vcombine.low %v1687_v4, %v1691_v5  ;;  %v5717_v28 = vcombine.high %v1694_v16, %v1698_v17  ;;  %v7343_v4 = vld [vmem:[%s9670_s5 + $0x420] sm:$0xff]  ;;  %v7348_v5 = vld [vmem:[%s9670_s5 + $0x408] sm:$0xff] }
 0x131   : > { %v603_v49 = vpop.f32.mrb[24].mxu0  ;;  %v709_v51 = vsel %vm645_vm7, %v600_v31, %v677_v40  ;;  %v728_v52 = vpack.c.bf16 %v708_v45, %v706_v44  ;;  %v5716_v40 = vcombine.low %v1694_v16, %v1698_v17  ;;  %v7385_v16 = vld [vmem:[%s9670_s5 + $0x468] sm:$0xff]  ;;  %v9675_v17 = vsub.s32 3, %v7055_v34 }
 0x132   : > { %v604_v54 = vadd.f32 %v603_v49, %v7067_v38  ;;  %v605_v55 = vpop.f32.mrb[25].mxu0  ;;  %v729_v56 = vpack.c.bf16 %v709_v51, %v707_v50  ;;  %3187 = vmatpush1.bf16.msra.mxu1 %v5684_v32  ;;  %3413 = vmatpush1.bf16.msra.mxu0 %v5686_v36  ;;  %v1702_v50 = vld [vmem:[%s9670_s5 + $0x380] sm:$0xff] }
 0x133   : > { %v606_v58 = vadd.f32 %v605_v55, %v7070_v39  ;;  %v607_v59 = vpop.f32.mrb[26].mxu0  ;;  %3188 = vmatprep.subr.bf16.mxu1 %v5693_v41  ;;  %3414 = vmatprep.subr.bf16.mxu0 %v5695_v42  ;;  %v1706_v51 = vld [vmem:[%s9670_s5 + $0x3a0] sm:$0xff] }
 0x134   : > { %v678_v63 = vmul.f32 0.01, %v604_v54  ;;  %v608_v0 = vadd.f32 %v607_v59, %v7067_v38  ;;  %v609_v1 = vpop.f32.mrb[27].mxu0  ;;  %1222 = vmatprep.mubr.bf16.mxu1 %v729_v56  ;;  %1335 = vmatprep.mubr.bf16.mxu0 %v729_v56  ;;  %vm646_vm8 = vcmp.ge.f32.partialorder %v604_v54, 0.0  ;;  %v5724_v55 = vcombine.low %v1702_v50, %v1706_v51  ;;  %v1714_v59 = vld [vmem:[%s9670_s5 + $0x3e0] sm:$0xff] }
 0x135   : > { %v679_v6 = vmul.f32 0.01, %v606_v58  ;;  %v610_v7 = vadd.f32 %v609_v1, %v7070_v39  ;;  %1223 = vmatmul.mubr.bf16.gmra.mrb[20].mxu1 %v728_v52  ;;  %1336 = vmatmul.mubr.bf16.gmra.mrb[52].mxu0 %v728_v52  ;;  %vm647_vm9 = vcmp.ge.f32.partialorder %v606_v58, 0.0  ;;  %v1703_v52 = vld [vmem:[%s9670_s5 + $0x388] sm:$0xff] }
 0x136   : > { %vm648_vm10 = vcmp.ge.f32.partialorder %v608_v0, 0.0  ;;  %v680_v9 = vmul.f32 0.01, %v608_v0  ;;  %3189 = vmatpush1.bf16.msra.mxu1 %v5692_v53  ;;  %3415 = vmatpush1.bf16.msra.mxu0 %v5694_v57  ;;  %v710_v14 = vsel %vm646_vm8, %v604_v54, %v678_v63  ;;  %v5725_v53 = vcombine.high %v1702_v50, %v1706_v51  ;;  %v1707_v54 = vld [vmem:[%s9670_s5 + $0x3a8] sm:$0xff]  ;;  %v7519_v51 = vld [vmem:[%s9670_s5 + $0x5c0] sm:$0xff] }
 0x137   : > { %vm649_vm11 = vcmp.ge.f32.partialorder %v610_v7, 0.0  ;;  %v681_v11 = vmul.f32 0.01, %v610_v7  ;;  %3190 = vmatprep.subr.bf16.mxu1 %v5701_v60  ;;  %3416 = vmatprep.subr.bf16.mxu0 %v5703_v61  ;;  %v711_v18 = vsel %vm647_vm9, %v606_v58, %v679_v6  ;;  %v5726_v56 = vcombine.low %v1703_v52, %v1707_v54  ;;  %v1710_v58 = vld [vmem:[%s9670_s5 + $0x3c0] sm:$0xff]  ;;  %v1711_v60 = vld [vmem:[%s9670_s5 + $0x3c8] sm:$0xff] }
 0x138   : > { %v712_v15 = vsel %vm648_vm10, %v608_v0, %v680_v9  ;;  %v5727_v57 = vcombine.high %v1703_v52, %v1707_v54  ;;  %v5733_v61 = vcombine.high %v1710_v58, %v1714_v59  ;;  %v5732_v63 = vcombine.low %v1710_v58, %v1714_v59  ;;  %v7524_v52 = vld [vmem:[%s9670_s5 + $0x5e0] sm:$0xff]  ;;  %v7542_v58 = vld [vmem:[%s9670_s5 + $0x5e8] sm:$0xff] }
 0x139   : > { %v613_v2 = vpop.f32.mrb[28].mxu0  ;;  %v713_v19 = vsel %vm649_vm11, %v610_v7, %v681_v11  ;;  %v730_v20 = vpack.c.bf16 %v712_v15, %v710_v14  ;;  %v5734_v0 = vcombine.low %v1711_v60, %v1715_v62  ;;  %v5735_v1 = vcombine.high %v1711_v60, %v1715_v62  ;;  %v7355_v7 = vld [vmem:[%s9670_s5 + $0x428] sm:$0xff]  ;;  %v798_v11 = vld [vmem:[%s9669_s4] sm:$0xf] }
 0x13a   : > { %v614_v22 = vadd.f32 %v613_v2, %v7067_v38  ;;  %v615_v23 = vpop.f32.mrb[29].mxu0  ;;  %v731_v24 = vpack.c.bf16 %v713_v19, %v711_v18  ;;  %3191 = vmatpush1.bf16.msra.mxu1 %v5700_v8  ;;  %3417 = vmatpush1.bf16.msra.mxu0 %v5702_v10  ;;  %v5741_v6 = vcombine.high %v7338_v3, %v7343_v4  ;;  %v7375_v14 = vld [vmem:[%s9670_s5 + $0x460] sm:$0xff]  ;;  %v7380_v15 = vld [vmem:[%s9670_s5 + $0x448] sm:$0xff] }
 0x13b   : > { %v616_v26 = vadd.f32 %v615_v23, %v7070_v39  ;;  %v617_v27 = vpop.f32.mrb[30].mxu0  ;;  %3192 = vmatprep.subr.bf16.mxu1 %v5709_v12  ;;  %3418 = vmatprep.subr.bf16.mxu0 %v5711_v13  ;;  %v5743_v10 = vcombine.high %v7348_v5, %v7355_v7  ;;  %v9676_v12 = vsub.s32 2, %v7055_v34  ;;  %v7370_v13 = vld [vmem:[%s9670_s5 + $0x440] sm:$0xff]  ;;  %v7401_v19 = vld [vmem:[%s9670_s5 + $0x488] sm:$0xff] }
 0x13c   : > { %v682_v29 = vmul.f32 0.01, %v614_v22  ;;  %v618_v30 = vadd.f32 %v617_v27, %v7067_v38  ;;  %v619_v31 = vpop.f32.mrb[31].mxu0  ;;  %1232 = vmatprep.mubr.bf16.mxu1 %v731_v24  ;;  %1345 = vmatprep.mubr.bf16.mxu0 %v731_v24  ;;  %vm650_vm12 = vcmp.ge.f32.partialorder %v614_v22, 0.0  ;;  %v7391_v2 = vld [vmem:[%s9670_s5 + $0x480] sm:$0xff]  ;;  %v7421_v23 = vld [vmem:[%s9670_s5 + $0x4c8] sm:$0xff] }
 0x13d   : > { %v683_v32 = vmul.f32 0.01, %v616_v26  ;;  %v620_v33 = vadd.f32 %v619_v31, %v7070_v39  ;;  %1233 = vmatmul.mubr.bf16.gmra.mrb[24].mxu1 %v730_v20  ;;  %1346 = vmatmul.mubr.bf16.gmra.mrb[56].mxu0 %v730_v20  ;;  %vm651_vm13 = vcmp.ge.f32.partialorder %v616_v26, 0.0  ;;  %v1695_v39 = vld [vmem:[%s9670_s5 + $0x348] sm:$0xff]  ;;  %v7396_v18 = vld [vmem:[%s9670_s5 + $0x4a0] sm:$0xff]  ;;  %v7456_v31 = vrot.slane %v798_v11, %v7064_v37 }
 0x13e   : > { %vm652_vm14 = vcmp.ge.f32.partialorder %v618_v30, 0.0  ;;  %v684_v36 = vmul.f32 0.01, %v618_v30  ;;  %3193 = vmatpush1.bf16.msra.mxu1 %v5708_v21  ;;  %3419 = vmatpush1.bf16.msra.mxu0 %v5710_v25  ;;  %v714_v42 = vsel %vm650_vm12, %v614_v22, %v682_v29  ;;  %v5719_v48 = vcombine.high %v1695_v39, %v1699_v47  ;;  %v7406_v20 = vld [vmem:[%s9670_s5 + $0x4a8] sm:$0xff]  ;;  %v7411_v21 = vld [vmem:[%s9670_s5 + $0x4c0] sm:$0xff] }
 0x13f   : > { %vm653_vm15 = vcmp.ge.f32.partialorder %v620_v33, 0.0  ;;  %v685_v41 = vmul.f32 0.01, %v620_v33  ;;  %3194 = vmatprep.subr.bf16.mxu1 %v5717_v28  ;;  %v715_v43 = vsel %vm651_vm13, %v616_v26, %v683_v32  ;;  %v5718_v49 = vcombine.low %v1695_v39, %v1699_v47  ;;  %v7416_v22 = vld [vmem:[%s9670_s5 + $0x4e0] sm:$0xff]  ;;  %v7426_v24 = vld [vmem:[%s9670_s5 + $0x4e8] sm:$0xff] }
 0x140   : > { %v716_v38 = vsel %vm652_vm14, %v618_v30, %v684_v36  ;;  %3420 = vmatprep.subr.bf16.mxu0 %v5719_v48  ;;  %v7431_v25 = vld [vmem:[%s9670_s5 + $0x500] sm:$0xff]  ;;  %v7441_v27 = vld [vmem:[%s9670_s5 + $0x508] sm:$0xff]  ;;  %v7449_v29 = vrot.slane %v798_v11, %v7058_v35  ;;  %v7453_v30 = vrot.slane %v798_v11, %v9676_v12 }
 0x141   : > { %v717_v44 = vsel %vm653_vm15, %v620_v33, %v685_v41  ;;  %v732_v45 = vpack.c.bf16 %v716_v38, %v714_v42  ;;  %v7436_v26 = vld [vmem:[%s9670_s5 + $0x520] sm:$0xff]  ;;  %v7446_v28 = vld [vmem:[%s9670_s5 + $0x528] sm:$0xff]  ;;  %v7480_v41 = vrot.slane %v798_v11, %v9675_v17 }
 0x142   : > { %v733_v46 = vpack.c.bf16 %v717_v44, %v715_v43  ;;  %3195 = vmatpush1.bf16.msra.mxu1 %v5716_v40  ;;  %3421 = vmatpush1.bf16.msra.mxu0 %v5718_v49  ;;  %v7461_v32 = vld [vmem:[%s9670_s5 + $0x540] sm:$0xff]  ;;  %v7471_v36 = vld [vmem:[%s9670_s5 + $0x548] sm:$0xff] }
 0x143   : > { %3196 = vmatprep.subr.bf16.mxu1 %v5725_v53  ;;  %3422 = vmatprep.subr.bf16.mxu0 %v5727_v57  ;;  %v7466_v33 = vld [vmem:[%s9670_s5 + $0x560] sm:$0xff]  ;;  %v7476_v40 = vld [vmem:[%s9670_s5 + $0x568] sm:$0xff] }
 0x144   : > { %1242 = vmatprep.mubr.bf16.mxu1 %v733_v46  ;;  %1355 = vmatprep.mubr.bf16.mxu0 %v733_v46  ;;  %v7491_v44 = vld [vmem:[%s9670_s5 + $0x580] sm:$0xff]  ;;  %v7501_v46 = vld [vmem:[%s9670_s5 + $0x588] sm:$0xff] }
 0x145   : > { %1243 = vmatmul.mubr.bf16.gmra.mrb[28].mxu1 %v732_v45  ;;  %1356 = vmatmul.mubr.bf16.gmra.mrb[60].mxu0 %v732_v45  ;;  %v7496_v45 = vld [vmem:[%s9670_s5 + $0x5a0] sm:$0xff]  ;;  %v7506_v39 = vld [vmem:[%s9670_s5 + $0x5a8] sm:$0xff] }
 0x146   : > { %3197 = vmatpush1.bf16.msra.mxu1 %v5724_v55  ;;  %3423 = vmatpush1.bf16.msra.mxu0 %v5726_v56  ;;  %v7529_v53 = vld [vmem:[%s9670_s5 + $0x5c8] sm:$0xff]  ;;  %v7547_v59 = vld [vmem:[%s9670_s5 + $0x600] sm:$0xff] }
 0x147   : > { %3198 = vmatprep.subr.bf16.mxu1 %v5733_v61  ;;  %3424 = vmatprep.subr.bf16.mxu0 %v5735_v1  ;;  %9738 = vst [vmem:[#allocation5_spill] sm:$0xff] %v7547_v59  ;;  %v7552_v60 = vld [vmem:[%s9670_s5 + $0x620] sm:$0xff]  ;;  %v7565_v1 = vld [vmem:[%s9670_s5 + $0x608] sm:$0xff] }
 0x148   : > { %9739 = vst [vmem:[#allocation6_spill] sm:$0xff] %v7552_v60  ;;  %9740 = vst [vmem:[#allocation7_spill] sm:$0xff] %v7565_v1  ;;  %v7588_v62 = vld [vmem:[%s9670_s5 + $0x660] sm:$0xff]  ;;  %v7593_v57 = vld [vmem:[%s9670_s5 + $0x648] sm:$0xff] }
 0x149   : > { %9743 = vst [vmem:[#allocation10_spill] sm:$0xff] %v7588_v62  ;;  %9744 = vst [vmem:[#allocation11_spill] sm:$0xff] %v7593_v57  ;;  %v7598_v17 = vld [vmem:[%s9670_s5 + $0x668] sm:$0xff]  ;;  %v7611_v61 = vld [vmem:[%s9670_s5 + $0x680] sm:$0xff] }
 0x14a   : > { %3199 = vmatpush1.bf16.msra.mxu1 %v5732_v63  ;;  %3425 = vmatpush1.bf16.msra.mxu0 %v5734_v0  ;;  %9745 = vst [vmem:[#allocation12_spill] sm:$0xff] %v7598_v17  ;;  %9746 = vst [vmem:[#allocation13_spill] sm:$0xff] %v7611_v61  ;;  %v7616_v55 = vld [vmem:[%s9670_s5 + $0x6a0] sm:$0xff]  ;;  %v7621_v0 = vld [vmem:[%s9670_s5 + $0x688] sm:$0xff] }
 0x14b   : > { %3281 = vmatprep.subr.bf16.mxu1 %v5741_v6  ;;  %3507 = vmatprep.subr.bf16.mxu0 %v5743_v10  ;;  %v7570_v6 = vld [vmem:[%s9670_s5 + $0x628] sm:$0xff]  ;;  %v7575_v10 = vld [vmem:[%s9670_s5 + $0x640] sm:$0xff]  ;;  %9747 = vst [vmem:[#allocation14_spill] sm:$0xff] %v7616_v55  ;;  %9748 = vst [vmem:[#allocation15_spill] sm:$0xff] %v7621_v0 }
 0x14c   : > { %9741 = vst [vmem:[#allocation8_spill] sm:$0xff] %v7570_v6  ;;  %9742 = vst [vmem:[#allocation9_spill] sm:$0xff] %v7575_v10  ;;  %v7634_v50 = vld [vmem:[%s9670_s5 + $0x6a8] sm:$0xff]  ;;  %v7639_v48 = vld [vmem:[%s9670_s5 + $0x6c0] sm:$0xff] }
 0x14d   : > { %9749 = vst [vmem:[#allocation16_spill] sm:$0xff] %v7634_v50  ;;  %9750 = vst [vmem:[#allocation17_spill] sm:$0xff] %v7639_v48  ;;  %v7644_v63 = vld [vmem:[%s9670_s5 + $0x6e0] sm:$0xff]  ;;  %v7657_v49 = vld [vmem:[%s9670_s5 + $0x6c8] sm:$0xff] }
 0x14e   : > { %9751 = vst [vmem:[#allocation18_spill] sm:$0xff] %v7644_v63  ;;  %9752 = vst [vmem:[#allocation19_spill] sm:$0xff] %v7657_v49  ;;  %v7662_v43 = vld [vmem:[%s9670_s5 + $0x6e8] sm:$0xff]  ;;  %v7667_v56 = vld [vmem:[%s9670_s5 + $0x700] sm:$0xff] }
 0x14f   : > { %9753 = vst [vmem:[#allocation20_spill] sm:$0xff] %v7662_v43  ;;  %9754 = vst [vmem:[#allocation21_spill] sm:$0xff] %v7667_v56  ;;  %v7680_v47 = vld [vmem:[%s9670_s5 + $0x720] sm:$0xff]  ;;  %v7685_v38 = vld [vmem:[%s9670_s5 + $0x708] sm:$0xff] }
 0x150   : > { %9755 = vst [vmem:[#allocation22_spill] sm:$0xff] %v7680_v47  ;;  %9756 = vst [vmem:[#allocation23_spill] sm:$0xff] %v7685_v38  ;;  %v7690_v54 = vld [vmem:[%s9670_s5 + $0x728] sm:$0xff]  ;;  %v7703_v8 = vld [vmem:[%s9670_s5 + $0x740] sm:$0xff] }
 0x151   : > { %9757 = vst [vmem:[#allocation24_spill] sm:$0xff] %v7690_v54  ;;  %9758 = vst [vmem:[#allocation25_spill] sm:$0xff] %v7703_v8  ;;  %v7708_v37 = vld [vmem:[%s9670_s5 + $0x760] sm:$0xff]  ;;  %v7721_v34 = vld [vmem:[%s9670_s5 + $0x748] sm:$0xff] }
 0x152   : > { %9759 = vst [vmem:[#allocation26_spill] sm:$0xff] %v7708_v37  ;;  %9760 = vst [vmem:[#allocation27_spill] sm:$0xff] %v7721_v34  ;;  %v7726_v35 = vld [vmem:[%s9670_s5 + $0x768] sm:$0xff]  ;;  %v7745_v11 = vld [vmem:[%s9670_s5 + $0x780] sm:$0xff] }
 0x153   : > { %9761 = vst [vmem:[#allocation28_spill] sm:$0xff] %v7726_v35  ;;  %9762 = vst [vmem:[#allocation29_spill] sm:$0xff] %v7745_v11  ;;  %v7750_v63 = vld [vmem:[%s9670_s5 + $0x7a0] sm:$0xff] }
 0x154   : > { %9763 = vst [vmem:[#allocation30_spill] sm:$0xff] %v7750_v63 }
 0x1e0   : > { %v1174_v12 = vpop.f32.mrb[0].mxu1  ;;  %v1287_v50 = vpop.f32.mrb[32].mxu0 }
 0x1e1   : > { %v1175_v48 = vadd.f32 %v1174_v12, %v7449_v29  ;;  %v1288_v0 = vadd.f32 %v1287_v50, %v7453_v30  ;;  %v1176_v55 = vpop.f32.mrb[1].mxu1  ;;  %v1289_v61 = vpop.f32.mrb[33].mxu0 }
 0x1e2   : > { %v1177_v12 = vadd.f32 %v1176_v55, %v7456_v31  ;;  %v1290_v50 = vadd.f32 %v1289_v61, %v7480_v41  ;;  %v1178_v9 = vpop.f32.mrb[2].mxu1  ;;  %v1291_v43 = vpop.f32.mrb[34].mxu0 }
 0x1e3   : > { %vm1366_vm0 = vcmp.ge.f32.partialorder %v1175_v48, 0.0  ;;  %v1430_v54 = vmul.f32 0.01, %v1175_v48  ;;  %vm1368_vm1 = vcmp.ge.f32.partialorder %v1288_v0, 0.0  ;;  %v1432_v38 = vmul.f32 0.01, %v1288_v0 }
 0x1e4   : > { %vm1367_vm2 = vcmp.ge.f32.partialorder %v1177_v12, 0.0  ;;  %v1431_v49 = vmul.f32 0.01, %v1177_v12  ;;  %vm1369_vm3 = vcmp.ge.f32.partialorder %v1290_v50, 0.0  ;;  %v1433_v61 = vmul.f32 0.01, %v1290_v50 }
 0x1e5   : > { %v1179_v56 = vadd.f32 %v1178_v9, %v7449_v29  ;;  %v1292_v17 = vadd.f32 %v1291_v43, %v7453_v30  ;;  %v1180_v37 = vpop.f32.mrb[3].mxu1  ;;  %v1293_v42 = vpop.f32.mrb[35].mxu0  ;;  %v1494_v8 = vsel %vm1366_vm0, %v1175_v48, %v1430_v54  ;;  %v1496_v57 = vsel %vm1368_vm1, %v1288_v0, %v1432_v38 }
 0x1e6   : > { %v1181_v62 = vadd.f32 %v1180_v37, %v7456_v31  ;;  %v1294_v10 = vadd.f32 %v1293_v42, %v7480_v41  ;;  %v1495_v9 = vsel %vm1367_vm2, %v1177_v12, %v1431_v49  ;;  %v1497_v43 = vsel %vm1369_vm3, %v1290_v50, %v1433_v61 }
 0x1e7   : > { %vm1370_vm4 = vcmp.ge.f32.partialorder %v1179_v56, 0.0  ;;  %v1434_v6 = vmul.f32 0.01, %v1179_v56  ;;  %vm1372_vm5 = vcmp.ge.f32.partialorder %v1292_v17, 0.0  ;;  %v1436_v47 = vmul.f32 0.01, %v1292_v17 }
 0x1e8   : > { %vm1371_vm6 = vcmp.ge.f32.partialorder %v1181_v62, 0.0  ;;  %v1435_v55 = vmul.f32 0.01, %v1181_v62  ;;  %vm1373_vm7 = vcmp.ge.f32.partialorder %v1294_v10, 0.0  ;;  %v1437_v35 = vmul.f32 0.01, %v1294_v10 }
 0x1e9   : > { %v1498_v34 = vsel %vm1370_vm4, %v1179_v56, %v1434_v6  ;;  %v1500_v11 = vsel %vm1372_vm5, %v1292_v17, %v1436_v47  ;;  %v1184_v48 = vpop.f32.mrb[4].mxu1  ;;  %v1297_v38 = vpop.f32.mrb[36].mxu0  ;;  %v9764_v61 = vcombine.low %v7338_v3, %v7343_v4 }
 0x1ea   : > { %v7768_v54 = vpack.c.bf16 %v1498_v34, %v1494_v8  ;;  %v7770_v37 = vpack.c.bf16 %v1500_v11, %v1496_v57  ;;  %v1499_v42 = vsel %vm1371_vm6, %v1181_v62, %v1435_v55  ;;  %v1501_v0 = vsel %vm1373_vm7, %v1294_v10, %v1437_v35  ;;  %v1186_v63 = vpop.f32.mrb[5].mxu1  ;;  %v1299_v1 = vpop.f32.mrb[37].mxu0 }
 0x1eb   : > { %v7772_v60 = vpack.c.bf16 %v1499_v42, %v1495_v9  ;;  %v7774_v59 = vpack.c.bf16 %v1501_v0, %v1497_v43  ;;  %v1185_v49 = vadd.f32 %v1184_v48, %v7449_v29  ;;  %v1298_v12 = vadd.f32 %v1297_v38, %v7453_v30  ;;  %v1188_v56 = vpop.f32.mrb[6].mxu1  ;;  %v1301_v17 = vpop.f32.mrb[38].mxu0 }
 0x1ec   : > { %v1187_v47 = vadd.f32 %v1186_v63, %v7456_v31  ;;  %v1300_v34 = vadd.f32 %v1299_v1, %v7480_v41  ;;  %v1189_v8 = vadd.f32 %v1188_v56, %v7449_v29  ;;  %v1302_v35 = vadd.f32 %v1301_v17, %v7453_v30  ;;  %v1190_v57 = vpop.f32.mrb[7].mxu1  ;;  %v1303_v62 = vpop.f32.mrb[39].mxu0 }
 0x1ed   : > { %vm1374_vm8 = vcmp.ge.f32.partialorder %v1185_v49, 0.0  ;;  %v1438_v6 = vmul.f32 0.01, %v1185_v49  ;;  %vm1376_vm9 = vcmp.ge.f32.partialorder %v1298_v12, 0.0  ;;  %v1440_v10 = vmul.f32 0.01, %v1298_v12  ;;  %3200 = vmatprep.mubr.bf16.mxu1 %v7772_v60  ;;  %3426 = vmatprep.mubr.bf16.mxu0 %v7772_v60 }
 0x1ee   : > { %vm1375_vm10 = vcmp.ge.f32.partialorder %v1187_v47, 0.0  ;;  %v1439_v11 = vmul.f32 0.01, %v1187_v47  ;;  %vm1377_vm11 = vcmp.ge.f32.partialorder %v1300_v34, 0.0  ;;  %v1441_v63 = vmul.f32 0.01, %v1300_v34  ;;  %3201 = vmatmul.mubr.bf16.vlgmr.msra.gmra.mrb[32].mxu1 %v7768_v54  ;;  %3427 = vmatmul.mubr.bf16.vlgmr.msra.gmra.mrb[64].mxu0 %v7768_v54 }
 0x1ef   : > { %v1502_v1 = vsel %vm1374_vm8, %v1185_v49, %v1438_v6  ;;  %v1504_v50 = vsel %vm1376_vm9, %v1298_v12, %v1440_v10  ;;  %vm1378_vm12 = vcmp.ge.f32.partialorder %v1189_v8, 0.0  ;;  %v1442_v55 = vmul.f32 0.01, %v1189_v8  ;;  %3282 = vmatpush1.bf16.msra.mxu1 %v9764_v61 }
 0x1f0   : > { %v9765_v9 = vcombine.low %v7348_v5, %v7355_v7  ;;  %v1503_v43 = vsel %vm1375_vm10, %v1187_v47, %v1439_v11  ;;  %v1505_v48 = vsel %vm1377_vm11, %v1300_v34, %v1441_v63  ;;  %vm1380_vm13 = vcmp.ge.f32.partialorder %v1302_v35, 0.0  ;;  %v1194_v0 = vpop.f32.mrb[8].mxu1  ;;  %v1307_v49 = vpop.f32.mrb[40].mxu0 }
 0x1f1   : > { %v1444_v38 = vmul.f32 0.01, %v1302_v35  ;;  %v9766_v42 = vcombine.high %v7370_v13, %v7375_v14  ;;  %v9767_v12 = vcombine.high %v7380_v15, %v7385_v16  ;;  %v1506_v3 = vsel %vm1378_vm12, %v1189_v8, %v1442_v55  ;;  %v1196_v56 = vpop.f32.mrb[9].mxu1  ;;  %v1309_v17 = vpop.f32.mrb[41].mxu0 }
 0x1f2   : > { %3508 = vmatpush1.bf16.msra.mxu0 %v9765_v9  ;;  %v1191_v4 = vadd.f32 %v1190_v57, %v7456_v31  ;;  %v1304_v5 = vadd.f32 %v1303_v62, %v7480_v41  ;;  %v1195_v7 = vadd.f32 %v1194_v0, %v7449_v29  ;;  %v7801_v47 = vpack.c.bf16 %v1506_v3, %v1502_v1  ;;  %v1198_v11 = vpop.f32.mrb[10].mxu1  ;;  %v1311_v63 = vpop.f32.mrb[42].mxu0 }
 0x1f3   : > { %3283 = vmatprep.subr.bf16.mxu1 %v9766_v42  ;;  %3509 = vmatprep.subr.bf16.mxu0 %v9767_v12  ;;  %v1508_v34 = vsel %vm1380_vm13, %v1302_v35, %v1444_v38  ;;  %v1308_v6 = vadd.f32 %v1307_v49, %v7453_v30  ;;  %v1197_v10 = vadd.f32 %v1196_v56, %v7456_v31  ;;  %v1200_v35 = vpop.f32.mrb[11].mxu1  ;;  %v1313_v1 = vpop.f32.mrb[43].mxu0 }
 0x1f4   : > { %v7805_v61 = vpack.c.bf16 %v1508_v34, %v1504_v50  ;;  %vm1379_vm14 = vcmp.ge.f32.partialorder %v1191_v4, 0.0  ;;  %v1443_v8 = vmul.f32 0.01, %v1191_v4  ;;  %vm1381_vm15 = vcmp.ge.f32.partialorder %v1304_v5, 0.0 }
 0x1f5   : > { %v9768_v57 = vcombine.low %v7370_v13, %v7375_v14  ;;  %v9769_v62 = vcombine.low %v7380_v15, %v7385_v16  ;;  %v1445_v55 = vmul.f32 0.01, %v1304_v5  ;;  %vm1382_vm0 = vcmp.ge.f32.partialorder %v1195_v7, 0.0 }
 0x1f6   : > { %v1446_v9 = vmul.f32 0.01, %v1195_v7  ;;  %vm1384_vm1 = vcmp.ge.f32.partialorder %v1308_v6, 0.0  ;;  %v9770_v50 = vcombine.high %v7391_v2, %v7396_v18  ;;  %v9771_v38 = vcombine.high %v7401_v19, %v7406_v20 }
 0x1f7   : > { %3284 = vmatpush1.bf16.msra.mxu1 %v9768_v57  ;;  %3510 = vmatpush1.bf16.msra.mxu0 %v9769_v62  ;;  %v1507_v13 = vsel %vm1379_vm14, %v1191_v4, %v1443_v8  ;;  %v1448_v14 = vmul.f32 0.01, %v1308_v6  ;;  %vm1383_vm2 = vcmp.ge.f32.partialorder %v1197_v10, 0.0  ;;  %v1447_v42 = vmul.f32 0.01, %v1197_v10 }
 0x1f8   : > { %3285 = vmatprep.subr.bf16.mxu1 %v9770_v50  ;;  %3511 = vmatprep.subr.bf16.mxu0 %v9771_v38  ;;  %v7819_v15 = vpack.c.bf16 %v1507_v13, %v1503_v43  ;;  %v1509_v16 = vsel %vm1381_vm15, %v1304_v5, %v1445_v55  ;;  %v1510_v0 = vsel %vm1382_vm0, %v1195_v7, %v1446_v9  ;;  %v1317_v5 = vpop.f32.mrb[44].mxu0 }
 0x1f9   : > { %v1310_v49 = vadd.f32 %v1309_v17, %v7480_v41  ;;  %v7823_v12 = vpack.c.bf16 %v1509_v16, %v1505_v48  ;;  %v1512_v3 = vsel %vm1384_vm1, %v1308_v6, %v1448_v14  ;;  %v1511_v56 = vsel %vm1383_vm2, %v1197_v10, %v1447_v42  ;;  %v1204_v48 = vpop.f32.mrb[12].mxu1  ;;  %v1319_v6 = vpop.f32.mrb[45].mxu0 }
 0x1fa   : > { %v1199_v34 = vadd.f32 %v1198_v11, %v7449_v29  ;;  %v9772_v57 = vcombine.low %v7391_v2, %v7396_v18  ;;  %v1312_v43 = vadd.f32 %v1311_v63, %v7453_v30  ;;  %v1201_v8 = vadd.f32 %v1200_v35, %v7456_v31  ;;  %3210 = vmatprep.mubr.bf16.mxu1 %v7819_v15  ;;  %v1206_v18 = vpop.f32.mrb[13].mxu1 }
 0x1fb   : > { %vm1385_vm3 = vcmp.ge.f32.partialorder %v1310_v49, 0.0  ;;  %v1449_v4 = vmul.f32 0.01, %v1310_v49  ;;  %3436 = vmatprep.mubr.bf16.mxu0 %v7819_v15  ;;  %v1314_v17 = vadd.f32 %v1313_v1, %v7480_v41  ;;  %3211 = vmatmul.mubr.bf16.gmra.mrb[36].mxu1 %v7801_v47  ;;  %v1205_v2 = vadd.f32 %v1204_v48, %v7449_v29  ;;  %v1208_v35 = vpop.f32.mrb[14].mxu1  ;;  %v1321_v1 = vpop.f32.mrb[46].mxu0 }
 0x1fc   : > { %3286 = vmatpush1.bf16.msra.mxu1 %v9772_v57  ;;  %vm1386_vm4 = vcmp.ge.f32.partialorder %v1199_v34, 0.0  ;;  %v1450_v7 = vmul.f32 0.01, %v1199_v34  ;;  %3437 = vmatmul.mubr.bf16.gmra.mrb[68].mxu0 %v7801_v47  ;;  %vm1388_vm5 = vcmp.ge.f32.partialorder %v1312_v43, 0.0  ;;  %v1452_v11 = vmul.f32 0.01, %v1312_v43 }
 0x1fd   : > { %v1513_v10 = vsel %vm1385_vm3, %v1310_v49, %v1449_v4  ;;  %vm1387_vm6 = vcmp.ge.f32.partialorder %v1201_v8, 0.0  ;;  %v9773_v63 = vcombine.low %v7401_v19, %v7406_v20  ;;  %v9774_v62 = vcombine.high %v7411_v21, %v7416_v22  ;;  %v1210_v19 = vpop.f32.mrb[15].mxu1  ;;  %v1323_v16 = vpop.f32.mrb[47].mxu0 }
 0x1fe   : > { %v1514_v55 = vsel %vm1386_vm4, %v1199_v34, %v1450_v7  ;;  %v1451_v9 = vmul.f32 0.01, %v1201_v8  ;;  %vm1389_vm7 = vcmp.ge.f32.partialorder %v1314_v17, 0.0  ;;  %v1453_v50 = vmul.f32 0.01, %v1314_v17 }
 0x1ff   : > { %3512 = vmatpush1.bf16.msra.mxu0 %v9773_v63  ;;  %3287 = vmatprep.subr.bf16.mxu1 %v9774_v62  ;;  %v9775_v38 = vcombine.low %v7411_v21, %v7416_v22  ;;  %v9776_v13 = vcombine.high %v7421_v23, %v7426_v24  ;;  %v7851_v20 = vpack.c.bf16 %v1514_v55, %v1510_v0  ;;  %vm1390_vm8 = vcmp.ge.f32.partialorder %v1205_v2, 0.0 }
 0x200   : > { %v1516_v14 = vsel %vm1388_vm5, %v1312_v43, %v1452_v11  ;;  %v1454_v42 = vmul.f32 0.01, %v1205_v2  ;;  %v9777_v49 = vcombine.high %v7431_v25, %v7436_v26  ;;  %v1515_v21 = vsel %vm1387_vm6, %v1201_v8, %v1451_v9 }
 0x201   : > { %3288 = vmatpush1.bf16.msra.mxu1 %v9775_v38  ;;  %3513 = vmatprep.subr.bf16.mxu0 %v9776_v13  ;;  %v7856_v34 = vpack.c.bf16 %v1516_v14, %v1512_v3  ;;  %v1517_v22 = vsel %vm1389_vm7, %v1314_v17, %v1453_v50  ;;  %v1318_v57 = vadd.f32 %v1317_v5, %v7453_v30 }
 0x202   : > { %3289 = vmatprep.subr.bf16.mxu1 %v9777_v49  ;;  %v7860_v4 = vpack.c.bf16 %v1515_v21, %v1511_v56  ;;  %v7862_v48 = vpack.c.bf16 %v1517_v22, %v1513_v10  ;;  %v1518_v0 = vsel %vm1390_vm8, %v1205_v2, %v1454_v42  ;;  %v1207_v43 = vadd.f32 %v1206_v18, %v7456_v31  ;;  %v1327_v18 = vpop.f32.mrb[48].mxu0 }
 0x203   : > { %v9778_v7 = vcombine.low %v7421_v23, %v7426_v24  ;;  %vm1392_vm9 = vcmp.ge.f32.partialorder %v1318_v57, 0.0  ;;  %v1456_v11 = vmul.f32 0.01, %v1318_v57  ;;  %v1320_v3 = vadd.f32 %v1319_v6, %v7480_v41  ;;  %v1214_v24 = vpop.f32.mrb[16].mxu1  ;;  %v1329_v10 = vpop.f32.mrb[49].mxu0 }
 0x204   : > { %v1209_v8 = vadd.f32 %v1208_v35, %v7449_v29  ;;  %v9779_v5 = vcombine.low %v7431_v25, %v7436_v26  ;;  %v9780_v56 = vcombine.high %v7441_v27, %v7446_v28  ;;  %vm1391_vm10 = vcmp.ge.f32.partialorder %v1207_v43, 0.0  ;;  %3220 = vmatprep.mubr.bf16.mxu1 %v7860_v4  ;;  %3446 = vmatprep.mubr.bf16.mxu0 %v7860_v4  ;;  %v1216_v26 = vpop.f32.mrb[17].mxu1 }
 0x205   : > { %3514 = vmatpush1.bf16.msra.mxu0 %v9778_v7  ;;  %v1455_v17 = vmul.f32 0.01, %v1207_v43  ;;  %v1322_v2 = vadd.f32 %v1321_v1, %v7453_v30  ;;  %v1211_v23 = vadd.f32 %v1210_v19, %v7456_v31  ;;  %v1520_v6 = vsel %vm1392_vm9, %v1318_v57, %v1456_v11  ;;  %3221 = vmatmul.mubr.bf16.gmra.mrb[40].mxu1 %v7851_v20  ;;  %v1218_v9 = vpop.f32.mrb[18].mxu1 }
 0x206   : > { %3290 = vmatpush1.bf16.msra.mxu1 %v9779_v5  ;;  %3515 = vmatprep.subr.bf16.mxu0 %v9780_v56  ;;  %vm1393_vm11 = vcmp.ge.f32.partialorder %v1320_v3, 0.0  ;;  %v1457_v25 = vmul.f32 0.01, %v1320_v3  ;;  %vm1394_vm12 = vcmp.ge.f32.partialorder %v1209_v8, 0.0  ;;  %v1458_v62 = vmul.f32 0.01, %v1209_v8 }
 0x207   : > { %3447 = vmatmul.mubr.bf16.gmra.mrb[72].mxu0 %v7851_v20  ;;  %v1519_v63 = vsel %vm1391_vm10, %v1207_v43, %v1455_v17  ;;  %vm1396_vm13 = vcmp.ge.f32.partialorder %v1322_v2, 0.0  ;;  %v1460_v35 = vmul.f32 0.01, %v1322_v2  ;;  %v9781_v1 = vcombine.low %v7441_v27, %v7446_v28  ;;  %v1331_v27 = vpop.f32.mrb[50].mxu0  ;;  %v1220_v28 = vpop.f32.mrb[19].mxu1 }
 0x208   : > { %v9782_v55 = vcombine.high %v7461_v32, %v7466_v33  ;;  %v1521_v50 = vsel %vm1393_vm11, %v1320_v3, %v1457_v25  ;;  %vm1395_vm14 = vcmp.ge.f32.partialorder %v1211_v23, 0.0  ;;  %v1459_v38 = vmul.f32 0.01, %v1211_v23  ;;  %v1333_v57 = vpop.f32.mrb[51].mxu0 }
 0x209   : > { %3516 = vmatpush1.bf16.msra.mxu0 %v9781_v1  ;;  %v1324_v13 = vadd.f32 %v1323_v16, %v7480_v41  ;;  %v9783_v19 = vcombine.low %v7461_v32, %v7466_v33  ;;  %v9784_v14 = vcombine.high %v7471_v36, %v7476_v40  ;;  %v1522_v42 = vsel %vm1394_vm12, %v1209_v8, %v1458_v62 }
 0x20a   : > { %3291 = vmatprep.subr.bf16.mxu1 %v9782_v55  ;;  %v1524_v49 = vsel %vm1396_vm13, %v1322_v2, %v1460_v35  ;;  %v1215_v21 = vadd.f32 %v1214_v24, %v7449_v29  ;;  %v1328_v22 = vadd.f32 %v1327_v18, %v7453_v30  ;;  %v9785_v16 = vcombine.high %v7491_v44, %v7496_v45 }
 0x20b   : > { %3292 = vmatpush1.bf16.msra.mxu1 %v9783_v19  ;;  %3517 = vmatprep.subr.bf16.mxu0 %v9784_v14  ;;  %v7902_v32 = vpack.c.bf16 %v1522_v42, %v1518_v0  ;;  %v7904_v33 = vpack.c.bf16 %v1524_v49, %v1520_v6  ;;  %v1523_v43 = vsel %vm1395_vm14, %v1211_v23, %v1459_v38  ;;  %vm1397_vm15 = vcmp.ge.f32.partialorder %v1324_v13, 0.0  ;;  %v1337_v6 = vpop.f32.mrb[52].mxu0 }
 0x20c   : > { %3293 = vmatprep.subr.bf16.mxu1 %v9785_v16  ;;  %v7906_v7 = vpack.c.bf16 %v1523_v43, %v1519_v63  ;;  %v1461_v11 = vmul.f32 0.01, %v1324_v13  ;;  %vm1398_vm0 = vcmp.ge.f32.partialorder %v1215_v21, 0.0  ;;  %v1462_v3 = vmul.f32 0.01, %v1215_v21  ;;  %v9794_v16 = vld [vmem:[#allocation6_spill] sm:$0xff] }
 0x20d   : > { %v9786_v8 = vcombine.low %v7471_v36, %v7476_v40  ;;  %vm1400_vm1 = vcmp.ge.f32.partialorder %v1328_v22, 0.0  ;;  %v1464_v5 = vmul.f32 0.01, %v1328_v22  ;;  %v1217_v56 = vadd.f32 %v1216_v26, %v7456_v31  ;;  %v1224_v40 = vpop.f32.mrb[20].mxu1 }
 0x20e   : > { %v1330_v0 = vadd.f32 %v1329_v10, %v7480_v41  ;;  %v9787_v17 = vcombine.low %v7491_v44, %v7496_v45  ;;  %v9788_v2 = vcombine.high %v7501_v46, %v7506_v39  ;;  %v1525_v23 = vsel %vm1397_vm15, %v1324_v13, %v1461_v11  ;;  %3230 = vmatprep.mubr.bf16.mxu1 %v7906_v7  ;;  %v1226_v45 = vpop.f32.mrb[21].mxu1  ;;  %v1339_v10 = vpop.f32.mrb[53].mxu0 }
 0x20f   : > { %3518 = vmatpush1.bf16.msra.mxu0 %v9786_v8  ;;  %v1526_v24 = vsel %vm1398_vm0, %v1215_v21, %v1462_v3  ;;  %v1219_v18 = vadd.f32 %v1218_v9, %v7449_v29  ;;  %v1332_v36 = vadd.f32 %v1331_v27, %v7453_v30  ;;  %v7922_v25 = vpack.c.bf16 %v1525_v23, %v1521_v50  ;;  %v1228_v13 = vpop.f32.mrb[22].mxu1  ;;  %v1341_v19 = vpop.f32.mrb[54].mxu0 }
 0x210   : > { %3294 = vmatpush1.bf16.msra.mxu1 %v9787_v17  ;;  %3519 = vmatprep.subr.bf16.mxu0 %v9788_v2  ;;  %v1528_v26 = vsel %vm1400_vm1, %v1328_v22, %v1464_v5  ;;  %vm1399_vm2 = vcmp.ge.f32.partialorder %v1217_v56, 0.0  ;;  %v1463_v44 = vmul.f32 0.01, %v1217_v56  ;;  %vm1401_vm3 = vcmp.ge.f32.partialorder %v1330_v0, 0.0  ;;  %v1343_v22 = vpop.f32.mrb[55].mxu0 }
 0x211   : > { %3456 = vmatprep.mubr.bf16.mxu0 %v7906_v7  ;;  %3231 = vmatmul.mubr.bf16.gmra.mrb[44].mxu1 %v7902_v32  ;;  %v1465_v63 = vmul.f32 0.01, %v1330_v0  ;;  %vm1402_vm4 = vcmp.ge.f32.partialorder %v1219_v18, 0.0  ;;  %v1466_v62 = vmul.f32 0.01, %v1219_v18  ;;  %v9789_v35 = vcombine.high %v7519_v51, %v7524_v52 }
 0x212   : > { %3457 = vmatmul.mubr.bf16.gmra.mrb[76].mxu0 %v7902_v32  ;;  %v1527_v1 = vsel %vm1399_vm2, %v1217_v56, %v1463_v44  ;;  %vm1404_vm5 = vcmp.ge.f32.partialorder %v1332_v36, 0.0  ;;  %v1468_v55 = vmul.f32 0.01, %v1332_v36  ;;  %v1221_v9 = vadd.f32 %v1220_v28, %v7456_v31  ;;  %v1230_v28 = vpop.f32.mrb[23].mxu1  ;;  %v1347_v44 = vpop.f32.mrb[56].mxu0 }
 0x213   : > { %3295 = vmatprep.subr.bf16.mxu1 %v9789_v35  ;;  %v9790_v50 = vcombine.low %v7501_v46, %v7506_v39  ;;  %v9791_v38 = vcombine.low %v7519_v51, %v7524_v52  ;;  %v1529_v14 = vsel %vm1401_vm3, %v1330_v0, %v1465_v63  ;;  %v1530_v27 = vsel %vm1402_vm4, %v1219_v18, %v1466_v62  ;;  %v9793_v52 = vld [vmem:[#allocation5_spill] sm:$0xff]  ;;  %v9802_v63 = vld [vmem:[#allocation10_spill] sm:$0xff] }
 0x214   : > { %v1334_v42 = vadd.f32 %v1333_v57, %v7480_v41  ;;  %v1225_v49 = vadd.f32 %v1224_v40, %v7449_v29  ;;  %v9792_v21 = vcombine.high %v7529_v53, %v7542_v58  ;;  %v7942_v46 = vpack.c.bf16 %v1530_v27, %v1526_v24  ;;  %v9799_v40 = vld [vmem:[#allocation8_spill] sm:$0xff] }
 0x215   : > { %3520 = vmatpush1.bf16.msra.mxu0 %v9790_v50  ;;  %3296 = vmatpush1.bf16.msra.mxu1 %v9791_v38  ;;  %v1532_v39 = vsel %vm1404_vm5, %v1332_v36, %v1468_v55  ;;  %vm1403_vm6 = vcmp.ge.f32.partialorder %v1221_v9, 0.0  ;;  %v1467_v51 = vmul.f32 0.01, %v1221_v9  ;;  %v9795_v43 = vcombine.high %v9793_v52, %v9794_v16  ;;  %v9798_v36 = vld [vmem:[#allocation7_spill] sm:$0xff]  ;;  %v9804_v55 = vld [vmem:[#allocation30_spill] sm:$0xff] }
 0x216   : > { %3521 = vmatprep.subr.bf16.mxu0 %v9792_v21  ;;  %v7947_v11 = vpack.c.bf16 %v1532_v39, %v1528_v26  ;;  %vm1405_vm7 = vcmp.ge.f32.partialorder %v1334_v42, 0.0  ;;  %v1469_v57 = vmul.f32 0.01, %v1334_v42  ;;  %vm1406_vm8 = vcmp.ge.f32.partialorder %v1225_v49, 0.0  ;;  %v1234_v26 = vpop.f32.mrb[24].mxu1 }
 0x217   : > { %3297 = vmatprep.subr.bf16.mxu1 %v9795_v43  ;;  %v1531_v3 = vsel %vm1403_vm6, %v1221_v9, %v1467_v51  ;;  %v1470_v8 = vmul.f32 0.01, %v1225_v49  ;;  %v1338_v5 = vadd.f32 %v1337_v6, %v7453_v30  ;;  %v1227_v56 = vadd.f32 %v1226_v45, %v7456_v31  ;;  %v1236_v35 = vpop.f32.mrb[25].mxu1 }
 0x218   : > { %v9796_v0 = vcombine.low %v7529_v53, %v7542_v58  ;;  %v9797_v17 = vcombine.low %v9793_v52, %v9794_v16  ;;  %v7957_v2 = vpack.c.bf16 %v1531_v3, %v1527_v1  ;;  %v1533_v23 = vsel %vm1405_vm7, %v1334_v42, %v1469_v57  ;;  %v9801_v58 = vld [vmem:[#allocation9_spill] sm:$0xff]  ;;  %v1349_v1 = vpop.f32.mrb[57].mxu0  ;;  %v1238_v42 = vpop.f32.mrb[26].mxu1 }
 0x219   : > { %v1340_v24 = vadd.f32 %v1339_v10, %v7480_v41  ;;  %v1229_v18 = vadd.f32 %v1228_v13, %v7449_v29  ;;  %v9800_v6 = vcombine.high %v9798_v36, %v9799_v40  ;;  %v7964_v45 = vpack.c.bf16 %v1533_v23, %v1529_v14  ;;  %v9805_v10 = vld [vmem:[#allocation29_spill] sm:$0xff]  ;;  %v1351_v21 = vpop.f32.mrb[58].mxu0  ;;  %v1240_v43 = vpop.f32.mrb[27].mxu1 }
 0x21a   : > { %3522 = vmatpush1.bf16.msra.mxu0 %v9796_v0  ;;  %3298 = vmatpush1.bf16.msra.mxu1 %v9797_v17  ;;  %vm1408_vm9 = vcmp.ge.f32.partialorder %v1338_v5, 0.0  ;;  %v1472_v53 = vmul.f32 0.01, %v1338_v5  ;;  %v9803_v62 = vcombine.high %v9801_v58, %v9802_v63  ;;  %v1534_v50 = vsel %vm1406_vm8, %v1225_v49, %v1470_v8  ;;  %v1353_v57 = vpop.f32.mrb[59].mxu0  ;;  %v9812_v23 = vld [vmem:[#allocation13_spill] sm:$0xff] }
 0x21b   : > { %3523 = vmatprep.subr.bf16.mxu0 %v9800_v6  ;;  %vm1407_vm10 = vcmp.ge.f32.partialorder %v1227_v56, 0.0  ;;  %v1471_v38 = vmul.f32 0.01, %v1227_v56  ;;  %v1473_v13 = vmul.f32 0.01, %v1340_v24  ;;  %3240 = vmatprep.mubr.bf16.mxu1 %v7957_v2  ;;  %vm1409_vm11 = vcmp.ge.f32.partialorder %v1340_v24, 0.0 }
 0x21c   : > { %3299 = vmatprep.subr.bf16.mxu1 %v9803_v62  ;;  %3466 = vmatprep.mubr.bf16.mxu0 %v7957_v2  ;;  %vm1410_vm12 = vcmp.ge.f32.partialorder %v1229_v18, 0.0  ;;  %v1474_v14 = vmul.f32 0.01, %v1229_v18  ;;  %v1342_v27 = vadd.f32 %v1341_v19, %v7453_v30  ;;  %v1536_v49 = vsel %vm1408_vm9, %v1338_v5, %v1472_v53  ;;  %v9808_v5 = vld [vmem:[#allocation11_spill] sm:$0xff] }
 0x21d   : > { %3241 = vmatmul.mubr.bf16.gmra.mrb[48].mxu1 %v7942_v46  ;;  %3467 = vmatmul.mubr.bf16.gmra.mrb[80].mxu0 %v7942_v46  ;;  %v1535_v39 = vsel %vm1407_vm10, %v1227_v56, %v1471_v38  ;;  %v1231_v51 = vadd.f32 %v1230_v28, %v7456_v31  ;;  %v1344_v52 = vadd.f32 %v1343_v22, %v7480_v41  ;;  %v9809_v56 = vld [vmem:[#allocation12_spill] sm:$0xff]  ;;  %v1244_v38 = vpop.f32.mrb[28].mxu1 }
 0x21e   : > { %v9806_v16 = vcombine.low %v9798_v36, %v9799_v40  ;;  %v1538_v19 = vsel %vm1410_vm12, %v1229_v18, %v1474_v14  ;;  %vm1412_vm13 = vcmp.ge.f32.partialorder %v1342_v27, 0.0  ;;  %v1476_v3 = vmul.f32 0.01, %v1342_v27  ;;  %v9813_v36 = vld [vmem:[#allocation14_spill] sm:$0xff]  ;;  %v1357_v14 = vpop.f32.mrb[60].mxu0 }
 0x21f   : > { %v1235_v8 = vadd.f32 %v1234_v26, %v7449_v29  ;;  %v9807_v0 = vcombine.low %v9801_v58, %v9802_v63  ;;  %v9810_v28 = vcombine.high %v9808_v5, %v9809_v56  ;;  %v7990_v22 = vpack.c.bf16 %v1538_v19, %v1534_v50 }
 0x220   : > { %3524 = vmatpush1.bf16.msra.mxu0 %v9806_v16  ;;  %vm1411_vm14 = vcmp.ge.f32.partialorder %v1231_v51, 0.0  ;;  %v1475_v17 = vmul.f32 0.01, %v1231_v51  ;;  %vm1413_vm15 = vcmp.ge.f32.partialorder %v1344_v52, 0.0  ;;  %v9814_v18 = vcombine.high %v9812_v23, %v9813_v36 }
 0x221   : > { %3300 = vmatpush1.bf16.msra.mxu1 %v9807_v0  ;;  %3525 = vmatprep.subr.bf16.mxu0 %v9810_v28  ;;  %9811 = vst [vmem:[#allocation5_spill] sm:$0xff] %v7990_v22  ;;  %v1540_v40 = vsel %vm1412_vm13, %v1342_v27, %v1476_v3  ;;  %v1477_v6 = vmul.f32 0.01, %v1344_v52  ;;  %vm1414_vm0 = vcmp.ge.f32.partialorder %v1235_v8, 0.0  ;;  %v1478_v26 = vmul.f32 0.01, %v1235_v8 }
 0x222   : > { %3301 = vmatprep.subr.bf16.mxu1 %v9814_v18  ;;  %v7995_v53 = vpack.c.bf16 %v1540_v40, %v1536_v49  ;;  %v1539_v58 = vsel %vm1411_vm14, %v1231_v51, %v1475_v17  ;;  %v1348_v63 = vadd.f32 %v1347_v44, %v7453_v30  ;;  %v1237_v62 = vadd.f32 %v1236_v35, %v7456_v31  ;;  %v1246_v44 = vpop.f32.mrb[29].mxu1  ;;  %v1359_v51 = vpop.f32.mrb[61].mxu0 }
 0x223   : > { %v9815_v50 = vcombine.low %v9808_v5, %v9809_v56  ;;  %v1537_v16 = vsel %vm1409_vm11, %v1340_v24, %v1473_v13  ;;  %v8003_v19 = vpack.c.bf16 %v1539_v58, %v1535_v39  ;;  %v1541_v27 = vsel %vm1413_vm15, %v1344_v52, %v1477_v6  ;;  %v9817_v5 = vld [vmem:[#allocation15_spill] sm:$0xff]  ;;  %v9818_v56 = vld [vmem:[#allocation16_spill] sm:$0xff]  ;;  %v9820_v24 = vld [vmem:[#allocation17_spill] sm:$0xff]  ;;  %v1361_v52 = vpop.f32.mrb[62].mxu0 }
 0x224   : > { %v1350_v3 = vadd.f32 %v1349_v1, %v7480_v41  ;;  %v9816_v49 = vcombine.low %v9812_v23, %v9813_v36  ;;  %v8009_v35 = vpack.c.bf16 %v1541_v27, %v1537_v16  ;;  %vm1416_vm1 = vcmp.ge.f32.partialorder %v1348_v63, 0.0  ;;  %v9821_v13 = vld [vmem:[#allocation18_spill] sm:$0xff]  ;;  %v1248_v1 = vpop.f32.mrb[30].mxu1  ;;  %v1363_v16 = vpop.f32.mrb[63].mxu0 }
 0x225   : > { %3526 = vmatpush1.bf16.msra.mxu0 %v9815_v50  ;;  %v1480_v0 = vmul.f32 0.01, %v1348_v63  ;;  %vm1415_vm2 = vcmp.ge.f32.partialorder %v1237_v62, 0.0  ;;  %v9819_v28 = vcombine.high %v9817_v5, %v9818_v56  ;;  %v9822_v39 = vcombine.high %v9820_v24, %v9821_v13  ;;  %3250 = vmatprep.mubr.bf16.mxu1 %v8003_v19  ;;  %v1250_v18 = vpop.f32.mrb[31].mxu1 }
 0x226   : > { %3302 = vmatpush1.bf16.msra.mxu1 %v9816_v49  ;;  %v1542_v17 = vsel %vm1414_vm0, %v1235_v8, %v1478_v26  ;;  %v1479_v23 = vmul.f32 0.01, %v1237_v62  ;;  %vm1417_vm3 = vcmp.ge.f32.partialorder %v1350_v3, 0.0  ;;  %v1239_v36 = vadd.f32 %v1238_v42, %v7449_v29  ;;  %3476 = vmatprep.mubr.bf16.mxu0 %v8003_v19  ;;  %v9825_v49 = vld [vmem:[#allocation21_spill] sm:$0xff] }
 0x227   : > { %3527 = vmatprep.subr.bf16.mxu0 %v9819_v28  ;;  %3303 = vmatprep.subr.bf16.mxu1 %v9822_v39  ;;  %v1481_v40 = vmul.f32 0.01, %v1350_v3  ;;  %v1352_v6 = vadd.f32 %v1351_v21, %v7453_v30  ;;  %v1241_v58 = vadd.f32 %v1240_v43, %v7456_v31  ;;  %v1354_v50 = vadd.f32 %v1353_v57, %v7480_v41 }
 0x228   : > { %3251 = vmatmul.mubr.bf16.gmra.mrb[52].mxu1 %v7990_v22  ;;  %v1544_v8 = vsel %vm1416_vm1, %v1348_v63, %v1480_v0  ;;  %v1543_v26 = vsel %vm1415_vm2, %v1237_v62, %v1479_v23  ;;  %vm1418_vm4 = vcmp.ge.f32.partialorder %v1239_v36, 0.0  ;;  %v1482_v42 = vmul.f32 0.01, %v1239_v36  ;;  %3477 = vmatmul.mubr.bf16.gmra.mrb[84].mxu0 %v7990_v22  ;;  %v9826_v63 = vld [vmem:[#allocation22_spill] sm:$0xff]  ;;  %v9828_v23 = vld [vmem:[#allocation19_spill] sm:$0xff] }
 0x229   : > { %v9823_v27 = vcombine.low %v9820_v24, %v9821_v13  ;;  %vm1420_vm5 = vcmp.ge.f32.partialorder %v1352_v6, 0.0  ;;  %v1484_v21 = vmul.f32 0.01, %v1352_v6  ;;  %vm1419_vm6 = vcmp.ge.f32.partialorder %v1241_v58, 0.0  ;;  %v9829_v24 = vld [vmem:[#allocation20_spill] sm:$0xff] }
 0x22a   : > { %v1483_v43 = vmul.f32 0.01, %v1241_v58  ;;  %v9824_v57 = vcombine.low %v9817_v5, %v9818_v56  ;;  %v9827_v0 = vcombine.high %v9825_v49, %v9826_v63  ;;  %v1546_v62 = vsel %vm1418_vm4, %v1239_v36, %v1482_v42 }
 0x22b   : > { %3304 = vmatpush1.bf16.msra.mxu1 %v9823_v27  ;;  %vm1421_vm7 = vcmp.ge.f32.partialorder %v1354_v50, 0.0  ;;  %v1485_v28 = vmul.f32 0.01, %v1354_v50  ;;  %v1245_v39 = vadd.f32 %v1244_v38, %v7449_v29  ;;  %v9830_v13 = vcombine.high %v9828_v23, %v9829_v24 }
 0x22c   : > { %3528 = vmatpush1.bf16.msra.mxu0 %v9824_v57  ;;  %3305 = vmatprep.subr.bf16.mxu1 %v9827_v0  ;;  %v8041_v27 = vpack.c.bf16 %v1546_v62, %v1542_v17  ;;  %v1548_v9 = vsel %vm1420_vm5, %v1352_v6, %v1484_v21  ;;  %v1547_v22 = vsel %vm1419_vm6, %v1241_v58, %v1483_v43  ;;  %v8055_v17 = vld [vmem:[%s9670_s5 + $0x7c0] sm:$0xff]  ;;  %v9833_v6 = vld [vmem:[#allocation25_spill] sm:$0xff] }
 0x22d   : > { %3529 = vmatprep.subr.bf16.mxu0 %v9830_v13  ;;  %v1358_v5 = vadd.f32 %v1357_v14, %v7453_v30  ;;  %v1545_v56 = vsel %vm1417_vm3, %v1350_v3, %v1481_v40  ;;  %v8045_v57 = vpack.c.bf16 %v1548_v9, %v1544_v8  ;;  %v8047_v0 = vpack.c.bf16 %v1547_v22, %v1543_v26  ;;  %v8060_v14 = vld [vmem:[%s9670_s5 + $0x7e0] sm:$0xff] }
 0x22e   : > { %v1549_v36 = vsel %vm1421_vm7, %v1354_v50, %v1485_v28  ;;  %v9831_v38 = vcombine.low %v9825_v49, %v9826_v63  ;;  %vm1422_vm8 = vcmp.ge.f32.partialorder %v1245_v39, 0.0  ;;  %v1486_v9 = vmul.f32 0.01, %v1245_v39  ;;  %v9834_v58 = vld [vmem:[#allocation26_spill] sm:$0xff] }
 0x22f   : > { %v8062_v3 = vpack.c.bf16 %v1549_v36, %v1545_v56  ;;  %v1488_v22 = vmul.f32 0.01, %v1358_v5  ;;  %v9832_v40 = vcombine.low %v9828_v23, %v9829_v24  ;;  %v9835_v50 = vcombine.high %v9833_v6, %v9834_v58  ;;  %3260 = vmatprep.mubr.bf16.mxu1 %v8047_v0  ;;  %3486 = vmatprep.mubr.bf16.mxu0 %v8047_v0  ;;  %v1831_v23 = vld [vmem:[%s9670_s5 + $0x788] sm:$0xff] }
 0x230   : > { %3306 = vmatpush1.bf16.msra.mxu1 %v9831_v38  ;;  %v1247_v8 = vadd.f32 %v1246_v44, %v7456_v31  ;;  %v1360_v26 = vadd.f32 %v1359_v51, %v7480_v41  ;;  %v1249_v42 = vadd.f32 %v1248_v1, %v7449_v29  ;;  %v1362_v21 = vadd.f32 %v1361_v52, %v7453_v30  ;;  %v9837_v1 = vld [vmem:[#allocation24_spill] sm:$0xff]  ;;  %v1835_v24 = vld [vmem:[%s9670_s5 + $0x7a8] sm:$0xff] }
 0x231   : > { %3530 = vmatpush1.bf16.msra.mxu0 %v9832_v40  ;;  %3307 = vmatprep.subr.bf16.mxu1 %v9835_v50  ;;  %vm1424_vm9 = vcmp.ge.f32.partialorder %v1358_v5, 0.0  ;;  %v1251_v43 = vadd.f32 %v1250_v18, %v7456_v31  ;;  %v1364_v49 = vadd.f32 %v1363_v16, %v7480_v41  ;;  %v5861_v63 = vcombine.high %v8055_v17, %v8060_v14  ;;  %v9836_v31 = vld [vmem:[#allocation23_spill] sm:$0xff]  ;;  %v9843_v38 = vld [vmem:[#allocation28_spill] sm:$0xff] }
 0x232   : > { %v1550_v62 = vsel %vm1422_vm8, %v1245_v39, %v1486_v9  ;;  %vm1423_vm10 = vcmp.ge.f32.partialorder %v1247_v8, 0.0  ;;  %v1487_v44 = vmul.f32 0.01, %v1247_v8  ;;  %v1489_v51 = vmul.f32 0.01, %v1360_v26  ;;  %3261 = vmatmul.mubr.bf16.gmra.mrb[56].mxu1 %v8041_v27  ;;  %3487 = vmatmul.mubr.bf16.gmra.mrb[88].mxu0 %v8041_v27  ;;  %v9842_v36 = vld [vmem:[#allocation27_spill] sm:$0xff] }
 0x233   : > { %vm1426_vm11 = vcmp.ge.f32.partialorder %v1249_v42, 0.0  ;;  %v1490_v29 = vmul.f32 0.01, %v1249_v42  ;;  %vm1428_vm12 = vcmp.ge.f32.partialorder %v1362_v21, 0.0  ;;  %v1492_v30 = vmul.f32 0.01, %v1362_v21 }
 0x234   : > { %v9838_v41 = vcombine.high %v9836_v31, %v9837_v1  ;;  %v9839_v52 = vcombine.low %v9833_v6, %v9834_v58  ;;  %v1552_v18 = vsel %vm1424_vm9, %v1358_v5, %v1488_v22  ;;  %vm1425_vm13 = vcmp.ge.f32.partialorder %v1360_v26, 0.0  ;;  %v1839_v50 = vld [vmem:[%s9670_s5 + $0x7c8] sm:$0xff] }
 0x235   : > { %vm1427_vm14 = vcmp.ge.f32.partialorder %v1251_v43, 0.0  ;;  %v1491_v16 = vmul.f32 0.01, %v1251_v43  ;;  %v9840_v28 = vcombine.low %v9836_v31, %v9837_v1  ;;  %v9841_v39 = vcombine.high %v9805_v10, %v9804_v55  ;;  %v1593_v1 = vld [vmem:[%s9670_s5 + $0x18] sm:$0xff] }
 0x236   : > { %3531 = vmatprep.subr.bf16.mxu0 %v9838_v41  ;;  %3308 = vmatpush1.bf16.msra.mxu1 %v9839_v52  ;;  %v1554_v13 = vsel %vm1426_vm11, %v1249_v42, %v1490_v29  ;;  %v1556_v5 = vsel %vm1428_vm12, %v1362_v21, %v1492_v30  ;;  %vm1429_vm15 = vcmp.ge.f32.partialorder %v1364_v49, 0.0  ;;  %v1493_v56 = vmul.f32 0.01, %v1364_v49  ;;  %v1843_v42 = vld [vmem:[%s9670_s5 + $0x7e8] sm:$0xff]  ;;  %v1600_v41 = vld [vmem:[%s9670_s5 + $0x50] sm:$0xff] }
 0x237   : > { %3532 = vmatpush1.bf16.msra.mxu0 %v9840_v28  ;;  %3309 = vmatprep.subr.bf16.mxu1 %v9841_v39  ;;  %v9844_v9 = vcombine.high %v9842_v36, %v9843_v38  ;;  %v1551_v22 = vsel %vm1423_vm10, %v1247_v8, %v1487_v44  ;;  %v8105_v40 = vpack.c.bf16 %v1554_v13, %v1550_v62  ;;  %v1596_v44 = vld [vmem:[%s9670_s5 + $0x30] sm:$0xff]  ;;  %v1605_v28 = vld [vmem:[%s9670_s5 + $0x78] sm:$0xff] }
 0x238   : > { %v8107_v6 = vpack.c.bf16 %v1556_v5, %v1552_v18  ;;  %v1555_v58 = vsel %vm1427_vm14, %v1251_v43, %v1491_v16  ;;  %v1553_v21 = vsel %vm1425_vm13, %v1360_v26, %v1489_v51  ;;  %v1557_v30 = vsel %vm1429_vm15, %v1364_v49, %v1493_v56  ;;  %v1592_v43 = vld [vmem:[%s9670_s5 + $0x10] sm:$0xff]  ;;  %v1601_v16 = vld [vmem:[%s9670_s5 + $0x58] sm:$0xff] }
 0x239   : > { %3533 = vmatprep.subr.bf16.mxu0 %v9844_v9  ;;  %v8116_v29 = vpack.c.bf16 %v1555_v58, %v1551_v22  ;;  %v9845_v8 = vcombine.low %v9805_v10, %v9804_v55  ;;  %v5855_v62 = vcombine.high %v1831_v23, %v1835_v24  ;;  %v8127_v31 = vpack.c.bf16 %v1557_v30, %v1553_v21  ;;  %v1604_v52 = vld [vmem:[%s9670_s5 + $0x70] sm:$0xff]  ;;  %v1617_v30 = vld [vmem:[%s9670_s5 + $0xd8] sm:$0xff] }
 0x23a   : > { %v9846_v26 = vcombine.low %v9842_v36, %v9843_v38  ;;  %v5854_v49 = vcombine.low %v1831_v23, %v1835_v24  ;;  %v5860_v55 = vcombine.low %v8055_v17, %v8060_v14  ;;  %v5863_v10 = vcombine.high %v1839_v50, %v1843_v42  ;;  %v1608_v24 = vld [vmem:[%s9670_s5 + $0x90] sm:$0xff]  ;;  %v1609_v36 = vld [vmem:[%s9670_s5 + $0x98] sm:$0xff] }
 0x23b   : > { %3310 = vmatpush1.bf16.msra.mxu1 %v9845_v8  ;;  %3270 = vmatprep.mubr.bf16.mxu1 %v8116_v29  ;;  %v5617_v51 = vcombine.high %v1592_v43, %v1596_v44  ;;  %v5862_v17 = vcombine.low %v1839_v50, %v1843_v42  ;;  %v5616_v18 = vcombine.low %v1592_v43, %v1596_v44  ;;  %v1612_v13 = vld [vmem:[%s9670_s5 + $0xb0] sm:$0xff]  ;;  %v1613_v38 = vld [vmem:[%s9670_s5 + $0xb8] sm:$0xff] }
 0x23c   : > { %3534 = vmatpush1.bf16.msra.mxu0 %v9846_v26  ;;  %3311 = vmatprep.subr.bf16.mxu1 %v5861_v63  ;;  %v1597_v63 = vld [vmem:[%s9670_s5 + $0x38] sm:$0xff]  ;;  %v5625_v23 = vcombine.high %v1600_v41, %v1604_v52  ;;  %v5627_v5 = vcombine.high %v1601_v16, %v1605_v28  ;;  %v5624_v56 = vcombine.low %v1600_v41, %v1604_v52  ;;  %v1616_v50 = vld [vmem:[%s9670_s5 + $0xd0] sm:$0xff] }
 0x23d   : > { %3496 = vmatprep.mubr.bf16.mxu0 %v8116_v29  ;;  %3271 = vmatmul.mubr.bf16.gmra.mrb[60].mxu1 %v8105_v40  ;;  %v5619_v14 = vcombine.high %v1593_v1, %v1597_v63  ;;  %v5618_v39 = vcombine.low %v1593_v1, %v1597_v63  ;;  %v5633_v9 = vcombine.high %v1608_v24, %v1612_v13  ;;  %v1620_v42 = vld [vmem:[%s9670_s5 + $0xf0] sm:$0xff]  ;;  %v1621_v8 = vld [vmem:[%s9670_s5 + $0xf8] sm:$0xff] }
 0x23e   : > { %3497 = vmatmul.mubr.bf16.gmra.mrb[92].mxu0 %v8105_v40  ;;  %3535 = vmatprep.subr.bf16.mxu0 %v5855_v62  ;;  %v5626_v22 = vcombine.low %v1601_v16, %v1605_v28  ;;  %v5635_v58 = vcombine.high %v1609_v36, %v1613_v38  ;;  %v5632_v21 = vcombine.low %v1608_v24, %v1612_v13  ;;  %v1624_v44 = vld [vmem:[%s9670_s5 + $0x110] sm:$0xff]  ;;  %v1637_v16 = vld [vmem:[%s9670_s5 + $0x178] sm:$0xff] }
 0x23f   : > { %3313 = vmatprep.mubr.bf16.mxu1 %v7774_v59  ;;  %3539 = vmatprep.mubr.bf16.mxu0 %v7774_v59  ;;  %v5634_v62 = vcombine.low %v1609_v36, %v1613_v38  ;;  %v5641_v43 = vcombine.high %v1616_v50, %v1620_v42  ;;  %v1628_v26 = vld [vmem:[%s9670_s5 + $0x130] sm:$0xff]  ;;  %v5642_v63 = vcombine.low %v1617_v30, %v1621_v8  ;;  %v1645_v36 = vld [vmem:[%s9670_s5 + $0x1b8] sm:$0xff] }
 0x240   : > { %3536 = vmatpush1.bf16.msra.mxu0 %v5854_v49  ;;  %3312 = vmatpush1.bf16.msra.mxu1 %v5860_v55  ;;  %v5643_v49 = vcombine.high %v1617_v30, %v1621_v8  ;;  %v5640_v55 = vcombine.low %v1616_v50, %v1620_v42  ;;  %v5649_v1 = vcombine.high %v1624_v44, %v1628_v26  ;;  %v1636_v41 = vld [vmem:[%s9670_s5 + $0x170] sm:$0xff]  ;;  %v1653_v30 = vld [vmem:[%s9670_s5 + $0x1f8] sm:$0xff] }
 0x241   : > { %3537 = vmatprep.subr.bf16.mxu0 %v5863_v10  ;;  %3620 = vmatprep.subr.bf16.mxu1 %v5617_v51  ;;  %v1625_v10 = vld [vmem:[%s9670_s5 + $0x118] sm:$0xff]  ;;  %v5648_v52 = vcombine.low %v1624_v44, %v1628_v26  ;;  %v1644_v24 = vld [vmem:[%s9670_s5 + $0x1b0] sm:$0xff] }
 0x242   : > { %v1629_v51 = vld [vmem:[%s9670_s5 + $0x138] sm:$0xff]  ;;  %v1652_v50 = vld [vmem:[%s9670_s5 + $0x1f0] sm:$0xff] }
 0x243   : > { %v5650_v28 = vcombine.low %v1625_v10, %v1629_v51  ;;  %v1660_v44 = vld [vmem:[%s9670_s5 + $0x230] sm:$0xff] }
 0x244   : > { %3538 = vmatpush1.bf16.msra.mxu0 %v5862_v17  ;;  %v5651_v17 = vcombine.high %v1625_v10, %v1629_v51  ;;  %v1661_v10 = vld [vmem:[%s9670_s5 + $0x238] sm:$0xff] }
 0x245   : > { %3846 = vmatprep.subr.bf16.mxu0 %v5619_v14  ;;  %3314 = vmatmul.mubr.bf16.vlgmr.msra.gmra.mrb[32].mxu1 %v7770_v37  ;;  %v1632_v14 = vld [vmem:[%s9670_s5 + $0x150] sm:$0xff] }
 0x246   : > { %3621 = vmatpush1.bf16.msra.mxu1 %v5616_v18  ;;  %3323 = vmatprep.mubr.bf16.mxu1 %v7823_v12  ;;  %v1633_v18 = vld [vmem:[%s9670_s5 + $0x158] sm:$0xff] }
 0x247   : > { %3540 = vmatmul.mubr.bf16.vlgmr.msra.gmra.mrb[64].mxu0 %v7770_v37  ;;  %3622 = vmatprep.subr.bf16.mxu1 %v5625_v23  ;;  %v1640_v23 = vld [vmem:[%s9670_s5 + $0x190] sm:$0xff]  ;;  %v5659_v13 = vcombine.high %v1633_v18, %v1637_v16 }
 0x248   : > { %3549 = vmatprep.mubr.bf16.mxu0 %v7823_v12  ;;  %3847 = vmatpush1.bf16.msra.mxu0 %v5618_v39  ;;  %v5657_v39 = vcombine.high %v1632_v14, %v1636_v41  ;;  %v5665_v38 = vcombine.high %v1640_v23, %v1644_v24  ;;  %v5664_v42 = vcombine.low %v1640_v23, %v1644_v24  ;;  %v1676_v23 = vld [vmem:[%s9670_s5 + $0x2b0] sm:$0xff] }
 0x249   : > { %3848 = vmatprep.subr.bf16.mxu0 %v5627_v5  ;;  %v5656_v5 = vcombine.low %v1632_v14, %v1636_v41  ;;  %v1668_v14 = vld [vmem:[%s9670_s5 + $0x270] sm:$0xff] }
 0x24a   : > { %3623 = vmatpush1.bf16.msra.mxu1 %v5624_v56  ;;  %v1641_v56 = vld [vmem:[%s9670_s5 + $0x198] sm:$0xff] }
 0x24b   : > { %3624 = vmatprep.subr.bf16.mxu1 %v5633_v9  ;;  %v5658_v9 = vcombine.low %v1633_v18, %v1637_v16  ;;  %v5666_v8 = vcombine.low %v1641_v56, %v1645_v36  ;;  %v1669_v18 = vld [vmem:[%s9670_s5 + $0x278] sm:$0xff] }
 0x24c   : > { %3849 = vmatpush1.bf16.msra.mxu0 %v5626_v22  ;;  %v5667_v22 = vcombine.high %v1641_v56, %v1645_v36  ;;  %v1677_v56 = vld [vmem:[%s9670_s5 + $0x2b8] sm:$0xff] }
 0x24d   : > { %3324 = vmatmul.mubr.bf16.gmra.mrb[36].mxu1 %v7805_v61  ;;  %3850 = vmatprep.subr.bf16.mxu0 %v5635_v58  ;;  %v1648_v58 = vld [vmem:[%s9670_s5 + $0x1d0] sm:$0xff] }
 0x24e   : > { %3625 = vmatpush1.bf16.msra.mxu1 %v5632_v21  ;;  %3333 = vmatprep.mubr.bf16.mxu1 %v7862_v48  ;;  %v1649_v21 = vld [vmem:[%s9670_s5 + $0x1d8] sm:$0xff] }
 0x24f   : > { %3550 = vmatmul.mubr.bf16.gmra.mrb[68].mxu0 %v7805_v61  ;;  %3626 = vmatprep.subr.bf16.mxu1 %v5641_v43  ;;  %v1656_v43 = vld [vmem:[%s9670_s5 + $0x210] sm:$0xff]  ;;  %v5675_v26 = vcombine.high %v1649_v21, %v1653_v30 }
 0x250   : > { %3559 = vmatprep.mubr.bf16.mxu0 %v7862_v48  ;;  %3851 = vmatpush1.bf16.msra.mxu0 %v5634_v62  ;;  %v5673_v62 = vcombine.high %v1648_v58, %v1652_v50  ;;  %v5681_v51 = vcombine.high %v1656_v43, %v1660_v44  ;;  %v5680_v41 = vcombine.low %v1656_v43, %v1660_v44  ;;  %v1692_v43 = vld [vmem:[%s9670_s5 + $0x330] sm:$0xff] }
 0x251   : > { %3852 = vmatprep.subr.bf16.mxu0 %v5643_v49  ;;  %v5672_v49 = vcombine.low %v1648_v58, %v1652_v50  ;;  %v1684_v58 = vld [vmem:[%s9670_s5 + $0x2f0] sm:$0xff] }
 0x252   : > { %3627 = vmatpush1.bf16.msra.mxu1 %v5640_v55  ;;  %v1657_v55 = vld [vmem:[%s9670_s5 + $0x218] sm:$0xff] }
 0x253   : > { %3628 = vmatprep.subr.bf16.mxu1 %v5649_v1  ;;  %v5674_v1 = vcombine.low %v1649_v21, %v1653_v30  ;;  %v5682_v16 = vcombine.low %v1657_v55, %v1661_v10  ;;  %v1685_v21 = vld [vmem:[%s9670_s5 + $0x2f8] sm:$0xff] }
 0x254   : > { %3853 = vmatpush1.bf16.msra.mxu0 %v5642_v63  ;;  %v5683_v63 = vcombine.high %v1657_v55, %v1661_v10  ;;  %v1693_v55 = vld [vmem:[%s9670_s5 + $0x338] sm:$0xff] }
 0x255   : > { %3334 = vmatmul.mubr.bf16.gmra.mrb[40].mxu1 %v7856_v34  ;;  %3854 = vmatprep.subr.bf16.mxu0 %v5651_v17  ;;  %v1664_v17 = vld [vmem:[%s9670_s5 + $0x250] sm:$0xff] }
 0x256   : > { %3629 = vmatpush1.bf16.msra.mxu1 %v5648_v52  ;;  %3343 = vmatprep.mubr.bf16.mxu1 %v7922_v25  ;;  %v1665_v52 = vld [vmem:[%s9670_s5 + $0x258] sm:$0xff] }
 0x257   : > { %3560 = vmatmul.mubr.bf16.gmra.mrb[72].mxu0 %v7856_v34  ;;  %3630 = vmatprep.subr.bf16.mxu1 %v5657_v39  ;;  %v1672_v39 = vld [vmem:[%s9670_s5 + $0x290] sm:$0xff]  ;;  %v5691_v24 = vcombine.high %v1665_v52, %v1669_v18 }
 0x258   : > { %3569 = vmatprep.mubr.bf16.mxu0 %v7922_v25  ;;  %3855 = vmatpush1.bf16.msra.mxu0 %v5650_v28  ;;  %v5689_v28 = vcombine.high %v1664_v17, %v1668_v14  ;;  %v5697_v36 = vcombine.high %v1672_v39, %v1676_v23  ;;  %v5696_v50 = vcombine.low %v1672_v39, %v1676_v23  ;;  %v1708_v39 = vld [vmem:[%s9670_s5 + $0x3b0] sm:$0xff] }
 0x259   : > { %3856 = vmatprep.subr.bf16.mxu0 %v5659_v13  ;;  %v5688_v13 = vcombine.low %v1664_v17, %v1668_v14  ;;  %v1700_v17 = vld [vmem:[%s9670_s5 + $0x370] sm:$0xff] }
 0x25a   : > { %3631 = vmatpush1.bf16.msra.mxu1 %v5656_v5  ;;  %v1673_v5 = vld [vmem:[%s9670_s5 + $0x298] sm:$0xff] }
 0x25b   : > { %3632 = vmatprep.subr.bf16.mxu1 %v5665_v38  ;;  %v5690_v38 = vcombine.low %v1665_v52, %v1669_v18  ;;  %v5698_v30 = vcombine.low %v1673_v5, %v1677_v56  ;;  %v1701_v52 = vld [vmem:[%s9670_s5 + $0x378] sm:$0xff] }
 0x25c   : > { %3857 = vmatpush1.bf16.msra.mxu0 %v5658_v9  ;;  %v5699_v9 = vcombine.high %v1673_v5, %v1677_v56  ;;  %v1709_v5 = vld [vmem:[%s9670_s5 + $0x3b8] sm:$0xff] }
 0x25d   : > { %3344 = vmatmul.mubr.bf16.gmra.mrb[44].mxu1 %v7904_v33  ;;  %3858 = vmatprep.subr.bf16.mxu0 %v5667_v22  ;;  %v1680_v22 = vld [vmem:[%s9670_s5 + $0x2d0] sm:$0xff] }
 0x25e   : > { %3633 = vmatpush1.bf16.msra.mxu1 %v5664_v42  ;;  %3353 = vmatprep.mubr.bf16.mxu1 %v7964_v45  ;;  %v1681_v42 = vld [vmem:[%s9670_s5 + $0x2d8] sm:$0xff] }
 0x25f   : > { %3570 = vmatmul.mubr.bf16.gmra.mrb[76].mxu0 %v7904_v33  ;;  %3634 = vmatprep.subr.bf16.mxu1 %v5673_v62  ;;  %v1688_v62 = vld [vmem:[%s9670_s5 + $0x310] sm:$0xff]  ;;  %v5707_v44 = vcombine.high %v1681_v42, %v1685_v21 }
 0x260   : > { %3579 = vmatprep.mubr.bf16.mxu0 %v7964_v45  ;;  %3859 = vmatpush1.bf16.msra.mxu0 %v5666_v8  ;;  %v5705_v8 = vcombine.high %v1680_v22, %v1684_v58  ;;  %v5713_v10 = vcombine.high %v1688_v62, %v1692_v43  ;;  %v5712_v14 = vcombine.low %v1688_v62, %v1692_v43  ;;  %v1724_v62 = vld [vmem:[%s9670_s5 + $0x430] sm:$0xff] }
 0x261   : > { %3860 = vmatprep.subr.bf16.mxu0 %v5675_v26  ;;  %v5704_v26 = vcombine.low %v1680_v22, %v1684_v58  ;;  %v1716_v22 = vld [vmem:[%s9670_s5 + $0x3f0] sm:$0xff] }
 0x262   : > { %3635 = vmatpush1.bf16.msra.mxu1 %v5672_v49  ;;  %v1689_v49 = vld [vmem:[%s9670_s5 + $0x318] sm:$0xff] }
 0x263   : > { %3636 = vmatprep.subr.bf16.mxu1 %v5681_v51  ;;  %v5706_v51 = vcombine.low %v1681_v42, %v1685_v21  ;;  %v5714_v18 = vcombine.low %v1689_v49, %v1693_v55  ;;  %v1717_v42 = vld [vmem:[%s9670_s5 + $0x3f8] sm:$0xff] }
 0x264   : > { %3861 = vmatpush1.bf16.msra.mxu0 %v5674_v1  ;;  %v5715_v1 = vcombine.high %v1689_v49, %v1693_v55  ;;  %v1725_v49 = vld [vmem:[%s9670_s5 + $0x438] sm:$0xff] }
 0x265   : > { %3354 = vmatmul.mubr.bf16.gmra.mrb[48].mxu1 %v7947_v11  ;;  %3862 = vmatprep.subr.bf16.mxu0 %v5683_v63  ;;  %v1696_v63 = vld [vmem:[%s9670_s5 + $0x350] sm:$0xff] }
 0x266   : > { %3637 = vmatpush1.bf16.msra.mxu1 %v5680_v41  ;;  %3363 = vmatprep.mubr.bf16.mxu1 %v8009_v35  ;;  %v1697_v41 = vld [vmem:[%s9670_s5 + $0x358] sm:$0xff] }
 0x267   : > { %3580 = vmatmul.mubr.bf16.gmra.mrb[80].mxu0 %v7947_v11  ;;  %3638 = vmatprep.subr.bf16.mxu1 %v5689_v28  ;;  %v1704_v28 = vld [vmem:[%s9670_s5 + $0x390] sm:$0xff]  ;;  %v5723_v23 = vcombine.high %v1697_v41, %v1701_v52 }
 0x268   : > { %3589 = vmatprep.mubr.bf16.mxu0 %v8009_v35  ;;  %3863 = vmatpush1.bf16.msra.mxu0 %v5682_v16  ;;  %v5721_v16 = vcombine.high %v1696_v63, %v1700_v17  ;;  %v5729_v56 = vcombine.high %v1704_v28, %v1708_v39  ;;  %v5728_v58 = vcombine.low %v1704_v28, %v1708_v39 }
 0x269   : > { %3864 = vmatprep.subr.bf16.mxu0 %v5691_v24  ;;  %v5720_v24 = vcombine.low %v1696_v63, %v1700_v17 }
 0x26a   : > { %3639 = vmatpush1.bf16.msra.mxu1 %v5688_v13  ;;  %v1705_v13 = vld [vmem:[%s9670_s5 + $0x398] sm:$0xff] }
 0x26b   : > { %3640 = vmatprep.subr.bf16.mxu1 %v5697_v36  ;;  %v5722_v36 = vcombine.low %v1697_v41, %v1701_v52  ;;  %v5730_v21 = vcombine.low %v1705_v13, %v1709_v5 }
 0x26c   : > { %3865 = vmatpush1.bf16.msra.mxu0 %v5690_v38  ;;  %v5731_v38 = vcombine.high %v1705_v13, %v1709_v5 }
 0x26d   : > { %3364 = vmatmul.mubr.bf16.gmra.mrb[52].mxu1 %v7995_v53  ;;  %3866 = vmatprep.subr.bf16.mxu0 %v5699_v9  ;;  %v1712_v9 = vld [vmem:[%s9670_s5 + $0x3d0] sm:$0xff] }
 0x26e   : > { %3641 = vmatpush1.bf16.msra.mxu1 %v5696_v50  ;;  %3373 = vmatprep.mubr.bf16.mxu1 %v8062_v3  ;;  %v1713_v50 = vld [vmem:[%s9670_s5 + $0x3d8] sm:$0xff] }
 0x26f   : > { %3590 = vmatmul.mubr.bf16.gmra.mrb[84].mxu0 %v7995_v53  ;;  %3642 = vmatprep.subr.bf16.mxu1 %v5705_v8  ;;  %v1720_v8 = vld [vmem:[%s9670_s5 + $0x410] sm:$0xff]  ;;  %v5739_v43 = vcombine.high %v1713_v50, %v1717_v42 }
 0x270   : > { %3599 = vmatprep.mubr.bf16.mxu0 %v8062_v3  ;;  %3867 = vmatpush1.bf16.msra.mxu0 %v5698_v30  ;;  %v5737_v30 = vcombine.high %v1712_v9, %v1716_v22  ;;  %v5745_v55 = vcombine.high %v1720_v8, %v1724_v62  ;;  %v5744_v17 = vcombine.low %v1720_v8, %v1724_v62  ;;  %v1753_v8 = vld [vmem:[%s9670_s5 + $0x518] sm:$0xff] }
 0x271   : > { %3868 = vmatprep.subr.bf16.mxu0 %v5707_v44  ;;  %v5736_v44 = vcombine.low %v1712_v9, %v1716_v22  ;;  %v1757_v62 = vld [vmem:[%s9670_s5 + $0x538] sm:$0xff] }
 0x272   : > { %3643 = vmatpush1.bf16.msra.mxu1 %v5704_v26  ;;  %v1721_v26 = vld [vmem:[%s9670_s5 + $0x418] sm:$0xff] }
 0x273   : > { %3644 = vmatprep.subr.bf16.mxu1 %v5713_v10  ;;  %v5738_v10 = vcombine.low %v1713_v50, %v1717_v42  ;;  %v5747_v63 = vcombine.high %v1721_v26, %v1725_v49  ;;  %v5746_v52 = vcombine.low %v1721_v26, %v1725_v49  ;;  %v1752_v50 = vld [vmem:[%s9670_s5 + $0x510] sm:$0xff] }
 0x274   : > { %3869 = vmatpush1.bf16.msra.mxu0 %v5706_v51  ;;  %v1728_v51 = vld [vmem:[%s9670_s5 + $0x450] sm:$0xff] }
 0x275   : > { %3374 = vmatmul.mubr.bf16.gmra.mrb[56].mxu1 %v8045_v57  ;;  %3870 = vmatprep.subr.bf16.mxu0 %v5715_v1  ;;  %v1732_v1 = vld [vmem:[%s9670_s5 + $0x470] sm:$0xff] }
 0x276   : > { %3645 = vmatpush1.bf16.msra.mxu1 %v5712_v14  ;;  %3383 = vmatprep.mubr.bf16.mxu1 %v8127_v31  ;;  %v1733_v14 = vld [vmem:[%s9670_s5 + $0x478] sm:$0xff]  ;;  %v5753_v41 = vcombine.high %v1728_v51, %v1732_v1  ;;  %v5752_v39 = vcombine.low %v1728_v51, %v1732_v1  ;;  %v1756_v42 = vld [vmem:[%s9670_s5 + $0x530] sm:$0xff]  ;;  %v5778_v1 = vcombine.low %v1753_v8, %v1757_v62 }
 0x277   : > { %3600 = vmatmul.mubr.bf16.gmra.mrb[88].mxu0 %v8045_v57  ;;  %3646 = vmatprep.subr.bf16.mxu1 %v5721_v16  ;;  %v1740_v16 = vld [vmem:[%s9670_s5 + $0x4b0] sm:$0xff] }
 0x278   : > { %3609 = vmatprep.mubr.bf16.mxu0 %v8127_v31  ;;  %3871 = vmatpush1.bf16.msra.mxu0 %v5714_v18  ;;  %v1736_v18 = vld [vmem:[%s9670_s5 + $0x490] sm:$0xff] }
 0x279   : > { %3872 = vmatprep.subr.bf16.mxu0 %v5723_v23  ;;  %v1737_v23 = vld [vmem:[%s9670_s5 + $0x498] sm:$0xff]  ;;  %v5761_v13 = vcombine.high %v1736_v18, %v1740_v16  ;;  %v5760_v9 = vcombine.low %v1736_v18, %v1740_v16  ;;  %v1760_v26 = vld [vmem:[%s9670_s5 + $0x550] sm:$0xff] }
 0x27a   : > { %3647 = vmatpush1.bf16.msra.mxu1 %v5720_v24  ;;  %v1741_v24 = vld [vmem:[%s9670_s5 + $0x4b8] sm:$0xff]  ;;  %v1764_v49 = vld [vmem:[%s9670_s5 + $0x570] sm:$0xff] }
 0x27b   : > { %3648 = vmatprep.subr.bf16.mxu1 %v5729_v56  ;;  %v1744_v56 = vld [vmem:[%s9670_s5 + $0x4d0] sm:$0xff]  ;;  %v5785_v51 = vcombine.high %v1760_v26, %v1764_v49 }
 0x27c   : > { %3873 = vmatpush1.bf16.msra.mxu0 %v5722_v36  ;;  %v1748_v36 = vld [vmem:[%s9670_s5 + $0x4f0] sm:$0xff] }
 0x27d   : > { %3384 = vmatmul.mubr.bf16.gmra.mrb[60].mxu1 %v8107_v6  ;;  %3874 = vmatprep.subr.bf16.mxu0 %v5731_v38  ;;  %v5763_v38 = vcombine.high %v1737_v23, %v1741_v24  ;;  %v5769_v22 = vcombine.high %v1744_v56, %v1748_v36 }
 0x27e   : > { %3649 = vmatpush1.bf16.msra.mxu1 %v5728_v58  ;;  %3652 = vmatprep.mubr.bf16.mxu1 %v7772_v60  ;;  %v5762_v58 = vcombine.low %v1737_v23, %v1741_v24 }
 0x27f   : > { %3610 = vmatmul.mubr.bf16.gmra.mrb[92].mxu0 %v8107_v6  ;;  %3650 = vmatprep.subr.bf16.mxu1 %v5737_v30  ;;  %v5768_v30 = vcombine.low %v1744_v56, %v1748_v36  ;;  %v1784_v56 = vld [vmem:[%s9670_s5 + $0x610] sm:$0xff] }
 0x280   : > { %3878 = vmatprep.mubr.bf16.mxu0 %v7772_v60  ;;  %3875 = vmatpush1.bf16.msra.mxu0 %v5730_v21  ;;  %v1729_v60 = vld [vmem:[%s9670_s5 + $0x458] sm:$0xff]  ;;  %v1788_v36 = vld [vmem:[%s9670_s5 + $0x630] sm:$0xff] }
 0x281   : > { %3876 = vmatprep.subr.bf16.mxu0 %v5739_v43  ;;  %v5755_v28 = vcombine.high %v1729_v60, %v1733_v14  ;;  %v5754_v5 = vcombine.low %v1729_v60, %v1733_v14  ;;  %v5777_v43 = vcombine.high %v1752_v50, %v1756_v42  ;;  %v5784_v14 = vcombine.low %v1760_v26, %v1764_v49 }
 0x282   : > { %3651 = vmatpush1.bf16.msra.mxu1 %v5736_v44 }
 0x283   : > { %3733 = vmatprep.subr.bf16.mxu1 %v5745_v55  ;;  %v5779_v55 = vcombine.high %v1753_v8, %v1757_v62 }
 0x284   : > { %3877 = vmatpush1.bf16.msra.mxu0 %v5738_v10  ;;  %v5776_v10 = vcombine.low %v1752_v50, %v1756_v42  ;;  %v1792_v50 = vld [vmem:[%s9670_s5 + $0x650] sm:$0xff] }
 0x285   : > { %3653 = vmatmul.mubr.bf16.vlgmr.msra.gmra.mrb[64].mxu1 %v7768_v54  ;;  %3959 = vmatprep.subr.bf16.mxu0 %v5747_v63  ;;  %v1768_v63 = vld [vmem:[%s9670_s5 + $0x590] sm:$0xff] }
 0x286   : > { %3734 = vmatpush1.bf16.msra.mxu1 %v5744_v17  ;;  %3662 = vmatprep.mubr.bf16.mxu1 %v7819_v15  ;;  %v1772_v17 = vld [vmem:[%s9670_s5 + $0x5b0] sm:$0xff] }
 0x287   : > { %3879 = vmatmul.mubr.bf16.vlgmr.msra.gmra.mrb[96].mxu0 %v7768_v54  ;;  %3735 = vmatprep.subr.bf16.mxu1 %v5753_v41  ;;  %v1745_v54 = vld [vmem:[%s9670_s5 + $0x4d8] sm:$0xff]  ;;  %v5793_v18 = vcombine.high %v1768_v63, %v1772_v17  ;;  %v5792_v24 = vcombine.low %v1768_v63, %v1772_v17  ;;  %v1796_v42 = vld [vmem:[%s9670_s5 + $0x670] sm:$0xff] }
 0x288   : > { %3888 = vmatprep.mubr.bf16.mxu0 %v7819_v15  ;;  %3960 = vmatpush1.bf16.msra.mxu0 %v5746_v52  ;;  %v1749_v15 = vld [vmem:[%s9670_s5 + $0x4f8] sm:$0xff]  ;;  %v5817_v8 = vcombine.high %v1792_v50, %v1796_v42  ;;  %v5816_v49 = vcombine.low %v1792_v50, %v1796_v42 }
 0x289   : > { %3961 = vmatprep.subr.bf16.mxu0 %v5755_v28  ;;  %v5771_v21 = vcombine.high %v1745_v54, %v1749_v15  ;;  %v5770_v44 = vcombine.low %v1745_v54, %v1749_v15  ;;  %v1769_v41 = vld [vmem:[%s9670_s5 + $0x598] sm:$0xff]  ;;  %v1776_v28 = vld [vmem:[%s9670_s5 + $0x5d0] sm:$0xff] }
 0x28a   : > { %3736 = vmatpush1.bf16.msra.mxu1 %v5752_v39  ;;  %v1773_v52 = vld [vmem:[%s9670_s5 + $0x5b8] sm:$0xff]  ;;  %v1780_v39 = vld [vmem:[%s9670_s5 + $0x5f0] sm:$0xff] }
 0x28b   : > { %3737 = vmatprep.subr.bf16.mxu1 %v5761_v13  ;;  %v5795_v23 = vcombine.high %v1769_v41, %v1773_v52  ;;  %v5801_v13 = vcombine.high %v1776_v28, %v1780_v39  ;;  %v1785_v54 = vld [vmem:[%s9670_s5 + $0x618] sm:$0xff] }
 0x28c   : > { %3962 = vmatpush1.bf16.msra.mxu0 %v5754_v5  ;;  %v5794_v5 = vcombine.low %v1769_v41, %v1773_v52  ;;  %v1789_v15 = vld [vmem:[%s9670_s5 + $0x638] sm:$0xff]  ;;  %v1816_v41 = vld [vmem:[%s9670_s5 + $0x710] sm:$0xff] }
 0x28d   : > { %3663 = vmatmul.mubr.bf16.gmra.mrb[68].mxu1 %v7801_v47  ;;  %3963 = vmatprep.subr.bf16.mxu0 %v5763_v38  ;;  %v5810_v62 = vcombine.low %v1785_v54, %v1789_v15  ;;  %v1820_v52 = vld [vmem:[%s9670_s5 + $0x730] sm:$0xff]  ;;  %v1833_v50 = vld [vmem:[%s9670_s5 + $0x798] sm:$0xff] }
 0x28e   : > { %3738 = vmatpush1.bf16.msra.mxu1 %v5760_v9  ;;  %3672 = vmatprep.mubr.bf16.mxu1 %v7860_v4  ;;  %v5800_v9 = vcombine.low %v1776_v28, %v1780_v39  ;;  %v1817_v39 = vld [vmem:[%s9670_s5 + $0x718] sm:$0xff] }
 0x28f   : > { %3889 = vmatmul.mubr.bf16.gmra.mrb[100].mxu0 %v7801_v47  ;;  %3739 = vmatprep.subr.bf16.mxu1 %v5769_v22  ;;  %v1761_v47 = vld [vmem:[%s9670_s5 + $0x558] sm:$0xff]  ;;  %v5809_v22 = vcombine.high %v1784_v56, %v1788_v36 }
 0x290   : > { %3898 = vmatprep.mubr.bf16.mxu0 %v7860_v4  ;;  %3964 = vmatpush1.bf16.msra.mxu0 %v5762_v58  ;;  %v1765_v4 = vld [vmem:[%s9670_s5 + $0x578] sm:$0xff] }
 0x291   : > { %3965 = vmatprep.subr.bf16.mxu0 %v5771_v21  ;;  %v5787_v60 = vcombine.high %v1761_v47, %v1765_v4  ;;  %v5786_v16 = vcombine.low %v1761_v47, %v1765_v4  ;;  %v5811_v21 = vcombine.high %v1785_v54, %v1789_v15  ;;  %v1832_v54 = vld [vmem:[%s9670_s5 + $0x790] sm:$0xff]  ;;  %v1837_v42 = vld [vmem:[%s9670_s5 + $0x7b8] sm:$0xff] }
 0x292   : > { %3740 = vmatpush1.bf16.msra.mxu1 %v5768_v30  ;;  %v5808_v30 = vcombine.low %v1784_v56, %v1788_v36  ;;  %v5840_v56 = vcombine.low %v1816_v41, %v1820_v52  ;;  %v1825_v36 = vld [vmem:[%s9670_s5 + $0x758] sm:$0xff]  ;;  %v1836_v15 = vld [vmem:[%s9670_s5 + $0x7b0] sm:$0xff] }
 0x293   : > { %3741 = vmatprep.subr.bf16.mxu1 %v5777_v43  ;;  %v1800_v43 = vld [vmem:[%s9670_s5 + $0x690] sm:$0xff] }
 0x294   : > { %3966 = vmatpush1.bf16.msra.mxu0 %v5770_v44  ;;  %v1804_v44 = vld [vmem:[%s9670_s5 + $0x6b0] sm:$0xff] }
 0x295   : > { %3673 = vmatmul.mubr.bf16.gmra.mrb[72].mxu1 %v7851_v20  ;;  %3967 = vmatprep.subr.bf16.mxu0 %v5779_v55  ;;  %v1801_v55 = vld [vmem:[%s9670_s5 + $0x698] sm:$0xff]  ;;  %v5825_v47 = vcombine.high %v1800_v43, %v1804_v44  ;;  %v5824_v17 = vcombine.low %v1800_v43, %v1804_v44  ;;  %v5858_v44 = vcombine.low %v1833_v50, %v1837_v42 }
 0x296   : > { %3742 = vmatpush1.bf16.msra.mxu1 %v5776_v10  ;;  %3682 = vmatprep.mubr.bf16.mxu1 %v7906_v7  ;;  %v1805_v10 = vld [vmem:[%s9670_s5 + $0x6b8] sm:$0xff] }
 0x297   : > { %3899 = vmatmul.mubr.bf16.gmra.mrb[104].mxu0 %v7851_v20  ;;  %3743 = vmatprep.subr.bf16.mxu1 %v5785_v51  ;;  %v1777_v20 = vld [vmem:[%s9670_s5 + $0x5d8] sm:$0xff]  ;;  %v1808_v51 = vld [vmem:[%s9670_s5 + $0x6d0] sm:$0xff]  ;;  %v5827_v63 = vcombine.high %v1801_v55, %v1805_v10 }
 0x298   : > { %3908 = vmatprep.mubr.bf16.mxu0 %v7906_v7  ;;  %3968 = vmatpush1.bf16.msra.mxu0 %v5778_v1  ;;  %v1781_v7 = vld [vmem:[%s9670_s5 + $0x5f8] sm:$0xff]  ;;  %v1812_v1 = vld [vmem:[%s9670_s5 + $0x6f0] sm:$0xff] }
 0x299   : > { %3969 = vmatprep.subr.bf16.mxu0 %v5787_v60  ;;  %v5803_v38 = vcombine.high %v1777_v20, %v1781_v7  ;;  %v5802_v58 = vcombine.low %v1777_v20, %v1781_v7  ;;  %v5833_v60 = vcombine.high %v1808_v51, %v1812_v1  ;;  %v5832_v28 = vcombine.low %v1808_v51, %v1812_v1  ;;  %v1824_v7 = vld [vmem:[%s9670_s5 + $0x750] sm:$0xff]  ;;  %v6605_v51 = vld [vmem:[%s9672_s7 + $0xc8] sm:$0xff]  }
 0x29a   : > { %3744 = vmatpush1.bf16.msra.mxu1 %v5784_v14  ;;  %v5826_v14 = vcombine.low %v1801_v55, %v1805_v10  ;;  %v6600_v55 = vld [vmem:[%s9672_s7 + $0x40] sm:$0xff]   ;;  %v6606_v1 = vld [vmem:[%s9672_s7 + $0x8] sm:$0xff]  }
 0x29b   : > { %3745 = vmatprep.subr.bf16.mxu1 %v5793_v18  ;;  %v9847_v18 = vld [vmem:[#allocation5_spill] sm:$0xff] }
 0x29c   : > { %3970 = vmatpush1.bf16.msra.mxu0 %v5786_v16 }
 0x29d   : > { %3683 = vmatmul.mubr.bf16.gmra.mrb[76].mxu1 %v7902_v32  ;;  %3971 = vmatprep.subr.bf16.mxu0 %v5795_v23  ;;  %v1821_v23 = vld [vmem:[%s9670_s5 + $0x738] sm:$0xff] }
 0x29e   : > { %3746 = vmatpush1.bf16.msra.mxu1 %v5792_v24  ;;  %3692 = vmatprep.mubr.bf16.mxu1 %v7957_v2  ;;  %v5841_v24 = vcombine.high %v1816_v41, %v1820_v52  ;;  %v6616_v41 = vld [vmem:[%s9672_s7 + $0x60] sm:$0xff]   ;;  %v6615_v52 = vld [vmem:[%s9672_s7 + $0x98] sm:$0xff]  }
 0x29f   : > { %3909 = vmatmul.mubr.bf16.gmra.mrb[108].mxu0 %v7902_v32  ;;  %3747 = vmatprep.subr.bf16.mxu1 %v5801_v13  ;;  %v1793_v32 = vld [vmem:[%s9670_s5 + $0x658] sm:$0xff]  ;;  %v1828_v13 = vld [vmem:[%s9670_s5 + $0x770] sm:$0xff] }
 0x2a0   : > { %3918 = vmatprep.mubr.bf16.mxu0 %v7957_v2  ;;  %3972 = vmatpush1.bf16.msra.mxu0 %v5794_v5  ;;  %v1797_v2 = vld [vmem:[%s9670_s5 + $0x678] sm:$0xff]  ;;  %v5843_v5 = vcombine.high %v1817_v39, %v1821_v23 }
 0x2a1   : > { %3973 = vmatprep.subr.bf16.mxu0 %v5803_v38  ;;  %v5819_v26 = vcombine.high %v1793_v32, %v1797_v2  ;;  %v5818_v4 = vcombine.low %v1793_v32, %v1797_v2  ;;  %v5849_v38 = vcombine.high %v1824_v7, %v1828_v13  ;;  %v1840_v32 = vld [vmem:[%s9670_s5 + $0x7d0] sm:$0xff] }
 0x2a2   : > { %3748 = vmatpush1.bf16.msra.mxu1 %v5800_v9  ;;  %v5842_v9 = vcombine.low %v1817_v39, %v1821_v23  ;;  %v1844_v2 = vld [vmem:[%s9670_s5 + $0x7f0] sm:$0xff]  ;;  %v6622_v39 = vld [vmem:[%s9672_s7 + $0x28] sm:$0xff]  }
 0x2a3   : > { %3749 = vmatprep.subr.bf16.mxu1 %v5809_v22  ;;  %v5865_v43 = vcombine.high %v1840_v32, %v1844_v2  ;;  %v6624_v23 = vld [vmem:[%s9672_s7 + $0x70] sm:$0xff]  }
 0x2a4   : > { %3974 = vmatpush1.bf16.msra.mxu0 %v5802_v58  ;;  %v5848_v58 = vcombine.low %v1824_v7, %v1828_v13  ;;  %v6627_v7 = vld [vmem:[%s9672_s7 + $0xb0] sm:$0xff]   ;;  %v6629_v13 = vld [vmem:[%s9672_s7 + $0xf8] sm:$0xff]  }
 0x2a5   : > { %3693 = vmatmul.mubr.bf16.gmra.mrb[80].mxu1 %v7942_v46  ;;  %3975 = vmatprep.subr.bf16.mxu0 %v5811_v21  ;;  %v5857_v21 = vcombine.high %v1832_v54, %v1836_v15 }
 0x2a6   : > { %3750 = vmatpush1.bf16.msra.mxu1 %v5808_v30  ;;  %3702 = vmatprep.mubr.bf16.mxu1 %v8003_v19 }
 0x2a7   : > { %3919 = vmatmul.mubr.bf16.gmra.mrb[112].mxu0 %v7942_v46  ;;  %3751 = vmatprep.subr.bf16.mxu1 %v5817_v8  ;;  %v1809_v46 = vld [vmem:[%s9670_s5 + $0x6d8] sm:$0xff]  ;;  %v5859_v8 = vcombine.high %v1833_v50, %v1837_v42 }
 0x2a8   : > { %3928 = vmatprep.mubr.bf16.mxu0 %v8003_v19  ;;  %3976 = vmatpush1.bf16.msra.mxu0 %v5810_v62  ;;  %v1813_v19 = vld [vmem:[%s9670_s5 + $0x6f8] sm:$0xff]  ;;  %v5856_v62 = vcombine.low %v1832_v54, %v1836_v15 }
 0x2a9   : > { %3977 = vmatprep.subr.bf16.mxu0 %v5819_v26  ;;  %v5835_v16 = vcombine.high %v1809_v46, %v1813_v19  ;;  %v5834_v20 = vcombine.low %v1809_v46, %v1813_v19  ;;  %v6609_v46 = vld [vmem:[%s9672_s7 + $0xd0] sm:$0xff]  }
 0x2aa   : > { %3752 = vmatpush1.bf16.msra.mxu1 %v5816_v49  ;;  %v5864_v49 = vcombine.low %v1840_v32, %v1844_v2  ;;  %v6611_v19 = vld [vmem:[%s9672_s7 + $0x90] sm:$0xff]  }
 0x2ab   : > { %3753 = vmatprep.subr.bf16.mxu1 %v5825_v47  ;;  %v6601_v47 = vld [vmem:[%s9672_s7 + $0xc0] sm:$0xff]  }
 0x2ac   : > { %3978 = vmatpush1.bf16.msra.mxu0 %v5818_v4  ;;  %v6602_v4 = vld [vmem:[%s9672_s7] sm:$0xff]  }
 0x2ad   : > { %3703 = vmatmul.mubr.bf16.gmra.mrb[84].mxu1 %v9847_v18  ;;  %3979 = vmatprep.subr.bf16.mxu0 %v5827_v63  ;;  %v6608_v63 = vld [vmem:[%s9672_s7 + $0x50] sm:$0xff]  }
 0x2ae   : > { %3754 = vmatpush1.bf16.msra.mxu1 %v5824_v17  ;;  %3712 = vmatprep.mubr.bf16.mxu1 %v8047_v0  ;;  %v6607_v17 = vld [vmem:[%s9672_s7 + $0x88] sm:$0xff]  }
 0x2af   : > { %3929 = vmatmul.mubr.bf16.gmra.mrb[116].mxu0 %v9847_v18  ;;  %3755 = vmatprep.subr.bf16.mxu1 %v5833_v60  ;;  %v6613_v60 = vld [vmem:[%s9672_s7 + $0xd8] sm:$0xff]   ;;  %v6617_v18 = vld [vmem:[%s9672_s7 + $0xe0] sm:$0xff]  }
 0x2b0   : > { %3938 = vmatprep.mubr.bf16.mxu0 %v8047_v0  ;;  %3980 = vmatpush1.bf16.msra.mxu0 %v5826_v14  ;;  %v1829_v0 = vld [vmem:[%s9670_s5 + $0x778] sm:$0xff] }
 0x2b1   : > { %3981 = vmatprep.subr.bf16.mxu0 %v5835_v16  ;;  %v5851_v22 = vcombine.high %v1825_v36, %v1829_v0  ;;  %v5850_v30 = vcombine.low %v1825_v36, %v1829_v0  ;;  %v6614_v14 = vld [vmem:[%s9672_s7 + $0x18] sm:$0xff]   ;;  %v6619_v16 = vld [vmem:[%s9672_s7 + $0xa0] sm:$0xff]  }
 0x2b2   : > { %3756 = vmatpush1.bf16.msra.mxu1 %v5832_v28  ;;  %v6621_v28 = vld [vmem:[%s9672_s7 + $0xe8] sm:$0xff]  }
 0x2b3   : > { %3757 = vmatprep.subr.bf16.mxu1 %v5841_v24  ;;  %v6623_v24 = vld [vmem:[%s9672_s7 + $0xa8] sm:$0xff]  }
 0x2b4   : > { %3982 = vmatpush1.bf16.msra.mxu0 %v5834_v20  ;;  %v6625_v20 = vld [vmem:[%s9672_s7 + $0xf0] sm:$0xff]  }
 0x2b5   : > { %3713 = vmatmul.mubr.bf16.gmra.mrb[88].mxu1 %v8041_v27  ;;  %3983 = vmatprep.subr.bf16.mxu0 %v5843_v5  ;;  %v6630_v5 = vld [vmem:[%s9672_s7 + $0x38] sm:$0xff]  }
 0x2b6   : > { %3758 = vmatpush1.bf16.msra.mxu1 %v5840_v56  ;;  %3722 = vmatprep.mubr.bf16.mxu1 %v8116_v29  ;;  %v6631_v56 = vld [vmem:[%s9672_s7 + $0xb8] sm:$0xff]  }
 0x2b7   : > { %3939 = vmatmul.mubr.bf16.gmra.mrb[120].mxu0 %v8041_v27  ;;  %3759 = vmatprep.subr.bf16.mxu1 %v5849_v38  ;;  %v1841_v27 = vld [vmem:[%s9670_s5 + $0x7d8] sm:$0xff] }
 0x2b8   : > { %3948 = vmatprep.mubr.bf16.mxu0 %v8116_v29  ;;  %3984 = vmatpush1.bf16.msra.mxu0 %v5842_v9  ;;  %v1845_v29 = vld [vmem:[%s9670_s5 + $0x7f8] sm:$0xff] }
 0x2b9   : > { %3985 = vmatprep.subr.bf16.mxu0 %v5851_v22  ;;  %v5867_v26 = vcombine.high %v1841_v27, %v1845_v29  ;;  %v5866_v10 = vcombine.low %v1841_v27, %v1845_v29 }
 0x2ba   : > { %3760 = vmatpush1.bf16.msra.mxu1 %v5848_v58 }
 0x2bb   : > { %3761 = vmatprep.subr.bf16.mxu1 %v5857_v21 }
 0x2bc   : > { %3986 = vmatpush1.bf16.msra.mxu0 %v5850_v30 }
 0x2bd   : > { %3723 = vmatmul.mubr.bf16.gmra.mrb[92].mxu1 %v8105_v40  ;;  %3987 = vmatprep.subr.bf16.mxu0 %v5859_v8 }
 0x2be   : > { %3762 = vmatpush1.bf16.msra.mxu1 %v5856_v62  ;;  %3765 = vmatprep.mubr.bf16.mxu1 %v7774_v59 }
 0x2bf   : > { %3949 = vmatmul.mubr.bf16.gmra.mrb[124].mxu0 %v8105_v40  ;;  %3763 = vmatprep.subr.bf16.mxu1 %v5865_v43  ;;  %v6604_v40 = vld [vmem:[%s9672_s7 + $0x48] sm:$0xff]  }
 0x2c0   : > { %3988 = vmatpush1.bf16.msra.mxu0 %v5858_v44  ;;  %3991 = vmatprep.mubr.bf16.mxu0 %v7774_v59  ;;  %v6603_v59 = vld [vmem:[%s9672_s7 + $0x80] sm:$0xff]  }
 0x2c1   : > { %3989 = vmatprep.subr.bf16.mxu0 %v5867_v26 }
 0x2c2   : > { %3764 = vmatpush1.bf16.msra.mxu1 %v5864_v49 }
 0x2c3   : > { %5935 = vmatprep.subr.bf16.mxu1 %v6600_v55 }
 0x2c4   : > { %3990 = vmatpush1.bf16.msra.mxu0 %v5866_v10 }
 0x2c5   : > { %3766 = vmatmul.mubr.bf16.vlgmr.msra.gmra.mrb[64].mxu1 %v7770_v37  ;;  %5999 = vmatprep.subr.bf16.mxu0 %v6601_v47 }
 0x2c6   : > { %3775 = vmatprep.mubr.bf16.mxu1 %v7823_v12  ;;  %5936 = vmatpush3.bf16.msra.mxu1 %v6602_v4 }
 0x2c7   : > { %3992 = vmatmul.mubr.bf16.vlgmr.msra.gmra.mrb[96].mxu0 %v7770_v37  ;;  %5937 = vmatprep.subr.bf16.mxu1 %v6604_v40  ;;  %v6610_v37 = vld [vmem:[%s9672_s7 + $0x10] sm:$0xff]  }
 0x2c8   : > { %4001 = vmatprep.mubr.bf16.mxu0 %v7823_v12  ;;  %6000 = vmatpush3.bf16.msra.mxu0 %v6603_v59  ;;  %v6612_v12 = vld [vmem:[%s9672_s7 + $0x58] sm:$0xff]  }
 0x2c9   : > { %6001 = vmatprep.subr.bf16.mxu0 %v6605_v51 }
 0x2ca   : > { %5938 = vmatpush3.bf16.msra.mxu1 %v6606_v1 }
 0x2cb   : > { %5939 = vmatprep.subr.bf16.mxu1 %v6608_v63 }
 0x2cc   : > { %6002 = vmatpush3.bf16.msra.mxu0 %v6607_v17 }
 0x2cd   : > { %3776 = vmatmul.mubr.bf16.gmra.mrb[68].mxu1 %v7805_v61  ;;  %6003 = vmatprep.subr.bf16.mxu0 %v6609_v46 }
 0x2ce   : > { %3785 = vmatprep.mubr.bf16.mxu1 %v7862_v48  ;;  %5940 = vmatpush3.bf16.msra.mxu1 %v6610_v37 }
 0x2cf   : > { %4002 = vmatmul.mubr.bf16.gmra.mrb[100].mxu0 %v7805_v61  ;;  %5941 = vmatprep.subr.bf16.mxu1 %v6612_v12  ;;  %v6618_v61 = vld [vmem:[%s9672_s7 + $0x20] sm:$0xff]  }
 0x2d0   : > { %4011 = vmatprep.mubr.bf16.mxu0 %v7862_v48  ;;  %6004 = vmatpush3.bf16.msra.mxu0 %v6611_v19  ;;  %v6620_v48 = vld [vmem:[%s9672_s7 + $0x68] sm:$0xff]  }
 0x2d1   : > { %6005 = vmatprep.subr.bf16.mxu0 %v6613_v60 }
 0x2d2   : > { %5942 = vmatpush3.bf16.msra.mxu1 %v6614_v14 }
 0x2d3   : > { %5943 = vmatprep.subr.bf16.mxu1 %v6616_v41 }
 0x2d4   : > { %6006 = vmatpush3.bf16.msra.mxu0 %v6615_v52 }
 0x2d5   : > { %3786 = vmatmul.mubr.bf16.gmra.mrb[72].mxu1 %v7856_v34  ;;  %6007 = vmatprep.subr.bf16.mxu0 %v6617_v18 }
 0x2d6   : > { %3795 = vmatprep.mubr.bf16.mxu1 %v7922_v25  ;;  %5944 = vmatpush3.bf16.msra.mxu1 %v6618_v61 }
 0x2d7   : > { %4012 = vmatmul.mubr.bf16.gmra.mrb[104].mxu0 %v7856_v34  ;;  %5945 = vmatprep.subr.bf16.mxu1 %v6620_v48  ;;  %v6626_v34 = vld [vmem:[%s9672_s7 + $0x30] sm:$0xff]  }
 0x2d8   : > { %4021 = vmatprep.mubr.bf16.mxu0 %v7922_v25  ;;  %6008 = vmatpush3.bf16.msra.mxu0 %v6619_v16  ;;  %v6628_v25 = vld [vmem:[%s9672_s7 + $0x78] sm:$0xff]  }
 0x2d9   : > { %6009 = vmatprep.subr.bf16.mxu0 %v6621_v28 }
 0x2da   : > { %5946 = vmatpush3.bf16.msra.mxu1 %v6622_v39 }
 0x2db   : > { %5947 = vmatprep.subr.bf16.mxu1 %v6624_v23 }
 0x2dc   : > { %6010 = vmatpush3.bf16.msra.mxu0 %v6623_v24 }
 0x2dd   : > { %3796 = vmatmul.mubr.bf16.gmra.mrb[76].mxu1 %v7904_v33  ;;  %6011 = vmatprep.subr.bf16.mxu0 %v6625_v20 }
 0x2de   : > { %3805 = vmatprep.mubr.bf16.mxu1 %v7964_v45  ;;  %5948 = vmatpush3.bf16.msra.mxu1 %v6626_v34 }
 0x2df   : > { %4022 = vmatmul.mubr.bf16.gmra.mrb[108].mxu0 %v7904_v33  ;;  %5949 = vmatprep.subr.bf16.mxu1 %v6628_v25  ;;  %v6632_v33 = vld [vmem:[%s9672_s7 + $0x140] sm:$0xff]  }
 0x2e0   : > { %4031 = vmatprep.mubr.bf16.mxu0 %v7964_v45  ;;  %6012 = vmatpush3.bf16.msra.mxu0 %v6627_v7  ;;  %v8705_v45 = vld [vmem:[%s9672_s7 + $0x1c0] sm:$0xff]  }
 0x2e1   : > { %6013 = vmatprep.subr.bf16.mxu0 %v6629_v13 }
 0x2e2   : > { %5950 = vmatpush3.bf16.msra.mxu1 %v6630_v5 }
 0x2e3   : > { %6063 = vmatprep.subr.bf16.mxu1 %v6632_v33 }
 0x2e4   : > { %6014 = vmatpush3.bf16.msra.mxu0 %v6631_v56 }
 0x2e5   : > { %3806 = vmatmul.mubr.bf16.gmra.mrb[80].mxu1 %v7947_v11  ;;  %6127 = vmatprep.subr.bf16.mxu0 %v8705_v45 }
 0x2e6   : > { %3815 = vmatprep.mubr.bf16.mxu1 %v8009_v35 }
 0x2e7   : > { %4032 = vmatmul.mubr.bf16.gmra.mrb[112].mxu0 %v7947_v11  ;;  %v8720_v11 = vld [vmem:[%s9671_s6] sm:$0xff] }
 0x2e8   : > { %4041 = vmatprep.mubr.bf16.mxu0 %v8009_v35 }
 0x2ed   : > { %3816 = vmatmul.mubr.bf16.gmra.mrb[84].mxu1 %v7995_v53 }
 0x2ee   : > { %3825 = vmatprep.mubr.bf16.mxu1 %v8062_v3 }
 0x2ef   : > { %4042 = vmatmul.mubr.bf16.gmra.mrb[116].mxu0 %v7995_v53  ;;  %v9848_v53 = vld [vmem:[#allocation3_spill] sm:$0xff] }
 0x2f0   : > { %4051 = vmatprep.mubr.bf16.mxu0 %v8062_v3  ;;  %v8724_v35 = vrot.slane %v8720_v11, %v9848_v53  ;;  %v9849_v3 = vld [vmem:[#allocation2_spill] sm:$0xff] }
 0x2f1   : > { %v9850_v36 = vsub.s32 2, %v9849_v3 }
 0x2f3   : > { %v8729_v0 = vrot.slane %v8720_v11, %v9850_v36  ;;  %v6633_v36 = vld [vmem:[%s9672_s7 + $0x100] sm:$0xff]  }
 0x2f5   : > { %3826 = vmatmul.mubr.bf16.gmra.mrb[88].mxu1 %v8045_v57 }
 0x2f6   : > { %3835 = vmatprep.mubr.bf16.mxu1 %v8127_v31 }
 0x2f7   : > { %4052 = vmatmul.mubr.bf16.gmra.mrb[120].mxu0 %v8045_v57  ;;  %v9851_v57 = vld [vmem:[#allocation4_spill] sm:$0xff] }
 0x2f8   : > { %4061 = vmatprep.mubr.bf16.mxu0 %v8127_v31  ;;  %v8733_v31 = vrot.slane %v8720_v11, %v9851_v57  ;;  %v6634_v57 = vld [vmem:[%s9672_s7 + $0x148] sm:$0xff]  }
 0x2fd   : > { %3836 = vmatmul.mubr.bf16.gmra.mrb[92].mxu1 %v8107_v6 }
 0x2ff   : > { %4062 = vmatmul.mubr.bf16.gmra.mrb[124].mxu0 %v8107_v6  ;;  %v9852_v6 = vsub.s32 3, %v9849_v3 }
 0x301   : > { %v8738_v38 = vrot.slane %v8720_v11, %v9852_v6  ;;  %v8773_v6 = vld [vmem:[%s9672_s7 + $0x180] sm:$0xff]  }
 0x318   : > { %v3315_v9 = vpop.f32.mrb[32].mxu1 }
 0x319   : > { %v6207_v54 = vadd.f32 %v3315_v9, %v8724_v35  ;;  %v3317_v22 = vpop.f32.mrb[33].mxu1 }
 0x31a   : > { %v3541_v15 = vpop.f32.mrb[64].mxu0  ;;  %v6208_v50 = vadd.f32 %v3317_v22, %v8733_v31  ;;  %v3319_v21 = vpop.f32.mrb[34].mxu1 }
 0x31b   : > { %v6239_v58 = vadd.f32 %v3541_v15, %v8729_v0  ;;  %v3543_v42 = vpop.f32.mrb[65].mxu0  ;;  %v4200_v30 = vmul.f32 0.01, %v6207_v54  ;;  %v6209_v2 = vadd.f32 %v3319_v21, %v8724_v35  ;;  %v3321_v62 = vpop.f32.mrb[35].mxu1  ;;  %vm4072_vm0 = vcmp.ge.f32.partialorder %v6207_v54, 0.0 }
 0x31c   : > { %v6240_v32 = vadd.f32 %v3543_v42, %v8738_v38  ;;  %v3545_v8 = vpop.f32.mrb[66].mxu0  ;;  %vm4073_vm3 = vcmp.ge.f32.partialorder %v6208_v50, 0.0  ;;  %v6210_v26 = vadd.f32 %v3321_v62, %v8733_v31  ;;  %v4201_v55 = vmul.f32 0.01, %v6208_v50 }
 0x31d   : > { %vm4074_vm1 = vcmp.ge.f32.partialorder %v6239_v58, 0.0  ;;  %v4202_v27 = vmul.f32 0.01, %v6239_v58  ;;  %vm4080_vm2 = vcmp.ge.f32.partialorder %v6209_v2, 0.0  ;;  %v3547_v29 = vpop.f32.mrb[67].mxu0  ;;  %v6241_v44 = vadd.f32 %v3545_v8, %v8729_v0 }
 0x31e   : > { %v4208_v43 = vmul.f32 0.01, %v6209_v2  ;;  %v4328_v49 = vsel %vm4072_vm0, %v6207_v54, %v4200_v30  ;;  %v4203_v10 = vmul.f32 0.01, %v6240_v32  ;;  %v6242_v47 = vadd.f32 %v3547_v29, %v8738_v38  ;;  %v6635_v29 = vld [vmem:[%s9672_s7 + $0x108] sm:$0xff]  }
 0x31f   : > { %vm4082_vm4 = vcmp.ge.f32.partialorder %v6241_v44, 0.0  ;;  %v4210_v40 = vmul.f32 0.01, %v6241_v44  ;;  %vm4081_vm5 = vcmp.ge.f32.partialorder %v6210_v26, 0.0  ;;  %v4330_v51 = vsel %vm4074_vm1, %v6239_v58, %v4202_v27 }
 0x320   : > { %v4336_v4 = vsel %vm4080_vm2, %v6209_v2, %v4208_v43  ;;  %v3325_v59 = vpop.f32.mrb[36].mxu1  ;;  %vm4075_vm6 = vcmp.ge.f32.partialorder %v6240_v32, 0.0  ;;  %v4209_v63 = vmul.f32 0.01, %v6210_v26  ;;  %vm4083_vm7 = vcmp.ge.f32.partialorder %v6242_v47, 0.0 }
 0x321   : > { %v4456_v1 = vpack.c.bf16 %v4336_v4, %v4328_v49  ;;  %v4338_v46 = vsel %vm4082_vm4, %v6241_v44, %v4210_v40  ;;  %v4211_v37 = vmul.f32 0.01, %v6242_v47  ;;  %v8750_v12 = vadd.f32 %v3325_v59, %v8724_v35  ;;  %v3327_v19 = vpop.f32.mrb[37].mxu1  ;;  %v8796_v59 = vld [vmem:[%s9672_s7 + $0x1c8] sm:$0xff]  }
 0x322   : > { %v3551_v17 = vpop.f32.mrb[68].mxu0  ;;  %v4458_v14 = vpack.c.bf16 %v4338_v46, %v4330_v51  ;;  %v6212_v41 = vadd.f32 %v3327_v19, %v8733_v31  ;;  %v3329_v18 = vpop.f32.mrb[38].mxu1  ;;  %v4337_v48 = vsel %vm4081_vm5, %v6210_v26, %v4209_v63  ;;  %v4329_v16 = vsel %vm4073_vm3, %v6208_v50, %v4201_v55 }
 0x323   : > { %v3553_v60 = vpop.f32.mrb[69].mxu0  ;;  %v4331_v28 = vsel %vm4075_vm6, %v6240_v32, %v4203_v10  ;;  %vm4088_vm8 = vcmp.ge.f32.partialorder %v8750_v12, 0.0  ;;  %v6243_v39 = vadd.f32 %v3551_v17, %v8729_v0  ;;  %v6213_v24 = vadd.f32 %v3329_v18, %v8724_v35  ;;  %v3331_v34 = vpop.f32.mrb[39].mxu1 }
 0x324   : > { %v6244_v52 = vadd.f32 %v3553_v60, %v8738_v38  ;;  %v3555_v61 = vpop.f32.mrb[70].mxu0  ;;  %vm4089_vm9 = vcmp.ge.f32.partialorder %v6212_v41, 0.0  ;;  %v4217_v23 = vmul.f32 0.01, %v6212_v41  ;;  %v4457_v7 = vpack.c.bf16 %v4337_v48, %v4329_v16  ;;  %v6638_v48 = vld [vmem:[%s9672_s7 + $0x158] sm:$0xff]   ;;  %v8819_v16 = vld [vmem:[%s9672_s7 + $0x188] sm:$0xff]  }
 0x325   : > { %v6245_v20 = vadd.f32 %v3555_v61, %v8729_v0  ;;  %v3557_v25 = vpop.f32.mrb[71].mxu0  ;;  %v4339_v13 = vsel %vm4083_vm7, %v6242_v47, %v4211_v37  ;;  %v6214_v56 = vadd.f32 %v3331_v34, %v8733_v31  ;;  %v4216_v9 = vmul.f32 0.01, %v8750_v12  ;;  %v6636_v47 = vld [vmem:[%s9672_s7 + $0x150] sm:$0xff]   ;;  %v6639_v34 = vld [vmem:[%s9672_s7 + $0x118] sm:$0xff]  }
 0x326   : > { %v4219_v5 = vmul.f32 0.01, %v6244_v52  ;;  %v6246_v33 = vadd.f32 %v3557_v25, %v8738_v38  ;;  %v4459_v53 = vpack.c.bf16 %v4339_v13, %v4331_v28  ;;  %vm4091_vm10 = vcmp.ge.f32.partialorder %v6244_v52, 0.0  ;;  %5071 = vmatprep.mubr.bf16.mxu1 %v4457_v7  ;;  %v8824_v28 = vld [vmem:[%s9672_s7 + $0x1d0] sm:$0xff]  }
 0x327   : > { %vm4096_vm11 = vcmp.ge.f32.partialorder %v6213_v24, 0.0  ;;  %v4224_v54 = vmul.f32 0.01, %v6213_v24  ;;  %vm4097_vm12 = vcmp.ge.f32.partialorder %v6214_v56, 0.0  ;;  %v4225_v15 = vmul.f32 0.01, %v6214_v56  ;;  %5072 = vmatmul.mubr.bf16.vlgmr.msra.gmra.mrb[96].mxu1 %v4456_v1 }
 0x328   : > { %vm4099_vm13 = vcmp.ge.f32.partialorder %v6246_v33, 0.0  ;;  %v4227_v22 = vmul.f32 0.01, %v6246_v33  ;;  %5168 = vmatprep.mubr.bf16.mxu0 %v4459_v53  ;;  %vm4090_vm14 = vcmp.ge.f32.partialorder %v6243_v39, 0.0  ;;  %v4218_v58 = vmul.f32 0.01, %v6243_v39  ;;  %6064 = vmatpush3.bf16.msra.mxu1 %v6633_v36 }
 0x329   : > { %vm4098_vm15 = vcmp.ge.f32.partialorder %v6245_v20, 0.0  ;;  %5169 = vmatmul.mubr.bf16.vlgmr.msra.gmra.mrb[128].mxu0 %v4458_v14  ;;  %v3335_v50 = vpop.f32.mrb[40].mxu1  ;;  %v4345_v21 = vsel %vm4089_vm9, %v6212_v41, %v4217_v23  ;;  %v4226_v30 = vmul.f32 0.01, %v6245_v20  ;;  %v4353_v8 = vsel %vm4097_vm12, %v6214_v56, %v4225_v15  ;;  %6065 = vmatprep.subr.bf16.mxu1 %v6634_v57  ;;  %v6637_v14 = vld [vmem:[%s9672_s7 + $0x110] sm:$0xff]  }
 0x32a   : > { %v3561_v42 = vpop.f32.mrb[72].mxu0  ;;  %v3337_v32 = vpop.f32.mrb[41].mxu1  ;;  %v4347_v62 = vsel %vm4091_vm10, %v6244_v52, %v4219_v5  ;;  %v4355_v27 = vsel %vm4099_vm13, %v6246_v33, %v4227_v22  ;;  %v8784_v43 = vadd.f32 %v3335_v50, %v8724_v35  ;;  %v4465_v49 = vpack.c.bf16 %v4353_v8, %v4345_v21  ;;  %6128 = vmatpush3.bf16.msra.mxu0 %v8773_v6  ;;  %v6640_v33 = vld [vmem:[%s9672_s7 + $0x160] sm:$0xff]  }
 0x32b   : > { %v3563_v2 = vpop.f32.mrb[73].mxu0  ;;  %v3339_v44 = vpop.f32.mrb[42].mxu1  ;;  %v4467_v55 = vpack.c.bf16 %v4355_v27, %v4347_v62  ;;  %v4352_v10 = vsel %vm4096_vm11, %v6213_v24, %v4224_v54  ;;  %v6216_v4 = vadd.f32 %v3337_v32, %v8733_v31  ;;  %v4344_v51 = vsel %vm4088_vm8, %v8750_v12, %v4216_v9  ;;  %6129 = vmatprep.subr.bf16.mxu0 %v8796_v59  ;;  %v8868_v27 = vld [vmem:[%s9672_s7 + $0x1d8] sm:$0xff]  }
 0x32c   : > { %v3565_v26 = vpop.f32.mrb[74].mxu0  ;;  %v6248_v40 = vadd.f32 %v3563_v2, %v8738_v38  ;;  %5079 = vmatprep.mubr.bf16.mxu1 %v4465_v49  ;;  %v4346_v1 = vsel %vm4090_vm14, %v6243_v39, %v4218_v58  ;;  %v8803_v63 = vadd.f32 %v3561_v42, %v8729_v0  ;;  %v6217_v17 = vadd.f32 %v3339_v44, %v8724_v35  ;;  %v3341_v46 = vpop.f32.mrb[43].mxu1  ;;  %v8849_v42 = vld [vmem:[%s9672_s7 + $0x190] sm:$0xff]  }
 0x32d   : > { %5176 = vmatprep.mubr.bf16.mxu0 %v4467_v55  ;;  %v3567_v37 = vpop.f32.mrb[75].mxu0  ;;  %v4464_v19 = vpack.c.bf16 %v4352_v10, %v4344_v51  ;;  %v4354_v60 = vsel %vm4098_vm15, %v6245_v20, %v4226_v30  ;;  %6066 = vmatpush3.bf16.msra.mxu1 %v6635_v29  ;;  %v4232_v41 = vmul.f32 0.01, %v8784_v43  ;;  %v6218_v12 = vadd.f32 %v3341_v46, %v8733_v31 }
 0x32e   : > { %v6250_v52 = vadd.f32 %v3567_v37, %v8738_v38  ;;  %v4466_v18 = vpack.c.bf16 %v4354_v60, %v4346_v1  ;;  %6067 = vmatprep.subr.bf16.mxu1 %v6636_v47  ;;  %v4233_v39 = vmul.f32 0.01, %v6216_v4  ;;  %v4235_v23 = vmul.f32 0.01, %v6248_v40  ;;  %6130 = vmatpush3.bf16.msra.mxu0 %v8819_v16 }
 0x32f   : > { %v4240_v24 = vmul.f32 0.01, %v6217_v17  ;;  %v6249_v20 = vadd.f32 %v3565_v26, %v8729_v0  ;;  %5080 = vmatmul.mubr.bf16.gmra.mrb[100].mxu1 %v4464_v19  ;;  %vm4113_vm0 = vcmp.ge.f32.partialorder %v6218_v12, 0.0  ;;  %v4241_v25 = vmul.f32 0.01, %v6218_v12  ;;  %6131 = vmatprep.subr.bf16.mxu0 %v8824_v28 }
 0x330   : > { %v3345_v61 = vpop.f32.mrb[44].mxu1  ;;  %vm4115_vm1 = vcmp.ge.f32.partialorder %v6250_v52, 0.0  ;;  %v4243_v7 = vmul.f32 0.01, %v6250_v52  ;;  %vm4105_vm2 = vcmp.ge.f32.partialorder %v6216_v4, 0.0  ;;  %vm4107_vm3 = vcmp.ge.f32.partialorder %v6248_v40, 0.0 }
 0x331   : > { %5177 = vmatmul.mubr.bf16.gmra.mrb[132].mxu0 %v4466_v18  ;;  %vm4112_vm4 = vcmp.ge.f32.partialorder %v6217_v17, 0.0  ;;  %v8832_v13 = vadd.f32 %v3345_v61, %v8724_v35  ;;  %v3347_v56 = vpop.f32.mrb[45].mxu1  ;;  %6068 = vmatpush3.bf16.msra.mxu1 %v6637_v14  ;;  %vm4104_vm5 = vcmp.ge.f32.partialorder %v8784_v43, 0.0  ;;  %vm4106_vm6 = vcmp.ge.f32.partialorder %v8803_v63, 0.0  ;;  %v6647_v14 = vld [vmem:[%s9672_s7 + $0x128] sm:$0xff]  }
 0x332   : > { %v3571_v5 = vpop.f32.mrb[76].mxu0  ;;  %v4234_v53 = vmul.f32 0.01, %v8803_v63  ;;  %v3349_v57 = vpop.f32.mrb[46].mxu1  ;;  %6069 = vmatprep.subr.bf16.mxu1 %v6638_v48  ;;  %v4242_v9 = vmul.f32 0.01, %v6249_v20  ;;  %v4369_v58 = vsel %vm4113_vm0, %v6218_v12, %v4241_v25  ;;  %v4371_v50 = vsel %vm4115_vm1, %v6250_v52, %v4243_v7  ;;  %6132 = vmatpush3.bf16.msra.mxu0 %v8849_v42 }
 0x333   : > { %v3573_v36 = vpop.f32.mrb[77].mxu0  ;;  %v8841_v54 = vadd.f32 %v3571_v5, %v8729_v0  ;;  %v3351_v22 = vpop.f32.mrb[47].mxu1  ;;  %vm4114_vm7 = vcmp.ge.f32.partialorder %v6249_v20, 0.0  ;;  %v4361_v21 = vsel %vm4105_vm2, %v6216_v4, %v4233_v39  ;;  %v4363_v30 = vsel %vm4107_vm3, %v6248_v40, %v4235_v23  ;;  %v8907_v12 = vld [vmem:[%s9672_s7 + $0x1e0] sm:$0xff]   ;;  %6133 = vmatprep.subr.bf16.mxu0 %v8868_v27  ;;  %v6652_v25 = vld [vmem:[%s9672_s7 + $0x170] sm:$0xff]  }
 0x334   : > { %v3575_v15 = vpop.f32.mrb[78].mxu0  ;;  %v4368_v32 = vsel %vm4112_vm4, %v6217_v17, %v4240_v24  ;;  %vm4120_vm8 = vcmp.ge.f32.partialorder %v8832_v13, 0.0  ;;  %v8857_v2 = vadd.f32 %v3347_v56, %v8733_v31  ;;  %v8860_v8 = vadd.f32 %v3573_v36, %v8738_v38  ;;  %v6646_v17 = vld [vmem:[%s9672_s7 + $0x168] sm:$0xff]   ;;  %v8929_v7 = vld [vmem:[%s9672_s7 + $0x1a0] sm:$0xff]  }
 0x335   : > { %v4360_v62 = vsel %vm4104_vm5, %v8784_v43, %v4232_v41  ;;  %6070 = vmatpush3.bf16.msra.mxu1 %v6639_v34  ;;  %v8871_v29 = vmul.f32 0.01, %v8832_v13  ;;  %v8874_v44 = vadd.f32 %v3349_v57, %v8724_v35  ;;  %v3577_v26 = vpop.f32.mrb[79].mxu0  ;;  %v4473_v49 = vpack.c.bf16 %v4369_v58, %v4361_v21  ;;  %v6642_v43 = vld [vmem:[%s9672_s7 + $0x120] sm:$0xff]   ;;  %v8902_v41 = vld [vmem:[%s9672_s7 + $0x198] sm:$0xff]  }
 0x336   : > { %v4475_v55 = vpack.c.bf16 %v4371_v50, %v4363_v30  ;;  %6071 = vmatprep.subr.bf16.mxu1 %v6640_v33  ;;  %vm4122_vm9 = vcmp.ge.f32.partialorder %v8841_v54, 0.0  ;;  %v6222_v47 = vadd.f32 %v3351_v22, %v8733_v31  ;;  %v4472_v4 = vpack.c.bf16 %v4368_v32, %v4360_v62  ;;  %6134 = vmatpush3.bf16.msra.mxu0 %v8902_v41  ;;  %v8949_v22 = vld [vmem:[%s9672_s7 + $0x1e8] sm:$0xff]  }
 0x337   : > { %v4370_v40 = vsel %vm4114_vm7, %v6249_v20, %v4242_v9  ;;  %v8887_v46 = vmul.f32 0.01, %v8841_v54  ;;  %v8890_v37 = vadd.f32 %v3575_v15, %v8729_v0  ;;  %v6254_v19 = vadd.f32 %v3577_v26, %v8738_v38  ;;  %5087 = vmatprep.mubr.bf16.mxu1 %v4473_v49  ;;  %6135 = vmatprep.subr.bf16.mxu0 %v8907_v12 }
 0x338   : > { %v3355_v10 = vpop.f32.mrb[48].mxu1  ;;  %5184 = vmatprep.mubr.bf16.mxu0 %v4475_v55  ;;  %v4362_v60 = vsel %vm4106_vm6, %v8803_v63, %v4234_v53  ;;  %vm4121_vm10 = vcmp.ge.f32.partialorder %v8857_v2, 0.0  ;;  %v4249_v52 = vmul.f32 0.01, %v8857_v2  ;;  %vm4123_vm11 = vcmp.ge.f32.partialorder %v8860_v8, 0.0  ;;  %5088 = vmatmul.mubr.bf16.gmra.mrb[104].mxu1 %v4472_v4 }
 0x339   : > { %v3357_v1 = vpop.f32.mrb[49].mxu1  ;;  %v4474_v63 = vpack.c.bf16 %v4370_v40, %v4362_v60  ;;  %v4251_v48 = vmul.f32 0.01, %v8860_v8  ;;  %v8915_v39 = vadd.f32 %v3355_v10, %v8724_v35  ;;  %6072 = vmatpush3.bf16.msra.mxu1 %v6642_v43  ;;  %vm4128_vm12 = vcmp.ge.f32.partialorder %v8874_v44, 0.0 }
 0x33a   : > { %v3581_v51 = vpop.f32.mrb[80].mxu0  ;;  %v3359_v61 = vpop.f32.mrb[50].mxu1  ;;  %v8921_v24 = vadd.f32 %v3357_v1, %v8733_v31  ;;  %v4256_v5 = vmul.f32 0.01, %v8874_v44  ;;  %v4257_v56 = vmul.f32 0.01, %v6222_v47  ;;  %6073 = vmatprep.subr.bf16.mxu1 %v6646_v17  ;;  %v4377_v32 = vsel %vm4121_vm10, %v8857_v2, %v4249_v52  ;;  %6136 = vmatpush3.bf16.msra.mxu0 %v8929_v7 }
 0x33b   : > { %v3583_v18 = vpop.f32.mrb[81].mxu0  ;;  %v8918_v23 = vadd.f32 %v3581_v51, %v8729_v0  ;;  %v3361_v34 = vpop.f32.mrb[51].mxu1  ;;  %5185 = vmatmul.mubr.bf16.gmra.mrb[136].mxu0 %v4474_v63  ;;  %vm4130_vm13 = vcmp.ge.f32.partialorder %v8890_v37, 0.0  ;;  %v4258_v53 = vmul.f32 0.01, %v8890_v37  ;;  %vm4129_vm14 = vcmp.ge.f32.partialorder %v6222_v47, 0.0  ;;  %6137 = vmatprep.subr.bf16.mxu0 %v8949_v22 }
 0x33c   : > { %v3585_v20 = vpop.f32.mrb[82].mxu0  ;;  %v4259_v36 = vmul.f32 0.01, %v6254_v19  ;;  %vm4131_vm15 = vcmp.ge.f32.partialorder %v6254_v19, 0.0  ;;  %v8937_v57 = vadd.f32 %v3583_v18, %v8738_v38  ;;  %v8940_v9 = vadd.f32 %v3359_v61, %v8724_v35  ;;  %v8988_v51 = vld [vmem:[%s9672_s7 + $0x1a8] sm:$0xff]  }
 0x33d   : > { %v3587_v33 = vpop.f32.mrb[83].mxu0  ;;  %v8943_v15 = vadd.f32 %v3361_v34, %v8733_v31  ;;  %v8952_v58 = vmul.f32 0.01, %v8915_v39  ;;  %v8955_v50 = vmul.f32 0.01, %v8918_v23  ;;  %vm4137_vm0 = vcmp.ge.f32.partialorder %v8921_v24, 0.0  ;;  %6074 = vmatpush3.bf16.msra.mxu1 %v6647_v14 }
 0x33e   : > { %v8959_v21 = vadd.f32 %v3585_v20, %v8729_v0  ;;  %vm4136_vm1 = vcmp.ge.f32.partialorder %v8915_v39, 0.0  ;;  %v8963_v30 = vadd.f32 %v3587_v33, %v8738_v38  ;;  %v4385_v62 = vsel %vm4129_vm14, %v6222_v47, %v4257_v56  ;;  %6075 = vmatprep.subr.bf16.mxu1 %v6652_v25  ;;  %v9012_v20 = vld [vmem:[%s9672_s7 + $0x1f0] sm:$0xff]   ;;  %v6659_v25 = vld [vmem:[%s9672_s7 + $0x138] sm:$0xff]   ;;  %6138 = vmatpush3.bf16.msra.mxu0 %v8988_v51 }
 0x33f   : > { %v4379_v26 = vsel %vm4123_vm11, %v8860_v8, %v4251_v48  ;;  %vm4138_vm2 = vcmp.ge.f32.partialorder %v8918_v23, 0.0  ;;  %v4481_v10 = vpack.c.bf16 %v4385_v62, %v4377_v32  ;;  %v4387_v43 = vsel %vm4131_vm15, %v6254_v19, %v4259_v36  ;;  %v6653_v8 = vld [vmem:[%s9672_s7 + $0x130] sm:$0xff]   ;;  %v9037_v33 = vld [vmem:[%s9672_s7 + $0x1f8] sm:$0xff]   ;;  %6139 = vmatprep.subr.bf16.mxu0 %v9012_v20 }
 0x340   : > { %v3365_v49 = vpop.f32.mrb[52].mxu1  ;;  %v4376_v4 = vsel %vm4120_vm8, %v8832_v13, %v8871_v29  ;;  %v4384_v2 = vsel %vm4128_vm12, %v8874_v44, %v4256_v5  ;;  %v6658_v13 = vld [vmem:[%s9672_s7 + $0x178] sm:$0xff]   ;;  %v4265_v29 = vmul.f32 0.01, %v8921_v24  ;;  %v4273_v44 = vmul.f32 0.01, %v8943_v15 }
 0x341   : > { %v3367_v47 = vpop.f32.mrb[53].mxu1  ;;  %v4483_v1 = vpack.c.bf16 %v4387_v43, %v4379_v26  ;;  %v4480_v17 = vpack.c.bf16 %v4384_v2, %v4376_v4  ;;  %5095 = vmatprep.mubr.bf16.mxu1 %v4481_v10  ;;  %v4378_v14 = vsel %vm4122_vm9, %v8841_v54, %v8887_v46  ;;  %v4386_v52 = vsel %vm4130_vm13, %v8890_v37, %v4258_v53  ;;  %v9027_v5 = vld [vmem:[%s9672_s7 + $0x1b0] sm:$0xff]  }
 0x342   : > { %v3591_v55 = vpop.f32.mrb[84].mxu0  ;;  %v3369_v19 = vpop.f32.mrb[54].mxu1  ;;  %v9004_v63 = vadd.f32 %v3365_v49, %v8724_v35  ;;  %v4275_v34 = vmul.f32 0.01, %v8963_v30  ;;  %v4482_v54 = vpack.c.bf16 %v4386_v52, %v4378_v14  ;;  %v9016_v46 = vadd.f32 %v3367_v47, %v8733_v31  ;;  %6076 = vmatpush3.bf16.msra.mxu1 %v6653_v8  ;;  %6140 = vmatpush3.bf16.msra.mxu0 %v9027_v5 }
 0x343   : > { %v3593_v40 = vpop.f32.mrb[85].mxu0  ;;  %v9007_v18 = vadd.f32 %v3591_v55, %v8729_v0  ;;  %v3371_v61 = vpop.f32.mrb[55].mxu1  ;;  %5192 = vmatprep.mubr.bf16.mxu0 %v4483_v1  ;;  %5096 = vmatmul.mubr.bf16.gmra.mrb[108].mxu1 %v4480_v17  ;;  %vm4139_vm3 = vcmp.ge.f32.partialorder %v8937_v57, 0.0  ;;  %v4267_v56 = vmul.f32 0.01, %v8937_v57  ;;  %vm4145_vm4 = vcmp.ge.f32.partialorder %v8943_v15, 0.0 }
 0x344   : > { %v3595_v60 = vpop.f32.mrb[86].mxu0  ;;  %v9019_v37 = vadd.f32 %v3593_v40, %v8738_v38  ;;  %vm4147_vm5 = vcmp.ge.f32.partialorder %v8963_v30, 0.0  ;;  %vm4144_vm6 = vcmp.ge.f32.partialorder %v8940_v9, 0.0  ;;  %v4272_v53 = vmul.f32 0.01, %v8940_v9  ;;  %5193 = vmatmul.mubr.bf16.gmra.mrb[140].mxu0 %v4482_v54  ;;  %6077 = vmatprep.subr.bf16.mxu1 %v6658_v13  ;;  %v9087_v1 = vld [vmem:[%s9672_s7 + $0x1b8] sm:$0xff]  }
 0x345   : > { %v3597_v48 = vpop.f32.mrb[87].mxu0  ;;  %vm4146_vm7 = vcmp.ge.f32.partialorder %v8959_v21, 0.0  ;;  %v4274_v36 = vmul.f32 0.01, %v8959_v21  ;;  %v9044_v32 = vmul.f32 0.01, %v9004_v63  ;;  %v9051_v26 = vadd.f32 %v3369_v19, %v8724_v35  ;;  %6141 = vmatprep.subr.bf16.mxu0 %v9037_v33 }
 0x346   : > { %v9047_v62 = vmul.f32 0.01, %v9007_v18  ;;  %vm4153_vm8 = vcmp.ge.f32.partialorder %v9016_v46, 0.0  ;;  %vm4152_vm9 = vcmp.ge.f32.partialorder %v9004_v63, 0.0  ;;  %v9056_v55 = vmul.f32 0.01, %v9016_v46  ;;  %6078 = vmatpush3.bf16.msra.mxu1 %v6659_v25  ;;  %6142 = vmatpush3.bf16.msra.mxu0 %v9087_v1 }
 0x347   : > { %vm4155_vm10 = vcmp.ge.f32.partialorder %v9019_v37, 0.0  ;;  %v4401_v10 = vsel %vm4145_vm4, %v8943_v15, %v4273_v44  ;;  %v4403_v43 = vsel %vm4147_vm5, %v8963_v30, %v4275_v34  ;;  %v4283_v47 = vmul.f32 0.01, %v9019_v37  ;;  %6191 = vmatprep.subr.bf16.mxu1 %v8705_v45 }
 0x348   : > { %v3375_v49 = vpop.f32.mrb[56].mxu1  ;;  %v9067_v40 = vadd.f32 %v3595_v60, %v8729_v0  ;;  %v6230_v8 = vadd.f32 %v3371_v61, %v8733_v31  ;;  %v6262_v13 = vadd.f32 %v3597_v48, %v8738_v38  ;;  %vm4154_vm11 = vcmp.ge.f32.partialorder %v9007_v18, 0.0 }
 0x349   : > { %v3377_v2 = vpop.f32.mrb[57].mxu1  ;;  %vm4160_vm12 = vcmp.ge.f32.partialorder %v9051_v26, 0.0  ;;  %v9075_v15 = vmul.f32 0.01, %v9051_v26  ;;  %v4393_v30 = vsel %vm4137_vm0, %v8921_v24, %v4265_v29  ;;  %v4395_v44 = vsel %vm4139_vm3, %v8937_v57, %v4267_v56 }
 0x34a   : > { %v3601_v4 = vpop.f32.mrb[88].mxu0  ;;  %v4489_v17 = vpack.c.bf16 %v4401_v10, %v4393_v30  ;;  %v4491_v19 = vpack.c.bf16 %v4403_v43, %v4395_v44  ;;  %v4392_v24 = vsel %vm4136_vm1, %v8915_v39, %v8952_v58  ;;  %v4400_v57 = vsel %vm4144_vm6, %v8940_v9, %v4272_v53  ;;  %v3379_v60 = vpop.f32.mrb[58].mxu1 }
 0x34b   : > { %v3603_v29 = vpop.f32.mrb[89].mxu0  ;;  %v4488_v14 = vpack.c.bf16 %v4400_v57, %v4392_v24  ;;  %v4394_v52 = vsel %vm4138_vm2, %v8918_v23, %v8955_v50  ;;  %v4402_v45 = vsel %vm4146_vm7, %v8959_v21, %v4274_v36  ;;  %v9105_v61 = vadd.f32 %v3375_v49, %v8724_v35  ;;  %v3381_v58 = vpop.f32.mrb[59].mxu1 }
 0x34c   : > { %v3605_v39 = vpop.f32.mrb[90].mxu0  ;;  %v4290_v48 = vmul.f32 0.01, %v9067_v40  ;;  %5103 = vmatprep.mubr.bf16.mxu1 %v4489_v17  ;;  %5200 = vmatprep.mubr.bf16.mxu0 %v4491_v19  ;;  %v4490_v9 = vpack.c.bf16 %v4402_v45, %v4394_v52  ;;  %v9109_v34 = vadd.f32 %v3601_v4, %v8729_v0  ;;  %v9112_v54 = vadd.f32 %v3377_v2, %v8733_v31 }
 0x34d   : > { %v3607_v23 = vpop.f32.mrb[91].mxu0  ;;  %v4289_v50 = vmul.f32 0.01, %v6230_v8  ;;  %v4291_v25 = vmul.f32 0.01, %v6262_v13  ;;  %5104 = vmatmul.mubr.bf16.gmra.mrb[112].mxu1 %v4488_v14  ;;  %v9115_v21 = vadd.f32 %v3603_v29, %v8738_v38  ;;  %v9118_v56 = vadd.f32 %v3379_v60, %v8724_v35 }
 0x34e   : > { %vm4161_vm13 = vcmp.ge.f32.partialorder %v6230_v8, 0.0  ;;  %vm4163_vm14 = vcmp.ge.f32.partialorder %v6262_v13, 0.0  ;;  %5201 = vmatmul.mubr.bf16.gmra.mrb[144].mxu0 %v4490_v9  ;;  %v9122_v53 = vmul.f32 0.01, %v9105_v61  ;;  %v9125_v36 = vmul.f32 0.01, %v9109_v34 }
 0x34f   : > { %vm4162_vm15 = vcmp.ge.f32.partialorder %v9067_v40, 0.0  ;;  %vm4169_vm0 = vcmp.ge.f32.partialorder %v9112_v54, 0.0  ;;  %v4297_v49 = vmul.f32 0.01, %v9112_v54  ;;  %v9131_v10 = vmul.f32 0.01, %v9115_v21 }
 0x350   : > { %vm4168_vm1 = vcmp.ge.f32.partialorder %v9105_v61, 0.0  ;;  %vm4171_vm2 = vcmp.ge.f32.partialorder %v9115_v21, 0.0  ;;  %v9136_v43 = vmul.f32 0.01, %v9118_v56  ;;  %v9139_v4 = vadd.f32 %v3605_v39, %v8729_v0  ;;  %v3385_v44 = vpop.f32.mrb[60].mxu1 }
 0x351   : > { %v6234_v2 = vadd.f32 %v3381_v58, %v8733_v31  ;;  %v6266_v30 = vadd.f32 %v3607_v23, %v8738_v38  ;;  %v4409_v19 = vsel %vm4153_vm8, %v9016_v46, %v9056_v55  ;;  %v4417_v24 = vsel %vm4161_vm13, %v6230_v8, %v4289_v50  ;;  %v3387_v60 = vpop.f32.mrb[61].mxu1 }
 0x352   : > { %v3611_v17 = vpop.f32.mrb[92].mxu0  ;;  %v4411_v57 = vsel %vm4155_vm10, %v9019_v37, %v4283_v47  ;;  %v4419_v29 = vsel %vm4163_vm14, %v6262_v13, %v4291_v25  ;;  %vm4170_vm3 = vcmp.ge.f32.partialorder %v9109_v34, 0.0  ;;  %vm4176_vm4 = vcmp.ge.f32.partialorder %v9118_v56, 0.0  ;;  %v3389_v8 = vpop.f32.mrb[62].mxu1 }
 0x353   : > { %v3613_v14 = vpop.f32.mrb[93].mxu0  ;;  %vm4178_vm5 = vcmp.ge.f32.partialorder %v9139_v4, 0.0  ;;  %v4306_v52 = vmul.f32 0.01, %v9139_v4  ;;  %vm4177_vm6 = vcmp.ge.f32.partialorder %v6234_v2, 0.0  ;;  %v4408_v46 = vsel %vm4152_vm9, %v9004_v63, %v9044_v32  ;;  %v3391_v58 = vpop.f32.mrb[63].mxu1 }
 0x354   : > { %v4305_v55 = vmul.f32 0.01, %v6234_v2  ;;  %vm4179_vm7 = vcmp.ge.f32.partialorder %v6266_v30, 0.0  ;;  %v4497_v37 = vpack.c.bf16 %v4417_v24, %v4409_v19  ;;  %v4499_v47 = vpack.c.bf16 %v4419_v29, %v4411_v57  ;;  %v3615_v13 = vpop.f32.mrb[94].mxu0 }
 0x355   : > { %v4416_v45 = vsel %vm4160_vm12, %v9051_v26, %v9075_v15  ;;  %v4410_v39 = vsel %vm4154_vm11, %v9007_v18, %v9047_v62  ;;  %v4418_v63 = vsel %vm4162_vm15, %v9067_v40, %v4290_v48  ;;  %v6235_v32 = vadd.f32 %v3385_v44, %v8724_v35  ;;  %v3617_v9 = vpop.f32.mrb[95].mxu0 }
 0x356   : > { %v4307_v23 = vmul.f32 0.01, %v6266_v30  ;;  %5111 = vmatprep.mubr.bf16.mxu1 %v4497_v37  ;;  %5208 = vmatprep.mubr.bf16.mxu0 %v4499_v47  ;;  %v4496_v50 = vpack.c.bf16 %v4416_v45, %v4408_v46  ;;  %v4498_v25 = vpack.c.bf16 %v4418_v63, %v4410_v39  ;;  %v6267_v26 = vadd.f32 %v3611_v17, %v8729_v0 }
 0x357   : > { %vm4184_vm8 = vcmp.ge.f32.partialorder %v6235_v32, 0.0  ;;  %v4312_v15 = vmul.f32 0.01, %v6235_v32  ;;  %v6236_v19 = vadd.f32 %v3387_v60, %v8733_v31  ;;  %v6268_v18 = vadd.f32 %v3613_v14, %v8738_v38 }
 0x358   : > { %5112 = vmatmul.mubr.bf16.gmra.mrb[116].mxu1 %v4496_v50  ;;  %5209 = vmatmul.mubr.bf16.gmra.mrb[148].mxu0 %v4498_v25  ;;  %vm4186_vm9 = vcmp.ge.f32.partialorder %v6267_v26, 0.0  ;;  %v4314_v62 = vmul.f32 0.01, %v6267_v26  ;;  %v6237_v40 = vadd.f32 %v3389_v8, %v8724_v35  ;;  %v6269_v48 = vadd.f32 %v3615_v13, %v8729_v0 }
 0x359   : > { %vm4185_vm10 = vcmp.ge.f32.partialorder %v6236_v19, 0.0  ;;  %v4313_v44 = vmul.f32 0.01, %v6236_v19  ;;  %vm4187_vm11 = vcmp.ge.f32.partialorder %v6268_v18, 0.0  ;;  %v4315_v24 = vmul.f32 0.01, %v6268_v18 }
 0x35a   : > { %vm4192_vm12 = vcmp.ge.f32.partialorder %v6237_v40, 0.0  ;;  %v4320_v17 = vmul.f32 0.01, %v6237_v40  ;;  %vm4194_vm13 = vcmp.ge.f32.partialorder %v6269_v48, 0.0  ;;  %v4322_v57 = vmul.f32 0.01, %v6269_v48 }
 0x35b   : > { %v6238_v29 = vadd.f32 %v3391_v58, %v8733_v31  ;;  %v6270_v60 = vadd.f32 %v3617_v9, %v8738_v38  ;;  %v4425_v14 = vsel %vm4169_vm0, %v9112_v54, %v4297_v49  ;;  %v4433_v35 = vsel %vm4177_vm6, %v6234_v2, %v4305_v55 }
 0x35c   : > { %v4505_v46 = vpack.c.bf16 %v4433_v35, %v4425_v14  ;;  %v4427_v0 = vsel %vm4171_vm2, %v9115_v21, %v9131_v10  ;;  %v4435_v37 = vsel %vm4179_vm7, %v6266_v30, %v4307_v23  ;;  %v4424_v31 = vsel %vm4168_vm1, %v9105_v61, %v9122_v53 }
 0x35d   : > { %vm4193_vm14 = vcmp.ge.f32.partialorder %v6238_v29, 0.0  ;;  %v4321_v38 = vmul.f32 0.01, %v6238_v29  ;;  %vm4195_vm15 = vcmp.ge.f32.partialorder %v6270_v60, 0.0  ;;  %v4323_v47 = vmul.f32 0.01, %v6270_v60 }
 0x35e   : > { %5119 = vmatprep.mubr.bf16.mxu1 %v4505_v46  ;;  %v4507_v54 = vpack.c.bf16 %v4435_v37, %v4427_v0  ;;  %v4432_v49 = vsel %vm4176_vm4, %v9118_v56, %v9136_v43  ;;  %v4426_v21 = vsel %vm4170_vm3, %v9109_v34, %v9125_v36  ;;  %v4434_v61 = vsel %vm4178_vm5, %v9139_v4, %v4306_v52 }
 0x35f   : > { %v4504_v53 = vpack.c.bf16 %v4432_v49, %v4424_v31  ;;  %v4506_v10 = vpack.c.bf16 %v4434_v61, %v4426_v21  ;;  %v4441_v2 = vsel %vm4185_vm10, %v6236_v19, %v4313_v44  ;;  %v4449_v30 = vsel %vm4193_vm14, %v6238_v29, %v4321_v38 }
 0x360   : > { %5216 = vmatprep.mubr.bf16.mxu0 %v4507_v54  ;;  %v4513_v55 = vpack.c.bf16 %v4449_v30, %v4441_v2  ;;  %v4443_v8 = vsel %vm4187_vm11, %v6268_v18, %v4315_v24  ;;  %v4451_v13 = vsel %vm4195_vm15, %v6270_v60, %v4323_v47  ;;  %v4440_v43 = vsel %vm4184_vm8, %v6235_v32, %v4312_v15 }
 0x361   : > { %5120 = vmatmul.mubr.bf16.gmra.mrb[120].mxu1 %v4504_v53  ;;  %5217 = vmatmul.mubr.bf16.gmra.mrb[152].mxu0 %v4506_v10  ;;  %v4515_v56 = vpack.c.bf16 %v4451_v13, %v4443_v8  ;;  %v4448_v34 = vsel %vm4192_vm12, %v6237_v40, %v4320_v17  ;;  %v4442_v4 = vsel %vm4186_vm9, %v6267_v26, %v4314_v62  ;;  %v1866_v39 = vsub.s32 4, %v9849_v3 }
 0x362   : > { %5127 = vmatprep.mubr.bf16.mxu1 %v4513_v55  ;;  %v4512_v36 = vpack.c.bf16 %v4448_v34, %v4440_v43  ;;  %v4450_v52 = vsel %vm4194_vm13, %v6269_v48, %v4322_v57  ;;  %v1874_v63 = vsub.s32 6, %v9849_v3  ;;  %v1870_v58 = vsub.s32 5, %v9849_v3 }
 0x363   : > { %5224 = vmatprep.mubr.bf16.mxu0 %v4515_v56  ;;  %v4514_v45 = vpack.c.bf16 %v4450_v52, %v4442_v4  ;;  %v9213_v32 = vrot.slane %v8720_v11, %v1866_v39  ;;  %v1878_v9 = vsub.s32 7, %v9849_v3 }
 0x364   : > { %v9217_v23 = vrot.slane %v8720_v11, %v1874_v63  ;;  %v9220_v50 = vrot.slane %v8720_v11, %v1870_v58 }
 0x365   : > { %v9224_v19 = vrot.slane %v8720_v11, %v1878_v9 }
 0x369   : > { %5128 = vmatmul.mubr.bf16.gmra.mrb[124].mxu1 %v4512_v36  ;;  %5225 = vmatmul.mubr.bf16.gmra.mrb[156].mxu0 %v4514_v45 }
 0x398   : > { %v3767_v25 = vpop.f32.mrb[64].mxu1 }
 0x399   : > { %v6271_v26 = vadd.f32 %v3767_v25, %v9213_v32  ;;  %v3769_v15 = vpop.f32.mrb[65].mxu1 }
 0x39a   : > { %v3993_v18 = vpop.f32.mrb[96].mxu0  ;;  %v3771_v62 = vpop.f32.mrb[66].mxu1  ;;  %v6272_v3 = vadd.f32 %v3769_v15, %v9220_v50 }
 0x39b   : > { %v4204_v40 = vmul.f32 0.01, %v6271_v26  ;;  %v6303_v48 = vadd.f32 %v3993_v18, %v9217_v23  ;;  %v3995_v44 = vpop.f32.mrb[97].mxu0  ;;  %v6273_v24 = vadd.f32 %v3771_v62, %v9213_v32  ;;  %v3773_v17 = vpop.f32.mrb[67].mxu1  ;;  %vm4076_vm0 = vcmp.ge.f32.partialorder %v6271_v26, 0.0 }
 0x39c   : > { %v3997_v57 = vpop.f32.mrb[98].mxu0  ;;  %v6304_v29 = vadd.f32 %v3995_v44, %v9224_v19  ;;  %v6274_v60 = vadd.f32 %v3773_v17, %v9220_v50  ;;  %v4205_v37 = vmul.f32 0.01, %v6272_v3  ;;  %vm4077_vm5 = vcmp.ge.f32.partialorder %v6272_v3, 0.0 }
 0x39d   : > { %vm4084_vm1 = vcmp.ge.f32.partialorder %v6273_v24, 0.0  ;;  %v3999_v11 = vpop.f32.mrb[99].mxu0  ;;  %v4206_v14 = vmul.f32 0.01, %v6303_v48  ;;  %v4212_v35 = vmul.f32 0.01, %v6273_v24  ;;  %v6305_v46 = vadd.f32 %v3997_v57, %v9217_v23 }
 0x39e   : > { %v4332_v0 = vsel %vm4076_vm0, %v6271_v26, %v4204_v40  ;;  %vm4078_vm2 = vcmp.ge.f32.partialorder %v6303_v48, 0.0  ;;  %v6306_v47 = vadd.f32 %v3999_v11, %v9224_v19  ;;  %v4207_v49 = vmul.f32 0.01, %v6304_v29 }
 0x39f   : > { %v4340_v31 = vsel %vm4084_vm1, %v6273_v24, %v4212_v35  ;;  %vm4086_vm3 = vcmp.ge.f32.partialorder %v6305_v46, 0.0  ;;  %v4214_v38 = vmul.f32 0.01, %v6305_v46  ;;  %v4213_v61 = vmul.f32 0.01, %v6274_v60 }
 0x3a0   : > { %v3777_v54 = vpop.f32.mrb[68].mxu1  ;;  %v4460_v21 = vpack.c.bf16 %v4340_v31, %v4332_v0  ;;  %v4334_v10 = vsel %vm4078_vm2, %v6303_v48, %v4206_v14  ;;  %vm4085_vm4 = vcmp.ge.f32.partialorder %v6274_v60, 0.0  ;;  %vm4079_vm6 = vcmp.ge.f32.partialorder %v6304_v29, 0.0 }
 0x3a1   : > { %v3779_v53 = vpop.f32.mrb[69].mxu1  ;;  %v4342_v2 = vsel %vm4086_vm3, %v6305_v46, %v4214_v38  ;;  %v9235_v56 = vadd.f32 %v3777_v54, %v9213_v32  ;;  %v4215_v36 = vmul.f32 0.01, %v6306_v47  ;;  %vm4087_vm7 = vcmp.ge.f32.partialorder %v6306_v47, 0.0 }
 0x3a2   : > { %v4003_v30 = vpop.f32.mrb[100].mxu0  ;;  %v6276_v55 = vadd.f32 %v3779_v53, %v9220_v50  ;;  %v3781_v8 = vpop.f32.mrb[70].mxu1  ;;  %v4462_v13 = vpack.c.bf16 %v4342_v2, %v4334_v10  ;;  %v4341_v63 = vsel %vm4085_vm4, %v6274_v60, %v4213_v61  ;;  %v4333_v9 = vsel %vm4077_vm5, %v6272_v3, %v4205_v37 }
 0x3a3   : > { %v4005_v43 = vpop.f32.mrb[101].mxu0  ;;  %v3783_v34 = vpop.f32.mrb[71].mxu1  ;;  %v4335_v25 = vsel %vm4079_vm6, %v6304_v29, %v4207_v49  ;;  %vm4092_vm9 = vcmp.ge.f32.partialorder %v9235_v56, 0.0  ;;  %v9242_v26 = vadd.f32 %v4003_v30, %v9217_v23  ;;  %v6277_v18 = vadd.f32 %v3781_v8, %v9213_v32 }
 0x3a4   : > { %v4007_v4 = vpop.f32.mrb[102].mxu0  ;;  %v4221_v52 = vmul.f32 0.01, %v6276_v55  ;;  %v6278_v45 = vadd.f32 %v3783_v34, %v9220_v50  ;;  %vm4093_vm8 = vcmp.ge.f32.partialorder %v6276_v55, 0.0  ;;  %v6308_v58 = vadd.f32 %v4005_v43, %v9224_v19 }
 0x3a5   : > { %v4009_v39 = vpop.f32.mrb[103].mxu0  ;;  %v4461_v40 = vpack.c.bf16 %v4341_v63, %v4333_v9  ;;  %v4343_v48 = vsel %vm4087_vm7, %v6306_v47, %v4215_v36  ;;  %v6309_v24 = vadd.f32 %v4007_v4, %v9217_v23  ;;  %v4220_v60 = vmul.f32 0.01, %v9235_v56 }
 0x3a6   : > { %vm4101_vm10 = vcmp.ge.f32.partialorder %v6278_v45, 0.0  ;;  %v4229_v15 = vmul.f32 0.01, %v6278_v45  ;;  %v6310_v62 = vadd.f32 %v4009_v39, %v9224_v19  ;;  %v4463_v17 = vpack.c.bf16 %v4343_v48, %v4335_v25 }
 0x3a7   : > { %v4349_v57 = vsel %vm4093_vm8, %v6276_v55, %v4221_v52  ;;  %v4223_v11 = vmul.f32 0.01, %v6308_v58  ;;  %5265 = vmatprep.mubr.bf16.mxu1 %v4461_v40  ;;  %vm4094_vm11 = vcmp.ge.f32.partialorder %v9242_v26, 0.0  ;;  %vm4095_vm12 = vcmp.ge.f32.partialorder %v6308_v58, 0.0 }
 0x3a8   : > { %v3787_v44 = vpop.f32.mrb[72].mxu1  ;;  %v4357_v29 = vsel %vm4101_vm10, %v6278_v45, %v4229_v15  ;;  %v4231_v37 = vmul.f32 0.01, %v6310_v62  ;;  %5362 = vmatprep.mubr.bf16.mxu0 %v4463_v17  ;;  %5266 = vmatmul.mubr.bf16.vlgmr.msra.gmra.mrb[128].mxu1 %v4460_v21  ;;  %v4222_v54 = vmul.f32 0.01, %v9242_v26  ;;  %vm4103_vm13 = vcmp.ge.f32.partialorder %v6310_v62, 0.0 }
 0x3a9   : > { %v3789_v3 = vpop.f32.mrb[73].mxu1  ;;  %v9251_v14 = vadd.f32 %v3787_v44, %v9213_v32  ;;  %v4469_v0 = vpack.c.bf16 %v4357_v29, %v4349_v57  ;;  %v4228_v49 = vmul.f32 0.01, %v6277_v18  ;;  %6199 = vmatpush3.bf16.msra.mxu1 %v8773_v6  ;;  %5363 = vmatmul.mubr.bf16.vlgmr.msra.gmra.mrb[160].mxu0 %v4462_v13  ;;  %vm4100_vm14 = vcmp.ge.f32.partialorder %v6277_v18, 0.0 }
 0x3aa   : > { %v4013_v35 = vpop.f32.mrb[104].mxu0  ;;  %v3791_v46 = vpop.f32.mrb[74].mxu1  ;;  %v6280_v31 = vadd.f32 %v3789_v3, %v9220_v50  ;;  %vm4102_vm15 = vcmp.ge.f32.partialorder %v6309_v24, 0.0  ;;  %v4230_v10 = vmul.f32 0.01, %v6309_v24  ;;  %6192 = vmatprep.subr.bf16.mxu1 %v8796_v59  ;;  %v4351_v55 = vsel %vm4095_vm12, %v6308_v58, %v4223_v11 }
 0x3ab   : > { %v4015_v38 = vpop.f32.mrb[105].mxu0  ;;  %v3793_v47 = vpop.f32.mrb[75].mxu1  ;;  %v9259_v2 = vadd.f32 %v4013_v35, %v9217_v23  ;;  %5273 = vmatprep.mubr.bf16.mxu1 %v4469_v0  ;;  %vm4108_vm0 = vcmp.ge.f32.partialorder %v9251_v14, 0.0  ;;  %v9264_v21 = vmul.f32 0.01, %v9251_v14  ;;  %v9267_v6 = vadd.f32 %v3791_v46, %v9213_v32 }
 0x3ac   : > { %v4017_v61 = vpop.f32.mrb[106].mxu0  ;;  %v6282_v53 = vadd.f32 %v3793_v47, %v9220_v50  ;;  %vm4109_vm1 = vcmp.ge.f32.partialorder %v6280_v31, 0.0  ;;  %v4237_v8 = vmul.f32 0.01, %v6280_v31  ;;  %v4359_v43 = vsel %vm4103_vm13, %v6310_v62, %v4231_v37 }
 0x3ad   : > { %v4019_v30 = vpop.f32.mrb[107].mxu0  ;;  %v4471_v34 = vpack.c.bf16 %v4359_v43, %v4351_v55  ;;  %v4348_v59 = vsel %vm4092_vm9, %v9235_v56, %v4220_v60  ;;  %v4356_v36 = vsel %vm4100_vm14, %v6277_v18, %v4228_v49  ;;  %6200 = vmatpush3.bf16.msra.mxu1 %v8819_v16  ;;  %vm4110_vm3 = vcmp.ge.f32.partialorder %v9259_v2, 0.0 }
 0x3ae   : > { %v4245_v13 = vmul.f32 0.01, %v6282_v53  ;;  %vm4117_vm2 = vcmp.ge.f32.partialorder %v6282_v53, 0.0  ;;  %v6312_v52 = vadd.f32 %v4015_v38, %v9224_v19  ;;  %v6314_v45 = vadd.f32 %v4019_v30, %v9224_v19  ;;  %6193 = vmatprep.subr.bf16.mxu1 %v8824_v28 }
 0x3af   : > { %v4468_v39 = vpack.c.bf16 %v4356_v36, %v4348_v59  ;;  %v6313_v58 = vadd.f32 %v4017_v61, %v9217_v23  ;;  %5370 = vmatprep.mubr.bf16.mxu0 %v4471_v34  ;;  %v4350_v56 = vsel %vm4094_vm11, %v9242_v26, %v4222_v54  ;;  %v4358_v16 = vsel %vm4102_vm15, %v6309_v24, %v4230_v10 }
 0x3b0   : > { %v3797_v4 = vpop.f32.mrb[76].mxu1  ;;  %v4470_v18 = vpack.c.bf16 %v4358_v16, %v4350_v56  ;;  %v4373_v44 = vsel %vm4117_vm2, %v6282_v53, %v4245_v13  ;;  %v4238_v26 = vmul.f32 0.01, %v9259_v2  ;;  %vm4116_vm4 = vcmp.ge.f32.partialorder %v9267_v6, 0.0 }
 0x3b1   : > { %v3799_v63 = vpop.f32.mrb[77].mxu1  ;;  %v9286_v9 = vadd.f32 %v3797_v4, %v9213_v32  ;;  %5274 = vmatmul.mubr.bf16.gmra.mrb[132].mxu1 %v4468_v39  ;;  %v4244_v24 = vmul.f32 0.01, %v9267_v6  ;;  %vm4111_vm5 = vcmp.ge.f32.partialorder %v6312_v52, 0.0  ;;  %v4239_v3 = vmul.f32 0.01, %v6312_v52 }
 0x3b2   : > { %v4023_v25 = vpop.f32.mrb[108].mxu0  ;;  %v3801_v15 = vpop.f32.mrb[78].mxu1  ;;  %v9292_v28 = vadd.f32 %v3799_v63, %v9220_v50  ;;  %6201 = vmatpush3.bf16.msra.mxu1 %v8849_v42  ;;  %v4247_v57 = vmul.f32 0.01, %v6314_v45  ;;  %5371 = vmatmul.mubr.bf16.gmra.mrb[164].mxu0 %v4470_v18  ;;  %v4365_v60 = vsel %vm4109_vm1, %v6280_v31, %v4237_v8  ;;  %v4246_v11 = vmul.f32 0.01, %v6313_v58 }
 0x3b3   : > { %v9289_v62 = vadd.f32 %v4023_v25, %v9217_v23  ;;  %v4025_v40 = vpop.f32.mrb[109].mxu0  ;;  %v3803_v48 = vpop.f32.mrb[79].mxu1  ;;  %v9299_v17 = vadd.f32 %v3801_v15, %v9213_v32  ;;  %6194 = vmatprep.subr.bf16.mxu1 %v8868_v27  ;;  %vm4119_vm6 = vcmp.ge.f32.partialorder %v6314_v45, 0.0  ;;  %v9305_v35 = vmul.f32 0.01, %v9286_v9 }
 0x3b4   : > { %v4027_v29 = vpop.f32.mrb[110].mxu0  ;;  %v4477_v0 = vpack.c.bf16 %v4373_v44, %v4365_v60  ;;  %vm4118_vm7 = vcmp.ge.f32.partialorder %v6313_v58, 0.0  ;;  %vm4125_vm8 = vcmp.ge.f32.partialorder %v9292_v28, 0.0  ;;  %v4253_v42 = vmul.f32 0.01, %v9292_v28 }
 0x3b5   : > { %v4029_v46 = vpop.f32.mrb[111].mxu0  ;;  %v9308_v37 = vmul.f32 0.01, %v9289_v62  ;;  %vm4124_vm9 = vcmp.ge.f32.partialorder %v9286_v9, 0.0  ;;  %vm4126_vm10 = vcmp.ge.f32.partialorder %v9289_v62, 0.0  ;;  %v6316_v27 = vadd.f32 %v4025_v40, %v9224_v19 }
 0x3b6   : > { %vm4132_vm11 = vcmp.ge.f32.partialorder %v9299_v17, 0.0  ;;  %v6286_v31 = vadd.f32 %v3803_v48, %v9220_v50  ;;  %v6318_v38 = vadd.f32 %v4029_v46, %v9224_v19  ;;  %5281 = vmatprep.mubr.bf16.mxu1 %v4477_v0  ;;  %6202 = vmatpush3.bf16.msra.mxu1 %v8902_v41  ;;  %v9320_v47 = vadd.f32 %v4027_v29, %v9217_v23 }
 0x3b7   : > { %v4367_v54 = vsel %vm4111_vm5, %v6312_v52, %v4239_v3  ;;  %v4375_v49 = vsel %vm4119_vm6, %v6314_v45, %v4247_v57  ;;  %v4364_v61 = vsel %vm4108_vm0, %v9251_v14, %v9264_v21  ;;  %6195 = vmatprep.subr.bf16.mxu1 %v8907_v12  ;;  %v4372_v41 = vsel %vm4116_vm4, %v9267_v6, %v4244_v24 }
 0x3b8   : > { %v3807_v53 = vpop.f32.mrb[80].mxu1  ;;  %v4479_v10 = vpack.c.bf16 %v4375_v49, %v4367_v54  ;;  %v4366_v30 = vsel %vm4110_vm3, %v9259_v2, %v4238_v26  ;;  %v4374_v55 = vsel %vm4118_vm7, %v6313_v58, %v4246_v11  ;;  %v4476_v43 = vpack.c.bf16 %v4372_v41, %v4364_v61 }
 0x3b9   : > { %v3809_v13 = vpop.f32.mrb[81].mxu1  ;;  %v4478_v34 = vpack.c.bf16 %v4374_v55, %v4366_v30  ;;  %v9337_v14 = vadd.f32 %v3807_v53, %v9213_v32  ;;  %v4261_v36 = vmul.f32 0.01, %v6286_v31  ;;  %v4263_v6 = vmul.f32 0.01, %v6318_v38 }
 0x3ba   : > { %v4033_v8 = vpop.f32.mrb[112].mxu0  ;;  %v3811_v59 = vpop.f32.mrb[82].mxu1  ;;  %5378 = vmatprep.mubr.bf16.mxu0 %v4479_v10  ;;  %v9343_v4 = vadd.f32 %v3809_v13, %v9220_v50  ;;  %v4255_v45 = vmul.f32 0.01, %v6316_v27  ;;  %vm4133_vm12 = vcmp.ge.f32.partialorder %v6286_v31, 0.0  ;;  %vm4135_vm13 = vcmp.ge.f32.partialorder %v6318_v38, 0.0  ;;  %5282 = vmatmul.mubr.bf16.gmra.mrb[136].mxu1 %v4476_v43 }
 0x3bb   : > { %v9340_v12 = vadd.f32 %v4033_v8, %v9217_v23  ;;  %v4035_v21 = vpop.f32.mrb[113].mxu0  ;;  %v3813_v52 = vpop.f32.mrb[83].mxu1  ;;  %5379 = vmatmul.mubr.bf16.gmra.mrb[168].mxu0 %v4478_v34  ;;  %vm4127_vm14 = vcmp.ge.f32.partialorder %v6316_v27, 0.0  ;;  %v4260_v63 = vmul.f32 0.01, %v9299_v17  ;;  %vm4134_vm15 = vcmp.ge.f32.partialorder %v9320_v47, 0.0  ;;  %6203 = vmatpush3.bf16.msra.mxu1 %v8929_v7 }
 0x3bc   : > { %v4037_v2 = vpop.f32.mrb[114].mxu0  ;;  %v9346_v39 = vadd.f32 %v4035_v21, %v9224_v19  ;;  %v4262_v58 = vmul.f32 0.01, %v9320_v47  ;;  %v9353_v56 = vmul.f32 0.01, %v9337_v14  ;;  %v9359_v25 = vadd.f32 %v3811_v59, %v9213_v32  ;;  %6196 = vmatprep.subr.bf16.mxu1 %v8949_v22 }
 0x3bd   : > { %v9356_v16 = vmul.f32 0.01, %v9340_v12  ;;  %v4039_v15 = vpop.f32.mrb[115].mxu0  ;;  %v4381_v18 = vsel %vm4125_vm8, %v9292_v28, %v4253_v42  ;;  %vm4140_vm0 = vcmp.ge.f32.partialorder %v9337_v14, 0.0  ;;  %vm4141_vm1 = vcmp.ge.f32.partialorder %v9343_v4, 0.0 }
 0x3be   : > { %v4269_v7 = vmul.f32 0.01, %v9343_v4  ;;  %v4389_v40 = vsel %vm4133_vm12, %v6286_v31, %v4261_v36  ;;  %v4391_v48 = vsel %vm4135_vm13, %v6318_v38, %v4263_v6  ;;  %vm4143_vm2 = vcmp.ge.f32.partialorder %v9346_v39, 0.0 }
 0x3bf   : > { %v4271_v26 = vmul.f32 0.01, %v9346_v39  ;;  %v9373_v24 = vadd.f32 %v4037_v2, %v9217_v23  ;;  %v4383_v22 = vsel %vm4127_vm14, %v6316_v27, %v4255_v45  ;;  %vm4142_vm3 = vcmp.ge.f32.partialorder %v9340_v12, 0.0  ;;  %6204 = vmatpush3.bf16.msra.mxu1 %v8988_v51 }
 0x3c0   : > { %v3817_v44 = vpop.f32.mrb[84].mxu1  ;;  %v6290_v28 = vadd.f32 %v3813_v52, %v9220_v50  ;;  %v6322_v3 = vadd.f32 %v4039_v15, %v9224_v19  ;;  %v4485_v57 = vpack.c.bf16 %v4389_v40, %v4381_v18  ;;  %v4487_v29 = vpack.c.bf16 %v4391_v48, %v4383_v22  ;;  %6197 = vmatprep.subr.bf16.mxu1 %v9012_v20 }
 0x3c1   : > { %v3819_v11 = vpop.f32.mrb[85].mxu1  ;;  %v4380_v46 = vsel %vm4124_vm9, %v9286_v9, %v9305_v35  ;;  %v4388_v0 = vsel %vm4132_vm11, %v9299_v17, %v4260_v63  ;;  %v4382_v42 = vsel %vm4126_vm10, %v9289_v62, %v9308_v37  ;;  %v4390_v27 = vsel %vm4134_vm15, %v9320_v47, %v4262_v58 }
 0x3c2   : > { %v4043_v60 = vpop.f32.mrb[116].mxu0  ;;  %v3821_v51 = vpop.f32.mrb[86].mxu1  ;;  %v4276_v38 = vmul.f32 0.01, %v9359_v25  ;;  %5289 = vmatprep.mubr.bf16.mxu1 %v4485_v57  ;;  %5386 = vmatprep.mubr.bf16.mxu0 %v4487_v29  ;;  %v4484_v9 = vpack.c.bf16 %v4388_v0, %v4380_v46  ;;  %v4486_v35 = vpack.c.bf16 %v4390_v27, %v4382_v42  ;;  %v9397_v17 = vadd.f32 %v3817_v44, %v9213_v32 }
 0x3c3   : > { %v4045_v31 = vpop.f32.mrb[117].mxu0  ;;  %v3823_v49 = vpop.f32.mrb[87].mxu1  ;;  %v9400_v62 = vadd.f32 %v4043_v60, %v9217_v23  ;;  %v9403_v37 = vadd.f32 %v3819_v11, %v9220_v50  ;;  %v9409_v20 = vadd.f32 %v3821_v51, %v9213_v32  ;;  %vm4148_vm4 = vcmp.ge.f32.partialorder %v9359_v25, 0.0  ;;  %6205 = vmatpush3.bf16.msra.mxu1 %v9027_v5 }
 0x3c4   : > { %v4047_v54 = vpop.f32.mrb[118].mxu0  ;;  %v9406_v47 = vadd.f32 %v4045_v31, %v9224_v19  ;;  %vm4150_vm5 = vcmp.ge.f32.partialorder %v9373_v24, 0.0  ;;  %v4278_v53 = vmul.f32 0.01, %v9373_v24  ;;  %v4277_v10 = vmul.f32 0.01, %v6290_v28  ;;  %5290 = vmatmul.mubr.bf16.gmra.mrb[140].mxu1 %v4484_v9  ;;  %5387 = vmatmul.mubr.bf16.gmra.mrb[172].mxu0 %v4486_v35 }
 0x3c5   : > { %v4049_v61 = vpop.f32.mrb[119].mxu0  ;;  %vm4149_vm6 = vcmp.ge.f32.partialorder %v6290_v28, 0.0  ;;  %vm4151_vm7 = vcmp.ge.f32.partialorder %v6322_v3, 0.0  ;;  %v4279_v41 = vmul.f32 0.01, %v6322_v3  ;;  %v9423_v13 = vadd.f32 %v4047_v54, %v9217_v23  ;;  %6198 = vmatprep.subr.bf16.mxu1 %v9037_v33 }
 0x3c6   : > { %v9415_v30 = vmul.f32 0.01, %v9397_v17  ;;  %v9419_v55 = vmul.f32 0.01, %v9400_v62  ;;  %v4285_v8 = vmul.f32 0.01, %v9403_v37  ;;  %v6294_v43 = vadd.f32 %v3823_v49, %v9220_v50 }
 0x3c7   : > { %vm4157_vm8 = vcmp.ge.f32.partialorder %v9403_v37, 0.0  ;;  %vm4159_vm9 = vcmp.ge.f32.partialorder %v9406_v47, 0.0  ;;  %v4287_v34 = vmul.f32 0.01, %v9406_v47  ;;  %v9431_v5 = vmul.f32 0.01, %v9409_v20  ;;  %6206 = vmatpush3.bf16.msra.mxu1 %v9087_v1 }
 0x3c8   : > { %vm4156_vm10 = vcmp.ge.f32.partialorder %v9397_v17, 0.0  ;;  %v9435_v21 = vadd.f32 %v4049_v61, %v9224_v19  ;;  %v4397_v59 = vsel %vm4141_vm1, %v9343_v4, %v4269_v7  ;;  %v4405_v33 = vsel %vm4149_vm6, %v6290_v28, %v4277_v10  ;;  %v3827_v6 = vpop.f32.mrb[88].mxu1 }
 0x3c9   : > { %v4399_v36 = vsel %vm4143_vm2, %v9346_v39, %v4271_v26  ;;  %vm4158_vm11 = vcmp.ge.f32.partialorder %v9400_v62, 0.0  ;;  %vm4164_vm12 = vcmp.ge.f32.partialorder %v9409_v20, 0.0  ;;  %v4493_v52 = vpack.c.bf16 %v4405_v33, %v4397_v59  ;;  %v3829_v58 = vpop.f32.mrb[89].mxu1 }
 0x3ca   : > { %v4053_v2 = vpop.f32.mrb[120].mxu0  ;;  %v4407_v45 = vsel %vm4151_vm7, %v6322_v3, %v4279_v41  ;;  %v4396_v4 = vsel %vm4140_vm0, %v9337_v14, %v9353_v56  ;;  %v4404_v63 = vsel %vm4148_vm4, %v9359_v25, %v4276_v38  ;;  %vm4166_vm13 = vcmp.ge.f32.partialorder %v9423_v13, 0.0  ;;  %v3831_v40 = vpop.f32.mrb[90].mxu1 }
 0x3cb   : > { %v4055_v39 = vpop.f32.mrb[121].mxu0  ;;  %v9457_v15 = vmul.f32 0.01, %v9423_v13  ;;  %v4495_v18 = vpack.c.bf16 %v4407_v45, %v4399_v36  ;;  %v4492_v7 = vpack.c.bf16 %v4404_v63, %v4396_v4  ;;  %5297 = vmatprep.mubr.bf16.mxu1 %v4493_v52  ;;  %v4398_v14 = vsel %vm4142_vm3, %v9340_v12, %v9356_v16  ;;  %v3833_v44 = vpop.f32.mrb[91].mxu1 }
 0x3cc   : > { %v4057_v48 = vpop.f32.mrb[122].mxu0  ;;  %v4406_v56 = vsel %vm4150_vm5, %v9373_v24, %v4278_v53  ;;  %v9467_v1 = vadd.f32 %v3827_v6, %v9213_v32  ;;  %v6327_v25 = vadd.f32 %v4053_v2, %v9217_v23  ;;  %v4293_v22 = vmul.f32 0.01, %v6294_v43 }
 0x3cd   : > { %v4059_v26 = vpop.f32.mrb[123].mxu0  ;;  %5394 = vmatprep.mubr.bf16.mxu0 %v4495_v18  ;;  %5298 = vmatmul.mubr.bf16.gmra.mrb[144].mxu1 %v4492_v7  ;;  %v4494_v28 = vpack.c.bf16 %v4406_v56, %v4398_v14  ;;  %v9471_v3 = vadd.f32 %v3829_v58, %v9220_v50  ;;  %v9474_v12 = vadd.f32 %v4055_v39, %v9224_v19  ;;  %vm4165_vm14 = vcmp.ge.f32.partialorder %v6294_v43, 0.0 }
 0x3ce   : > { %vm4167_vm15 = vcmp.ge.f32.partialorder %v9435_v21, 0.0  ;;  %vm4174_vm0 = vcmp.ge.f32.partialorder %v6327_v25, 0.0  ;;  %v4302_v16 = vmul.f32 0.01, %v6327_v25  ;;  %v4295_v24 = vmul.f32 0.01, %v9435_v21 }
 0x3cf   : > { %5395 = vmatmul.mubr.bf16.gmra.mrb[176].mxu0 %v4494_v28  ;;  %v9479_v57 = vmul.f32 0.01, %v9467_v1  ;;  %v9482_v29 = vmul.f32 0.01, %v9471_v3  ;;  %vm4172_vm1 = vcmp.ge.f32.partialorder %v9467_v1, 0.0  ;;  %vm4173_vm2 = vcmp.ge.f32.partialorder %v9471_v3, 0.0 }
 0x3d0   : > { %v9487_v60 = vmul.f32 0.01, %v9474_v12  ;;  %v9490_v11 = vadd.f32 %v3831_v40, %v9213_v32  ;;  %v6329_v46 = vadd.f32 %v4057_v48, %v9217_v23  ;;  %v6298_v0 = vadd.f32 %v3833_v44, %v9220_v50  ;;  %v3837_v42 = vpop.f32.mrb[92].mxu1 }
 0x3d1   : > { %v9494_v27 = vsel %vm4174_vm0, %v6327_v25, %v4302_v16  ;;  %v9497_v31 = vadd.f32 %v4059_v26, %v9224_v19  ;;  %v4413_v51 = vsel %vm4157_vm8, %v9403_v37, %v4285_v8  ;;  %v4421_v38 = vsel %vm4165_vm14, %v6294_v43, %v4293_v22  ;;  %v3839_v35 = vpop.f32.mrb[93].mxu1 }
 0x3d2   : > { %v4063_v9 = vpop.f32.mrb[124].mxu0  ;;  %v4308_v54 = vmul.f32 0.01, %v9490_v11  ;;  %vm4182_vm3 = vcmp.ge.f32.partialorder %v6329_v46, 0.0  ;;  %v4310_v49 = vmul.f32 0.01, %v6329_v46  ;;  %v4415_v61 = vsel %vm4159_vm9, %v9406_v47, %v4287_v34 }
 0x3d3   : > { %vm4180_vm4 = vcmp.ge.f32.partialorder %v9490_v11, 0.0  ;;  %vm4181_vm5 = vcmp.ge.f32.partialorder %v6298_v0, 0.0  ;;  %v4309_v53 = vmul.f32 0.01, %v6298_v0  ;;  %v4311_v10 = vmul.f32 0.01, %v9497_v31 }
 0x3d4   : > { %vm4175_vm6 = vcmp.ge.f32.partialorder %v9474_v12, 0.0  ;;  %v9510_v37 = vsel %vm4182_vm3, %v6329_v46, %v4310_v49  ;;  %vm4183_vm7 = vcmp.ge.f32.partialorder %v9497_v31, 0.0  ;;  %v4501_v41 = vpack.c.bf16 %v4421_v38, %v4413_v51  ;;  %v4065_v43 = vpop.f32.mrb[125].mxu0  ;;  %v3841_v34 = vpop.f32.mrb[94].mxu1 }
 0x3d5   : > { %v4423_v8 = vsel %vm4167_vm15, %v9435_v21, %v4295_v24  ;;  %v4412_v47 = vsel %vm4156_vm10, %v9397_v17, %v9415_v30  ;;  %v4510_v59 = vpack.c.bf16 %v9510_v37, %v9494_v27  ;;  %v4420_v36 = vsel %vm4164_vm12, %v9409_v20, %v9431_v5  ;;  %v4067_v6 = vpop.f32.mrb[126].mxu0  ;;  %v3843_v2 = vpop.f32.mrb[95].mxu1 }
 0x3d6   : > { %v4503_v33 = vpack.c.bf16 %v4423_v8, %v4415_v61  ;;  %v4414_v21 = vsel %vm4158_vm11, %v9400_v62, %v9419_v55  ;;  %5305 = vmatprep.mubr.bf16.mxu1 %v4501_v41  ;;  %v4500_v17 = vpack.c.bf16 %v4420_v36, %v4412_v47  ;;  %v4422_v30 = vsel %vm4166_vm13, %v9423_v13, %v9457_v15  ;;  %v4069_v4 = vpop.f32.mrb[127].mxu0 }
 0x3d7   : > { %v6299_v52 = vadd.f32 %v3837_v42, %v9213_v32  ;;  %v6331_v45 = vadd.f32 %v4063_v9, %v9217_v23  ;;  %v4502_v20 = vpack.c.bf16 %v4422_v30, %v4414_v21  ;;  %v6300_v5 = vadd.f32 %v3839_v35, %v9220_v50 }
 0x3d8   : > { %5402 = vmatprep.mubr.bf16.mxu0 %v4503_v33  ;;  %v6332_v62 = vadd.f32 %v4065_v43, %v9224_v19  ;;  %v6301_v55 = vadd.f32 %v3841_v34, %v9213_v32  ;;  %5306 = vmatmul.mubr.bf16.gmra.mrb[148].mxu1 %v4500_v17  ;;  %v6333_v18 = vadd.f32 %v4067_v6, %v9217_v23 }
 0x3d9   : > { %vm4188_vm8 = vcmp.ge.f32.partialorder %v6299_v52, 0.0  ;;  %v4316_v63 = vmul.f32 0.01, %v6299_v52  ;;  %vm4190_vm9 = vcmp.ge.f32.partialorder %v6331_v45, 0.0  ;;  %v4318_v58 = vmul.f32 0.01, %v6331_v45  ;;  %5403 = vmatmul.mubr.bf16.gmra.mrb[180].mxu0 %v4502_v20 }
 0x3da   : > { %vm4189_vm10 = vcmp.ge.f32.partialorder %v6300_v5, 0.0  ;;  %v4317_v13 = vmul.f32 0.01, %v6300_v5  ;;  %vm4191_vm11 = vcmp.ge.f32.partialorder %v6332_v62, 0.0  ;;  %v4319_v39 = vmul.f32 0.01, %v6332_v62 }
 0x3db   : > { %vm4196_vm12 = vcmp.ge.f32.partialorder %v6301_v55, 0.0  ;;  %v4324_v15 = vmul.f32 0.01, %v6301_v55  ;;  %v6302_v7 = vadd.f32 %v3843_v2, %v9220_v50  ;;  %v6334_v40 = vadd.f32 %v4069_v4, %v9224_v19 }
 0x3dc   : > { %v4429_v32 = vsel %vm4173_vm2, %v9471_v3, %v9482_v29  ;;  %v4437_v48 = vsel %vm4181_vm5, %v6298_v0, %v4309_v53  ;;  %v4428_v14 = vsel %vm4172_vm1, %v9467_v1, %v9479_v57  ;;  %vm4198_vm13 = vcmp.ge.f32.partialorder %v6333_v18, 0.0 }
 0x3dd   : > { %v4326_v56 = vmul.f32 0.01, %v6333_v18  ;;  %vm4197_vm14 = vcmp.ge.f32.partialorder %v6302_v7, 0.0  ;;  %v4325_v23 = vmul.f32 0.01, %v6302_v7  ;;  %vm4199_vm15 = vcmp.ge.f32.partialorder %v6334_v40, 0.0 }
 0x3de   : > { %v4327_v50 = vmul.f32 0.01, %v6334_v40  ;;  %v4509_v25 = vpack.c.bf16 %v4437_v48, %v4429_v32  ;;  %v4436_v19 = vsel %vm4180_vm4, %v9490_v11, %v4308_v54  ;;  %v4445_v26 = vsel %vm4189_vm10, %v6300_v5, %v4317_v13 }
 0x3df   : > { %v4508_v44 = vpack.c.bf16 %v4436_v19, %v4428_v14  ;;  %v4453_v22 = vsel %vm4197_vm14, %v6302_v7, %v4325_v23  ;;  %v4444_v28 = vsel %vm4188_vm8, %v6299_v52, %v4316_v63  ;;  %v4452_v1 = vsel %vm4196_vm12, %v6301_v55, %v4324_v15 }
 0x3e0   : > { %5313 = vmatprep.mubr.bf16.mxu1 %v4509_v25  ;;  %v4517_v3 = vpack.c.bf16 %v4453_v22, %v4445_v26  ;;  %v4431_v16 = vsel %vm4175_vm6, %v9474_v12, %v9487_v60  ;;  %v4439_v24 = vsel %vm4183_vm7, %v9497_v31, %v4311_v10  ;;  %v4516_v57 = vpack.c.bf16 %v4452_v1, %v4444_v28  ;;  %v9574_v31 = vld [vmem:[%s9673_s8] ss:$0 sm:$0xff] }
 0x3e1   : > { %5314 = vmatmul.mubr.bf16.gmra.mrb[152].mxu1 %v4508_v44  ;;  %v4511_v29 = vpack.c.bf16 %v4439_v24, %v4431_v16  ;;  %v4447_v11 = vsel %vm4191_vm11, %v6332_v62, %v4319_v39  ;;  %v4455_v46 = vsel %vm4199_vm15, %v6334_v40, %v4327_v50  ;;  %v4446_v42 = vsel %vm4190_vm9, %v6331_v45, %v4318_v58 }
 0x3e2   : > { %5321 = vmatprep.mubr.bf16.mxu1 %v4517_v3  ;;  %v4519_v0 = vpack.c.bf16 %v4455_v46, %v4447_v11  ;;  %v4454_v51 = vsel %vm4198_vm13, %v6333_v18, %v4326_v56 }
 0x3e3   : > { %v4518_v38 = vpack.c.bf16 %v4454_v51, %v4446_v42 }
 0x3e9   : > { %5322 = vmatmul.mubr.bf16.gmra.mrb[156].mxu1 %v4516_v57 }
 0x3ea   : > { %5410 = vmatprep.mubr.bf16.mxu1 %v4511_v29 }
 0x3f1   : > { %5411 = vmatmul.mubr.bf16.vlgmr.msra.gmra.mrb[160].mxu1 %v4510_v59 }
 0x3f2   : > { %5418 = vmatprep.mubr.bf16.mxu1 %v4519_v0 }
 0x3f9   : > { %5419 = vmatmul.mubr.bf16.gmra.mrb[164].mxu1 %v4518_v38 }
 0x3fa   : > { %v5951_v12 = vpop.f32.mrb[96].mxu1 }
 0x3fb   : > { %v5952_v9 = vpop.f32.mrb[97].mxu1 }
 0x3fc   : > { %v6015_v60 = vpop.f32.mrb[128].mxu0  ;;  %v5953_v35 = vadd.f32 %v5952_v9, %v5951_v12  ;;  %v5954_v49 = vpop.f32.mrb[98].mxu1 }
 0x3fd   : > { %v6016_v54 = vpop.f32.mrb[129].mxu0  ;;  %v5955_v10 = vpop.f32.mrb[99].mxu1 }
 0x3fe   : > { %v6017_v61 = vadd.f32 %v6016_v54, %v6015_v60  ;;  %v6018_v53 = vpop.f32.mrb[130].mxu0  ;;  %v5074_v41 = vadd.f32 %v5953_v35, %v9574_v31  ;;  %v5956_v27 = vadd.f32 %v5955_v10, %v5954_v49 }
 0x3ff   : > { %v6019_v37 = vpop.f32.mrb[131].mxu0 }
 0x400   : > { %v6020_v8 = vadd.f32 %v6019_v37, %v6018_v53  ;;  %v9577_v47 = vadd.f32 %v6017_v61, %v5074_v41  ;;  %v5077_v43 = vadd.f32 %v5956_v27, %v9574_v31 }
 0x402   : > { %v9580_v34 = vadd.f32 %v6020_v8, %v5077_v43  ;;  %v5957_v59 = vpop.f32.mrb[100].mxu1 }
 0x403   : > { %v5958_v36 = vpop.f32.mrb[101].mxu1 }
 0x404   : > { %v6021_v33 = vpop.f32.mrb[132].mxu0  ;;  %v5959_v21 = vadd.f32 %v5958_v36, %v5957_v59  ;;  %v5960_v2 = vpop.f32.mrb[102].mxu1 }
 0x405   : > { %v6022_v6 = vpop.f32.mrb[133].mxu0  ;;  %v5961_v52 = vpop.f32.mrb[103].mxu1 }
 0x406   : > { %v6023_v17 = vadd.f32 %v6022_v6, %v6021_v33  ;;  %v6024_v30 = vpop.f32.mrb[134].mxu0  ;;  %v5082_v45 = vadd.f32 %v5959_v21, %v9574_v31  ;;  %v5962_v4 = vadd.f32 %v5961_v52, %v5960_v2 }
 0x407   : > { %v6025_v20 = vpop.f32.mrb[135].mxu0 }
 0x408   : > { %v6026_v5 = vadd.f32 %v6025_v20, %v6024_v30  ;;  %v9583_v62 = vadd.f32 %v6023_v17, %v5082_v45  ;;  %v5085_v55 = vadd.f32 %v5962_v4, %v9574_v31 }
 0x40a   : > { %v9586_v63 = vadd.f32 %v6026_v5, %v5085_v55 }
 0x40b   : > { %v5963_v58 = vpop.f32.mrb[104].mxu1 }
 0x40c   : > { %v5964_v13 = vpop.f32.mrb[105].mxu1 }
 0x40d   : > { %v5965_v15 = vadd.f32 %v5964_v13, %v5963_v58  ;;  %v5966_v18 = vpop.f32.mrb[106].mxu1 }
 0x40e   : > { %v6027_v39 = vpop.f32.mrb[136].mxu0  ;;  %v5967_v40 = vpop.f32.mrb[107].mxu1 }
 0x40f   : > { %v6028_v7 = vpop.f32.mrb[137].mxu0  ;;  %v5090_v32 = vadd.f32 %v5965_v15, %v9574_v31  ;;  %v5968_v56 = vadd.f32 %v5967_v40, %v5966_v18 }
 0x410   : > { %v6029_v48 = vadd.f32 %v6028_v7, %v6027_v39  ;;  %v6030_v14 = vpop.f32.mrb[138].mxu0 }
 0x411   : > { %v6031_v23 = vpop.f32.mrb[139].mxu0  ;;  %v5093_v25 = vadd.f32 %v5968_v56, %v9574_v31 }
 0x412   : > { %v9589_v50 = vadd.f32 %v6029_v48, %v5090_v32  ;;  %v6032_v19 = vadd.f32 %v6031_v23, %v6030_v14 }
 0x414   : > { %v9592_v44 = vadd.f32 %v6032_v19, %v5093_v25 }
 0x416   : > { %v5969_v26 = vpop.f32.mrb[108].mxu1 }
 0x417   : > { %v5970_v22 = vpop.f32.mrb[109].mxu1  ;;  %v6033_v28 = vpop.f32.mrb[140].mxu0 }
 0x418   : > { %v5971_v3 = vadd.f32 %v5970_v22, %v5969_v26  ;;  %v5972_v1 = vpop.f32.mrb[110].mxu1  ;;  %v6034_v16 = vpop.f32.mrb[141].mxu0 }
 0x419   : > { %v5973_v24 = vpop.f32.mrb[111].mxu1  ;;  %v6035_v29 = vadd.f32 %v6034_v16, %v6033_v28  ;;  %v6036_v11 = vpop.f32.mrb[142].mxu0 }
 0x41a   : > { %v5098_v57 = vadd.f32 %v5971_v3, %v9574_v31  ;;  %v5974_v46 = vadd.f32 %v5973_v24, %v5972_v1  ;;  %v6037_v0 = vpop.f32.mrb[143].mxu0 }
 0x41b   : > { %v6038_v38 = vadd.f32 %v6037_v0, %v6036_v11 }
 0x41c   : > { %v9595_v42 = vadd.f32 %v6035_v29, %v5098_v57  ;;  %v5101_v51 = vadd.f32 %v5974_v46, %v9574_v31 }
 0x41e   : > { %v9598_v12 = vadd.f32 %v6038_v38, %v5101_v51 }
 0x420   : > { %v5975_v60 = vpop.f32.mrb[112].mxu1 }
 0x421   : > { %v6039_v9 = vpop.f32.mrb[144].mxu0  ;;  %v5976_v35 = vpop.f32.mrb[113].mxu1 }
 0x422   : > { %v5977_v54 = vadd.f32 %v5976_v35, %v5975_v60  ;;  %v6040_v49 = vpop.f32.mrb[145].mxu0  ;;  %v5978_v61 = vpop.f32.mrb[114].mxu1 }
 0x423   : > { %v6041_v53 = vadd.f32 %v6040_v49, %v6039_v9  ;;  %v6042_v10 = vpop.f32.mrb[146].mxu0  ;;  %v5979_v41 = vpop.f32.mrb[115].mxu1 }
 0x424   : > { %v5106_v27 = vadd.f32 %v5977_v54, %v9574_v31  ;;  %v5980_v37 = vadd.f32 %v5979_v41, %v5978_v61  ;;  %v6043_v8 = vpop.f32.mrb[147].mxu0 }
 0x425   : > { %v6044_v43 = vadd.f32 %v6043_v8, %v6042_v10 }
 0x426   : > { %v9601_v59 = vadd.f32 %v6041_v53, %v5106_v27  ;;  %v5109_v33 = vadd.f32 %v5980_v37, %v9574_v31 }
 0x428   : > { %v9604_v36 = vadd.f32 %v6044_v43, %v5109_v33 }
 0x42b   : > { %v5981_v21 = vpop.f32.mrb[116].mxu1  ;;  %v6045_v6 = vpop.f32.mrb[148].mxu0 }
 0x42c   : > { %v5982_v2 = vpop.f32.mrb[117].mxu1  ;;  %v6046_v17 = vpop.f32.mrb[149].mxu0 }
 0x42d   : > { %v5983_v30 = vadd.f32 %v5982_v2, %v5981_v21  ;;  %v6047_v52 = vadd.f32 %v6046_v17, %v6045_v6  ;;  %v5984_v45 = vpop.f32.mrb[118].mxu1  ;;  %v6048_v4 = vpop.f32.mrb[150].mxu0 }
 0x42e   : > { %v5985_v20 = vpop.f32.mrb[119].mxu1  ;;  %v6049_v5 = vpop.f32.mrb[151].mxu0 }
 0x42f   : > { %v5114_v55 = vadd.f32 %v5983_v30, %v9574_v31  ;;  %v5986_v58 = vadd.f32 %v5985_v20, %v5984_v45  ;;  %v6050_v13 = vadd.f32 %v6049_v5, %v6048_v4 }
 0x431   : > { %v9607_v39 = vadd.f32 %v6047_v52, %v5114_v55  ;;  %v5117_v15 = vadd.f32 %v5986_v58, %v9574_v31 }
 0x433   : > { %v9610_v18 = vadd.f32 %v6050_v13, %v5117_v15 }
 0x434   : > { %v5987_v7 = vpop.f32.mrb[120].mxu1  ;;  %v6051_v40 = vpop.f32.mrb[152].mxu0 }
 0x435   : > { %v5988_v32 = vpop.f32.mrb[121].mxu1  ;;  %v6052_v48 = vpop.f32.mrb[153].mxu0 }
 0x436   : > { %v5989_v14 = vadd.f32 %v5988_v32, %v5987_v7  ;;  %v6053_v56 = vadd.f32 %v6052_v48, %v6051_v40  ;;  %v5990_v23 = vpop.f32.mrb[122].mxu1  ;;  %v6054_v25 = vpop.f32.mrb[154].mxu0 }
 0x437   : > { %v5991_v19 = vpop.f32.mrb[123].mxu1  ;;  %v6055_v26 = vpop.f32.mrb[155].mxu0 }
 0x438   : > { %v5122_v22 = vadd.f32 %v5989_v14, %v9574_v31  ;;  %v5992_v28 = vadd.f32 %v5991_v19, %v5990_v23  ;;  %v6056_v3 = vadd.f32 %v6055_v26, %v6054_v25 }
 0x43a   : > { %v9613_v1 = vadd.f32 %v6053_v56, %v5122_v22  ;;  %v5125_v16 = vadd.f32 %v5992_v28, %v9574_v31 }
 0x43c   : > { %v9616_v24 = vadd.f32 %v6056_v3, %v5125_v16  ;;  %v5993_v57 = vpop.f32.mrb[124].mxu1  ;;  %v6057_v29 = vpop.f32.mrb[156].mxu0 }
 0x43d   : > { %v5994_v11 = vpop.f32.mrb[125].mxu1  ;;  %v6058_v46 = vpop.f32.mrb[157].mxu0 }
 0x43e   : > { %v5995_v0 = vadd.f32 %v5994_v11, %v5993_v57  ;;  %v6059_v51 = vadd.f32 %v6058_v46, %v6057_v29  ;;  %v5996_v38 = vpop.f32.mrb[126].mxu1  ;;  %v6060_v60 = vpop.f32.mrb[158].mxu0 }
 0x43f   : > { %v5997_v9 = vpop.f32.mrb[127].mxu1  ;;  %v6061_v35 = vpop.f32.mrb[159].mxu0 }
 0x440   : > { %v5130_v54 = vadd.f32 %v5995_v0, %v9574_v31  ;;  %v5998_v49 = vadd.f32 %v5997_v9, %v5996_v38  ;;  %v6062_v61 = vadd.f32 %v6061_v35, %v6060_v60 }
 0x442   : > { %v9619_v53 = vadd.f32 %v6059_v51, %v5130_v54  ;;  %v5133_v10 = vadd.f32 %v5998_v49, %v9574_v31 }
 0x444   : > { %v9622_v41 = vadd.f32 %v6062_v61, %v5133_v10 }
 0x47b   : > { %v6079_v27 = vpop.f32.mrb[128].mxu1 }
 0x47c   : > { %v6143_v37 = vpop.f32.mrb[160].mxu0  ;;  %v6080_v8 = vpop.f32.mrb[129].mxu1 }
 0x47d   : > { %v6081_v43 = vadd.f32 %v6080_v8, %v6079_v27  ;;  %v6144_v33 = vpop.f32.mrb[161].mxu0  ;;  %v6082_v21 = vpop.f32.mrb[130].mxu1 }
 0x47e   : > { %v6145_v6 = vadd.f32 %v6144_v33, %v6143_v37  ;;  %v6146_v2 = vpop.f32.mrb[162].mxu0  ;;  %v6083_v17 = vpop.f32.mrb[131].mxu1 }
 0x47f   : > { %v5268_v30 = vadd.f32 %v6081_v43, %v9577_v47  ;;  %v6084_v52 = vadd.f32 %v6083_v17, %v6082_v21  ;;  %v6147_v45 = vpop.f32.mrb[163].mxu0 }
 0x480   : > { %v6148_v4 = vadd.f32 %v6147_v45, %v6146_v2 }
 0x481   : > { %v5365_v20 = vadd.f32 %v6145_v6, %v5268_v30  ;;  %v5271_v31 = vadd.f32 %v6084_v52, %v9580_v34 }
 0x483   : > { %6664 = vtanh.f32 %v5365_v20  ;;  %v5368_v5 = vadd.f32 %v6148_v4, %v5271_v31 }
 0x484   : > { %v6085_v55 = vpop.f32.mrb[132].mxu1 }
 0x485   : > { %v6086_v58 = vpop.f32.mrb[133].mxu1  ;;  %6666 = vtanh.f32 %v5368_v5  ;;  %v6149_v13 = vpop.f32.mrb[164].mxu0 }
 0x486   : > { %v6087_v15 = vadd.f32 %v6086_v58, %v6085_v55  ;;  %v6088_v7 = vpop.f32.mrb[134].mxu1  ;;  %v6150_v40 = vpop.f32.mrb[165].mxu0 }
 0x487   : > { %v6089_v32 = vpop.f32.mrb[135].mxu1  ;;  %v6151_v47 = vadd.f32 %v6150_v40, %v6149_v13  ;;  %v6152_v14 = vpop.f32.mrb[166].mxu0 }
 0x488   : > { %v5276_v48 = vadd.f32 %v6087_v15, %v9583_v62  ;;  %v6090_v56 = vadd.f32 %v6089_v32, %v6088_v7  ;;  %v6153_v23 = vpop.f32.mrb[167].mxu0 }
 0x489   : > { %v6154_v19 = vadd.f32 %v6153_v23, %v6152_v14 }
 0x48a   : > { %v5373_v25 = vadd.f32 %v6151_v47, %v5276_v48  ;;  %v5279_v34 = vadd.f32 %v6090_v56, %v9586_v63 }
 0x48c   : > { %6668 = vtanh.f32 %v5373_v25  ;;  %v5376_v26 = vadd.f32 %v6154_v19, %v5279_v34 }
 0x48d   : > { %v6665_v22 = vpop.eup %6664  ;;  %v6091_v62 = vpop.f32.mrb[136].mxu1 }
 0x48e   : > { %6670 = vtanh.f32 %v5376_v26  ;;  %v6155_v28 = vpop.f32.mrb[168].mxu0  ;;  %5443 = vst [vmem:[%s9632_s16] sm:$0xff] %v6665_v22  ;;  %v6092_v3 = vpop.f32.mrb[137].mxu1 }
 0x48f   : > { %v6156_v16 = vpop.f32.mrb[169].mxu0  ;;  %v6667_v57 = vpop.eup %6666  ;;  %v6093_v63 = vadd.f32 %v6092_v3, %v6091_v62 }
 0x490   : > { %v6157_v29 = vadd.f32 %v6156_v16, %v6155_v28  ;;  %v6094_v11 = vpop.f32.mrb[138].mxu1  ;;  %v6158_v46 = vpop.f32.mrb[170].mxu0  ;;  %5444 = vst [vmem:[%s9632_s16 + $0x8] sm:$0xff] %v6667_v57 }
 0x491   : > { %v6095_v0 = vpop.f32.mrb[139].mxu1  ;;  %v6159_v51 = vpop.f32.mrb[171].mxu0  ;;  %v5284_v38 = vadd.f32 %v6093_v63, %v9589_v50 }
 0x492   : > { %v6096_v60 = vadd.f32 %v6095_v0, %v6094_v11  ;;  %v6160_v9 = vadd.f32 %v6159_v51, %v6158_v46 }
 0x493   : > { %v5381_v35 = vadd.f32 %v6157_v29, %v5284_v38 }
 0x494   : > { %v5287_v54 = vadd.f32 %v6096_v60, %v9592_v44 }
 0x495   : > { %6672 = vtanh.f32 %v5381_v35 }
 0x496   : > { %v6669_v49 = vpop.eup %6668  ;;  %v5384_v61 = vadd.f32 %v6160_v9, %v5287_v54 }
 0x497   : > { %5445 = vst [vmem:[%s9632_s16 + $0x10] sm:$0xff] %v6669_v49  ;;  %v6097_v10 = vpop.f32.mrb[140].mxu1  ;;  %v6161_v27 = vpop.f32.mrb[172].mxu0 }
 0x498   : > { %v6671_v37 = vpop.eup %6670  ;;  %6674 = vtanh.f32 %v5384_v61  ;;  %v6098_v8 = vpop.f32.mrb[141].mxu1 }
 0x499   : > { %v6162_v43 = vpop.f32.mrb[173].mxu0  ;;  %5446 = vst [vmem:[%s9632_s16 + $0x18] sm:$0xff] %v6671_v37  ;;  %v6099_v33 = vadd.f32 %v6098_v8, %v6097_v10  ;;  %v6100_v50 = vpop.f32.mrb[142].mxu1 }
 0x49a   : > { %v6163_v21 = vadd.f32 %v6162_v43, %v6161_v27  ;;  %v6164_v6 = vpop.f32.mrb[174].mxu0  ;;  %v6101_v2 = vpop.f32.mrb[143].mxu1 }
 0x49b   : > { %v6165_v17 = vpop.f32.mrb[175].mxu0  ;;  %v5292_v44 = vadd.f32 %v6099_v33, %v9595_v42  ;;  %v6102_v30 = vadd.f32 %v6101_v2, %v6100_v50 }
 0x49c   : > { %v6166_v52 = vadd.f32 %v6165_v17, %v6164_v6 }
 0x49d   : > { %v5389_v45 = vadd.f32 %v6163_v21, %v5292_v44  ;;  %v5295_v4 = vadd.f32 %v6102_v30, %v9598_v12 }
 0x49f   : > { %6676 = vtanh.f32 %v5389_v45  ;;  %v5392_v20 = vadd.f32 %v6166_v52, %v5295_v4  ;;  %v6673_v5 = vpop.eup %6672 }
 0x4a0   : > { %v6103_v31 = vpop.f32.mrb[144].mxu1  ;;  %5447 = vst [vmem:[%s9632_s16 + $0x20] sm:$0xff] %v6673_v5 }
 0x4a1   : > { %v6104_v55 = vpop.f32.mrb[145].mxu1  ;;  %6678 = vtanh.f32 %v5392_v20 }
 0x4a2   : > { %v6167_v58 = vpop.f32.mrb[176].mxu0  ;;  %v6105_v13 = vadd.f32 %v6104_v55, %v6103_v31  ;;  %v6106_v15 = vpop.f32.mrb[146].mxu1 }
 0x4a3   : > { %v6675_v7 = vpop.eup %6674  ;;  %v6168_v40 = vpop.f32.mrb[177].mxu0 }
 0x4a4   : > { %v6107_v42 = vpop.f32.mrb[147].mxu1  ;;  %5448 = vst [vmem:[%s9632_s16 + $0x28] sm:$0xff] %v6675_v7  ;;  %v5300_v32 = vadd.f32 %v6105_v13, %v9601_v59  ;;  %v6169_v48 = vadd.f32 %v6168_v40, %v6167_v58  ;;  %v6170_v12 = vpop.f32.mrb[178].mxu0 }
 0x4a5   : > { %v6108_v47 = vadd.f32 %v6107_v42, %v6106_v15  ;;  %v6171_v14 = vpop.f32.mrb[179].mxu0 }
 0x4a6   : > { %v5397_v56 = vadd.f32 %v6169_v48, %v5300_v32  ;;  %v6172_v25 = vadd.f32 %v6171_v14, %v6170_v12 }
 0x4a7   : > { %v5303_v23 = vadd.f32 %v6108_v47, %v9604_v36 }
 0x4a8   : > { %6680 = vtanh.f32 %v5397_v56 }
 0x4a9   : > { %v5400_v34 = vadd.f32 %v6172_v25, %v5303_v23  ;;  %v6677_v19 = vpop.eup %6676 }
 0x4aa   : > { %5449 = vst [vmem:[%s9632_s16 + $0x30] sm:$0xff] %v6677_v19 }
 0x4ab   : > { %6682 = vtanh.f32 %v5400_v34  ;;  %v6109_v26 = vpop.f32.mrb[148].mxu1  ;;  %v6679_v22 = vpop.eup %6678 }
 0x4ac   : > { %v6173_v62 = vpop.f32.mrb[180].mxu0  ;;  %v6110_v28 = vpop.f32.mrb[149].mxu1  ;;  %5450 = vst [vmem:[%s9632_s16 + $0x38] sm:$0xff] %v6679_v22 }
 0x4ad   : > { %v6111_v59 = vadd.f32 %v6110_v28, %v6109_v26  ;;  %v6174_v3 = vpop.f32.mrb[181].mxu0  ;;  %v6112_v16 = vpop.f32.mrb[150].mxu1 }
 0x4ae   : > { %v6175_v57 = vadd.f32 %v6174_v3, %v6173_v62  ;;  %v6176_v63 = vpop.f32.mrb[182].mxu0  ;;  %v6113_v29 = vpop.f32.mrb[151].mxu1 }
 0x4af   : > { %v5308_v36 = vadd.f32 %v6111_v59, %v9607_v39  ;;  %v6114_v11 = vadd.f32 %v6113_v29, %v6112_v16  ;;  %v6177_v46 = vpop.f32.mrb[183].mxu0 }
 0x4b0   : > { %v6178_v0 = vadd.f32 %v6177_v46, %v6176_v63 }
 0x4b1   : > { %v5405_v51 = vadd.f32 %v6175_v57, %v5308_v36  ;;  %v5311_v38 = vadd.f32 %v6114_v11, %v9610_v18 }
 0x4b2   : > { %v6681_v60 = vpop.eup %6680 }
 0x4b3   : > { %5451 = vst [vmem:[%s9632_s16 + $0x40] sm:$0xff] %v6681_v60  ;;  %6684 = vtanh.f32 %v5405_v51  ;;  %v5408_v9 = vadd.f32 %v6178_v0, %v5311_v38 }
 0x4b4   : > { %v6115_v35 = vpop.f32.mrb[152].mxu1 }
 0x4b5   : > { %v6683_v54 = vpop.eup %6682  ;;  %v6116_v49 = vpop.f32.mrb[153].mxu1  ;;  %6686 = vtanh.f32 %v5408_v9 }
 0x4b6   : > { %5452 = vst [vmem:[%s9632_s16 + $0x48] sm:$0xff] %v6683_v54  ;;  %v6117_v61 = vadd.f32 %v6116_v49, %v6115_v35  ;;  %v6118_v10 = vpop.f32.mrb[154].mxu1 }
 0x4b7   : > { %v6119_v39 = vpop.f32.mrb[155].mxu1 }
 0x4b8   : > { %v5316_v27 = vadd.f32 %v6117_v61, %v9613_v1  ;;  %v6120_v37 = vadd.f32 %v6119_v39, %v6118_v10 }
 0x4ba   : > { %v5319_v8 = vadd.f32 %v6120_v37, %v9616_v24 }
 0x4bc   : > { %v6121_v18 = vpop.f32.mrb[156].mxu1 }
 0x4bd   : > { %v6122_v43 = vpop.f32.mrb[157].mxu1  ;;  %v6685_v33 = vpop.eup %6684 }
 0x4be   : > { %v6123_v21 = vadd.f32 %v6122_v43, %v6121_v18  ;;  %v6124_v50 = vpop.f32.mrb[158].mxu1  ;;  %5453 = vst [vmem:[%s9632_s16 + $0x50] sm:$0xff] %v6685_v33 }
 0x4bf   : > { %v6125_v6 = vpop.f32.mrb[159].mxu1  ;;  %v6687_v2 = vpop.eup %6686 }
 0x4c0   : > { %v5324_v17 = vadd.f32 %v6123_v21, %v9619_v53  ;;  %v6126_v44 = vadd.f32 %v6125_v6, %v6124_v50  ;;  %5454 = vst [vmem:[%s9632_s16 + $0x58] sm:$0xff] %v6687_v2 }
 0x4c2   : > { %v5327_v30 = vadd.f32 %v6126_v44, %v9622_v41 }
 0x4c4   : > { %v6179_v52 = vpop.f32.mrb[160].mxu1 }
 0x4c5   : > { %v6180_v45 = vpop.f32.mrb[161].mxu1 }
 0x4c6   : > { %v6181_v1 = vadd.f32 %v6180_v45, %v6179_v52  ;;  %v6182_v4 = vpop.f32.mrb[162].mxu1 }
 0x4c7   : > { %v6183_v20 = vpop.f32.mrb[163].mxu1 }
 0x4c8   : > { %v5413_v24 = vadd.f32 %v6181_v1, %v5316_v27  ;;  %v6184_v31 = vadd.f32 %v6183_v20, %v6182_v4 }
 0x4ca   : > { %6688 = vtanh.f32 %v5413_v24  ;;  %v5416_v5 = vadd.f32 %v6184_v31, %v5319_v8 }
 0x4cc   : > { %6690 = vtanh.f32 %v5416_v5  ;;  %v6185_v55 = vpop.f32.mrb[164].mxu1 }
 0x4cd   : > { %v6186_v58 = vpop.f32.mrb[165].mxu1 }
 0x4ce   : > { %v6187_v53 = vadd.f32 %v6186_v58, %v6185_v55  ;;  %v6188_v13 = vpop.f32.mrb[166].mxu1 }
 0x4cf   : > { %v6189_v15 = vpop.f32.mrb[167].mxu1 }
 0x4d0   : > { %v5421_v41 = vadd.f32 %v6187_v53, %v5324_v17  ;;  %v6190_v7 = vadd.f32 %v6189_v15, %v6188_v13 }
 0x4d2   : > { %6692 = vtanh.f32 %v5421_v41  ;;  %v5424_v40 = vadd.f32 %v6190_v7, %v5327_v30 }
 0x4d4   : > { %v6689_v42 = vpop.eup %6688  ;;  %6694 = vtanh.f32 %v5424_v40 }
 0x4d5   : > { %5455 = vst [vmem:[%s9632_s16 + $0x60] sm:$0xff] %v6689_v42 }
 0x4d6   : > { %v6691_v32 = vpop.eup %6690 }
 0x4d7   : > { %5456 = vst [vmem:[%s9632_s16 + $0x68] sm:$0xff] %v6691_v32 }
 0x4dc   : > { %v6693_v48 = vpop.eup %6692 }
 0x4dd   : > { %5457 = vst [vmem:[%s9632_s16 + $0x70] sm:$0xff] %v6693_v48 }
 0x4de   : > { %v6695_v12 = vpop.eup %6694 }
 0x4df   : > { %5458 = vst [vmem:[%s9632_s16 + $0x78] sm:$0xff] %v6695_v12 }
 0x4e0 PF: > { %s19_s30 = sadd.s32 1, %s6702_s30  }
 0x4e1   : > { %p16_p4 = scmp.ge.s32.totalorder %s19_s30, 4  }
 0x4e3   :  { %18 = sbr.rel (!%p16_p4) target bundleno = 1 (0x1), region = 86 }

</bundles_post_ra>
